<compile_context>
chip_gen: v5e
topology: v5e:2x2
jax: 0.10.0
libtpu: 0.0.40
codegen_flags: <defaults>
</compile_context>

<pallas_src>
import functools

import numpy as np
import jax
import jax.numpy as jnp
from jax import lax
from jax.experimental import pallas as pl
from jax.experimental.pallas import tpu as pltpu


# ----------------------------------------------------------------------------
# Host-side (trace-time) structural constants — pure numpy, become HLO consts.
# ----------------------------------------------------------------------------
def _conv_shift_mats(h, w):
    """S[t, p, q] = 1 iff input pixel p is the valid source of output pixel q
    for tap t ((ky,kx)=divmod(t,3)) of a 3x3 / padding=1 'same' convolution.
    Zero-padding is folded in: invalid columns are all-zero."""
    hw = h * w
    s = np.zeros((9, hw, hw), np.float32)
    for t in range(9):
        ky, kx = divmod(t, 3)
        for q in range(hw):
            qy, qx = divmod(q, w)
            sy, sx = qy + ky - 1, qx + kx - 1
            if 0 <= sy < h and 0 <= sx < w:
                s[t, sy * w + sx, q] = 1.0
    return s


def _pool_gather_mats(h, w):
    """P[d, p, qo] = 1 iff input pixel p is phase d of output pixel qo of a
    2x2 / stride-2 max pool."""
    ho, wo = h // 2, w // 2
    p = np.zeros((4, h * w, ho * wo), np.float32)
    for d in range(4):
        dy, dx = divmod(d, 2)
        for qo in range(ho * wo):
            yo, xo = divmod(qo, wo)
            p[d, (2 * yo + dy) * w + (2 * xo + dx), qo] = 1.0
    return p


def _tconv_scatter_mats(h, w):
    """T[t, p, r] = 1 iff input pixel p of an (h,w) map scatters to output pixel
    r of the (2h,2w) map for tap t of a 2x2 / stride-2 transposed conv."""
    t_m = np.zeros((4, h * w, 4 * h * w), np.float32)
    for t in range(4):
        ky, kx = divmod(t, 2)
        for p in range(h * w):
            py, px = divmod(p, w)
            t_m[t, p, (2 * py + ky) * (2 * w) + (2 * px + kx)] = 1.0
    return t_m


def _pick_batch_tile(n, max_bt=8):
    """Largest batch tile <= max_bt that divides n while keeping grid >= 2 (v7x)."""
    best = 1
    for bt in range(1, min(n, max_bt) + 1):
        if n % bt == 0 and (n // bt >= 2 or n == 1):
            best = bt
    return best


# ----------------------------------------------------------------------------
# Fused forward-pass kernel (one grid step == bt images of the batch).
# ----------------------------------------------------------------------------
def _autoencoder_kernel(x_ref, w1_ref, b1_ref, w2_ref, b2_ref,
                        tw1_ref, tb1_ref, tw2_ref, tb2_ref,
                        s1_ref, s2_ref, p1_ref, p2_ref, t1_ref, t2_ref,
                        o_ref, *, bt):
    f32 = jnp.float32
    w1, b1 = w1_ref[...], b1_ref[...]
    w2, b2 = w2_ref[...], b2_ref[...]
    tw1, tb1 = tw1_ref[...], tb1_ref[...]
    tw2, tb2 = tw2_ref[...], tb2_ref[...]

    def conv_taps(x, wcat, b, mats_ref, ntaps):
        """Generic per-tap conv: y = b + sum_t (Wcat_t @ x) @ M_t.

        Used for both the 3x3 'same' conv (M_t = shift + padding mask, 9 taps)
        and the 2x2 stride-2 transposed conv (M_t = pixel interleave, 4 taps).
        Channel mixing for ALL taps is a single MXU matmul (M = ntaps*Cout)."""
        cout = wcat.shape[0] // ntaps
        taps = jnp.dot(wcat, x, preferred_element_type=f32)       # (ntaps*Cout, hw_in)
        out = b + jnp.dot(taps[0:cout, :], mats_ref[0], preferred_element_type=f32)
        for t in range(1, ntaps):
            out = out + jnp.dot(taps[t * cout:(t + 1) * cout, :], mats_ref[t],
                                preferred_element_type=f32)
        return out

    def maxpool2x2(x, p_ref):
        out = jnp.dot(x, p_ref[0], preferred_element_type=f32)
        for d in range(1, 4):
            out = jnp.maximum(out, jnp.dot(x, p_ref[d], preferred_element_type=f32))
        return out

    for i in range(bt):                                            # static unroll
        x = x_ref[i].astype(f32)                                   # (Cin, H*W)
        y = jnp.maximum(conv_taps(x, w1, b1, s1_ref, 9), 0.0)      # conv1 + relu
        y = maxpool2x2(y, p1_ref)                                  # pool 2x2
        y = jnp.maximum(conv_taps(y, w2, b2, s2_ref, 9), 0.0)      # conv2 + relu
        y = maxpool2x2(y, p2_ref)                                  # pool 2x2
        y = jnp.maximum(conv_taps(y, tw1, tb1, t1_ref, 4), 0.0)    # t_conv1 + relu
        y = conv_taps(y, tw2, tb2, t2_ref, 4)                      # t_conv2
        y = pl.reciprocal(1.0 + jnp.exp(-y), approx=True)          # sigmoid (EUP)
        o_ref[i] = y.astype(o_ref.dtype)                           # lane-dense store


# ----------------------------------------------------------------------------
# Public wrapper: NCHW in -> NCHW out (PyTorch convention), ONE pallas_call.
# ----------------------------------------------------------------------------
@jax.jit
def conv_autoencoder_forward(params, x_nchw):
    N, C, H, W = x_nchw.shape
    assert H % 4 == 0 and W % 4 == 0, "two 2x2 pools require H, W divisible by 4"
    HW = H * W

    # PyTorch weight layouts -> packed per-tap layouts (tiny, hoisted once).
    # Row t*Cout + o of Wcat holds W[o, tap t, :].
    w1cat = jnp.transpose(params["conv1_w"], (2, 3, 0, 1)).reshape(9 * 16, C)
    b1 = params["conv1_b"].reshape(16, 1)
    w2cat = jnp.transpose(params["conv2_w"], (2, 3, 0, 1)).reshape(9 * 4, 16)
    b2 = params["conv2_b"].reshape(4, 1)
    tw1cat = jnp.transpose(params["tconv1_w"], (2, 3, 1, 0)).reshape(4 * 16, 4)
    tb1 = params["tconv1_b"].reshape(16, 1)
    tw2cat = jnp.transpose(params["tconv2_w"], (2, 3, 1, 0)).reshape(4 * C, 16)
    tb2 = params["tconv2_b"].reshape(C, 1)

    # Structural 0/1 constants (numpy -> compile-time constants, ~3 MiB total).
    s1 = _conv_shift_mats(H, W)
    s2 = _conv_shift_mats(H // 2, W // 2)
    p1 = _pool_gather_mats(H, W)
    p2 = _pool_gather_mats(H // 2, W // 2)
    t1 = _tconv_scatter_mats(H // 4, W // 4)
    t2 = _tconv_scatter_mats(H // 2, W // 2)

    x_flat = x_nchw.reshape(N, C, HW)      # free row-major reshape, no transpose
    bt = _pick_batch_tile(N)
    consts = (w1cat, b1, w2cat, b2, tw1cat, tb1, tw2cat, tb2,
              s1, s2, p1, p2, t1, t2)

    def _resident(a):
        # Full-array block with a constant index map: DMA'd once, stays in VMEM.
        idx = (0,) * a.ndim
        return pl.BlockSpec(tuple(int(d) for d in a.shape), lambda n: idx)

    grid_spec = pltpu.PrefetchScalarGridSpec(
        num_scalar_prefetch=0,
        grid=(N // bt,),
        in_specs=[pl.BlockSpec((bt, C, HW), lambda n: (n, 0, 0))]
                + [_resident(a) for a in consts],
        out_specs=pl.BlockSpec((bt, C, HW), lambda n: (n, 0, 0)),
    )
    out = pl.pallas_call(
        functools.partial(_autoencoder_kernel, bt=bt),
        out_shape=jax.ShapeDtypeStruct((N, C, HW), x_nchw.dtype),
        grid_spec=grid_spec,
        compiler_params=pltpu.CompilerParams(
            dimension_semantics=("parallel",),   # batch axis -> both TCs on v7x
        ),
    )(x_flat, *consts)
    return out.reshape(N, C, H, W)


# ----------------------------------------------------------------------------
# Parameters (PyTorch-native layouts, deterministic uniform init).
# ----------------------------------------------------------------------------
def init_params(key, in_channel):
    ks = jax.random.split(key, 8)

    def u(k, shape, fan_in):
        bound = 1.0 / (fan_in ** 0.5)
        return jax.random.uniform(k, shape, jnp.float32, -bound, bound)

    return {
        "conv1_w": u(ks[0], (16, in_channel, 3, 3), 3 * 3 * in_channel),
        "conv1_b": u(ks[1], (16,), 3 * 3 * in_channel),
        "conv2_w": u(ks[2], (4, 16, 3, 3), 3 * 3 * 16),
        "conv2_b": u(ks[3], (4,), 3 * 3 * 16),
        "tconv1_w": u(ks[4], (4, 16, 2, 2), 2 * 2 * 4),
        "tconv1_b": u(ks[5], (16,), 2 * 2 * 4),
        "tconv2_w": u(ks[6], (16, in_channel, 2, 2), 2 * 2 * 16),
        "tconv2_b": u(ks[7], (in_channel,), 2 * 2 * 16),
    }


# ----------------------------------------------------------------------------
# Pure-JAX reference (matches ConvAutoencoder.forward) for validation.
# ----------------------------------------------------------------------------
def _reference_forward(params, x):
    def conv(x, w, b):
        y = lax.conv_general_dilated(x, w, (1, 1), ((1, 1), (1, 1)),
                                     dimension_numbers=("NCHW", "OIHW", "NCHW"))
        return y + b[None, :, None, None]

    def pool(x):
        return lax.reduce_window(x, -jnp.inf, lax.max,
                                 (1, 1, 2, 2), (1, 1, 2, 2), "VALID")

    def tconv(x, w, b):
        n, ci, hh, ww = x.shape
        co = w.shape[1]
        y = jnp.einsum("ncyx,cokl->noykxl", x, w).reshape(n, co, 2 * hh, 2 * ww)
        return y + b[None, :, None, None]

    y = jax.nn.relu(conv(x, params["conv1_w"], params["conv1_b"]))
    y = pool(y)
    y = jax.nn.relu(conv(y, params["conv2_w"], params["conv2_b"]))
    y = pool(y)
    y = jax.nn.relu(tconv(y, params["tconv1_w"], params["tconv1_b"]))
    y = jax.nn.sigmoid(tconv(y, params["tconv2_w"], params["tconv2_b"]))
    return y


if __name__ == "__main__":
    key = jax.random.PRNGKey(0)
    kx, kp = jax.random.split(key)

    in_channel = 4
    x = jax.random.uniform(kx, (2, in_channel, 16, 16), jnp.float32)
    params = init_params(kp, in_channel)

    out = conv_autoencoder_forward(params, x)
    out = jax.block_until_ready(out)

    assert out.shape == x.shape, out.shape
    assert bool(jnp.all(jnp.isfinite(out)))
    assert bool(jnp.all((out >= 0.0) & (out <= 1.0)))   # sigmoid output range

    ref = _reference_forward(params, x)
    max_err = float(jnp.max(jnp.abs(out - ref)))
    assert max_err < 5e-3, f"max abs err vs reference: {max_err}"

    print("KERNEL_OK")
</pallas_src>

<mosaic_0001>
module attributes {stable_mosaic.version = 11 : i64} {
  func.func @_autoencoder_kernel(%arg0: i32, %arg1: memref<1x4x256xf32, #tpu.memory_space<vmem>>, %arg2: memref<144x4xf32, #tpu.memory_space<vmem>>, %arg3: memref<16x1xf32, #tpu.memory_space<vmem>>, %arg4: memref<36x16xf32, #tpu.memory_space<vmem>>, %arg5: memref<4x1xf32, #tpu.memory_space<vmem>>, %arg6: memref<64x4xf32, #tpu.memory_space<vmem>>, %arg7: memref<16x1xf32, #tpu.memory_space<vmem>>, %arg8: memref<16x16xf32, #tpu.memory_space<vmem>>, %arg9: memref<4x1xf32, #tpu.memory_space<vmem>>, %arg10: memref<9x256x256xf32, #tpu.memory_space<vmem>>, %arg11: memref<9x64x64xf32, #tpu.memory_space<vmem>>, %arg12: memref<4x256x64xf32, #tpu.memory_space<vmem>>, %arg13: memref<4x64x16xf32, #tpu.memory_space<vmem>>, %arg14: memref<4x16x64xf32, #tpu.memory_space<vmem>>, %arg15: memref<4x64x256xf32, #tpu.memory_space<vmem>>, %arg16: memref<1x4x256xf32, #tpu.memory_space<vmem>>) attributes {dimension_semantics = [#tpu.dimension_semantics<parallel>], iteration_bounds = array<i64: 2>, scalar_prefetch = 0 : i64, scratch_operands = 0 : i64, tpu.core_type = #tpu.core_type<tc>, window_params = [{transform_indices = @transform_0, window_bounds = array<i64: 1, 4, 256>}, {pipeline_mode = #tpu.pipeline_mode<synchronous>, transform_indices = @transform_1, window_bounds = array<i64: 144, 4>}, {pipeline_mode = #tpu.pipeline_mode<synchronous>, transform_indices = @transform_2, window_bounds = array<i64: 16, 1>}, {pipeline_mode = #tpu.pipeline_mode<synchronous>, transform_indices = @transform_3, window_bounds = array<i64: 36, 16>}, {pipeline_mode = #tpu.pipeline_mode<synchronous>, transform_indices = @transform_4, window_bounds = array<i64: 4, 1>}, {pipeline_mode = #tpu.pipeline_mode<synchronous>, transform_indices = @transform_5, window_bounds = array<i64: 64, 4>}, {pipeline_mode = #tpu.pipeline_mode<synchronous>, transform_indices = @transform_6, window_bounds = array<i64: 16, 1>}, {pipeline_mode = #tpu.pipeline_mode<synchronous>, transform_indices = @transform_7, window_bounds = array<i64: 16, 16>}, {pipeline_mode = #tpu.pipeline_mode<synchronous>, transform_indices = @transform_8, window_bounds = array<i64: 4, 1>}, {pipeline_mode = #tpu.pipeline_mode<synchronous>, transform_indices = @transform_9, window_bounds = array<i64: 9, 256, 256>}, {pipeline_mode = #tpu.pipeline_mode<synchronous>, transform_indices = @transform_10, window_bounds = array<i64: 9, 64, 64>}, {pipeline_mode = #tpu.pipeline_mode<synchronous>, transform_indices = @transform_11, window_bounds = array<i64: 4, 256, 64>}, {pipeline_mode = #tpu.pipeline_mode<synchronous>, transform_indices = @transform_12, window_bounds = array<i64: 4, 64, 16>}, {pipeline_mode = #tpu.pipeline_mode<synchronous>, transform_indices = @transform_13, window_bounds = array<i64: 4, 16, 64>}, {pipeline_mode = #tpu.pipeline_mode<synchronous>, transform_indices = @transform_14, window_bounds = array<i64: 4, 64, 256>}, {transform_indices = @transform_15, window_bounds = array<i64: 1, 4, 256>}]} {
    %c0 = arith.constant 0 : index
    %c0_0 = arith.constant 0 : index
    %0 = vector.load %arg2[%c0, %c0_0] : memref<144x4xf32, #tpu.memory_space<vmem>>, vector<144x4xf32>
    %c0_1 = arith.constant 0 : index
    %c0_2 = arith.constant 0 : index
    %1 = vector.load %arg3[%c0_1, %c0_2] : memref<16x1xf32, #tpu.memory_space<vmem>>, vector<16x1xf32>
    %c0_3 = arith.constant 0 : index
    %c0_4 = arith.constant 0 : index
    %2 = vector.load %arg4[%c0_3, %c0_4] : memref<36x16xf32, #tpu.memory_space<vmem>>, vector<36x16xf32>
    %c0_5 = arith.constant 0 : index
    %c0_6 = arith.constant 0 : index
    %3 = vector.load %arg5[%c0_5, %c0_6] : memref<4x1xf32, #tpu.memory_space<vmem>>, vector<4x1xf32>
    %c0_7 = arith.constant 0 : index
    %c0_8 = arith.constant 0 : index
    %4 = vector.load %arg6[%c0_7, %c0_8] : memref<64x4xf32, #tpu.memory_space<vmem>>, vector<64x4xf32>
    %c0_9 = arith.constant 0 : index
    %c0_10 = arith.constant 0 : index
    %5 = vector.load %arg7[%c0_9, %c0_10] : memref<16x1xf32, #tpu.memory_space<vmem>>, vector<16x1xf32>
    %c0_11 = arith.constant 0 : index
    %c0_12 = arith.constant 0 : index
    %6 = vector.load %arg8[%c0_11, %c0_12] : memref<16x16xf32, #tpu.memory_space<vmem>>, vector<16x16xf32>
    %c0_13 = arith.constant 0 : index
    %c0_14 = arith.constant 0 : index
    %7 = vector.load %arg9[%c0_13, %c0_14] : memref<4x1xf32, #tpu.memory_space<vmem>>, vector<4x1xf32>
    %c0_15 = arith.constant 0 : index
    %c0_16 = arith.constant 0 : index
    %c0_17 = arith.constant 0 : index
    %8 = vector.load %arg1[%c0_15, %c0_16, %c0_17] : memref<1x4x256xf32, #tpu.memory_space<vmem>>, vector<1x4x256xf32>
    %9 = vector.shape_cast %8 : vector<1x4x256xf32> to vector<4x256xf32>
    %cst = arith.constant dense<0.000000e+00> : vector<144x256xf32>
    %10 = tpu.matmul %0, %9, %cst {dimension_numbers = #tpu.dot_dimension_numbers<[1], [0], [0], [1], [0, 0, 1, 1], [], []>} : vector<144x4xf32>, vector<4x256xf32>, vector<144x256xf32> -> vector<144x256xf32>
    %11 = vector.extract_strided_slice %10 {offsets = [0, 0], sizes = [16, 256], strides = [1, 1]} : vector<144x256xf32> to vector<16x256xf32>
    %c0_18 = arith.constant 0 : index
    %c0_19 = arith.constant 0 : index
    %c0_20 = arith.constant 0 : index
    %12 = vector.load %arg10[%c0_18, %c0_19, %c0_20] : memref<9x256x256xf32, #tpu.memory_space<vmem>>, vector<1x256x256xf32>
    %13 = vector.shape_cast %12 : vector<1x256x256xf32> to vector<256x256xf32>
    %cst_21 = arith.constant dense<0.000000e+00> : vector<16x256xf32>
    %14 = tpu.matmul %11, %13, %cst_21 {dimension_numbers = #tpu.dot_dimension_numbers<[1], [0], [0], [1], [0, 0, 1, 1], [], []>} : vector<16x256xf32>, vector<256x256xf32>, vector<16x256xf32> -> vector<16x256xf32>
    %15 = vector.broadcast %1 : vector<16x1xf32> to vector<16x256xf32>
    %16 = arith.addf %15, %14 : vector<16x256xf32>
    %17 = vector.extract_strided_slice %10 {offsets = [16, 0], sizes = [16, 256], strides = [1, 1]} : vector<144x256xf32> to vector<16x256xf32>
    %c1 = arith.constant 1 : index
    %c0_22 = arith.constant 0 : index
    %c0_23 = arith.constant 0 : index
    %18 = vector.load %arg10[%c1, %c0_22, %c0_23] : memref<9x256x256xf32, #tpu.memory_space<vmem>>, vector<1x256x256xf32>
    %19 = vector.shape_cast %18 : vector<1x256x256xf32> to vector<256x256xf32>
    %cst_24 = arith.constant dense<0.000000e+00> : vector<16x256xf32>
    %20 = tpu.matmul %17, %19, %cst_24 {dimension_numbers = #tpu.dot_dimension_numbers<[1], [0], [0], [1], [0, 0, 1, 1], [], []>} : vector<16x256xf32>, vector<256x256xf32>, vector<16x256xf32> -> vector<16x256xf32>
    %21 = arith.addf %16, %20 : vector<16x256xf32>
    %22 = vector.extract_strided_slice %10 {offsets = [32, 0], sizes = [16, 256], strides = [1, 1]} : vector<144x256xf32> to vector<16x256xf32>
    %c2 = arith.constant 2 : index
    %c0_25 = arith.constant 0 : index
    %c0_26 = arith.constant 0 : index
    %23 = vector.load %arg10[%c2, %c0_25, %c0_26] : memref<9x256x256xf32, #tpu.memory_space<vmem>>, vector<1x256x256xf32>
    %24 = vector.shape_cast %23 : vector<1x256x256xf32> to vector<256x256xf32>
    %cst_27 = arith.constant dense<0.000000e+00> : vector<16x256xf32>
    %25 = tpu.matmul %22, %24, %cst_27 {dimension_numbers = #tpu.dot_dimension_numbers<[1], [0], [0], [1], [0, 0, 1, 1], [], []>} : vector<16x256xf32>, vector<256x256xf32>, vector<16x256xf32> -> vector<16x256xf32>
    %26 = arith.addf %21, %25 : vector<16x256xf32>
    %27 = vector.extract_strided_slice %10 {offsets = [48, 0], sizes = [16, 256], strides = [1, 1]} : vector<144x256xf32> to vector<16x256xf32>
    %c3 = arith.constant 3 : index
    %c0_28 = arith.constant 0 : index
    %c0_29 = arith.constant 0 : index
    %28 = vector.load %arg10[%c3, %c0_28, %c0_29] : memref<9x256x256xf32, #tpu.memory_space<vmem>>, vector<1x256x256xf32>
    %29 = vector.shape_cast %28 : vector<1x256x256xf32> to vector<256x256xf32>
    %cst_30 = arith.constant dense<0.000000e+00> : vector<16x256xf32>
    %30 = tpu.matmul %27, %29, %cst_30 {dimension_numbers = #tpu.dot_dimension_numbers<[1], [0], [0], [1], [0, 0, 1, 1], [], []>} : vector<16x256xf32>, vector<256x256xf32>, vector<16x256xf32> -> vector<16x256xf32>
    %31 = arith.addf %26, %30 : vector<16x256xf32>
    %32 = vector.extract_strided_slice %10 {offsets = [64, 0], sizes = [16, 256], strides = [1, 1]} : vector<144x256xf32> to vector<16x256xf32>
    %c4 = arith.constant 4 : index
    %c0_31 = arith.constant 0 : index
    %c0_32 = arith.constant 0 : index
    %33 = vector.load %arg10[%c4, %c0_31, %c0_32] : memref<9x256x256xf32, #tpu.memory_space<vmem>>, vector<1x256x256xf32>
    %34 = vector.shape_cast %33 : vector<1x256x256xf32> to vector<256x256xf32>
    %cst_33 = arith.constant dense<0.000000e+00> : vector<16x256xf32>
    %35 = tpu.matmul %32, %34, %cst_33 {dimension_numbers = #tpu.dot_dimension_numbers<[1], [0], [0], [1], [0, 0, 1, 1], [], []>} : vector<16x256xf32>, vector<256x256xf32>, vector<16x256xf32> -> vector<16x256xf32>
    %36 = arith.addf %31, %35 : vector<16x256xf32>
    %37 = vector.extract_strided_slice %10 {offsets = [80, 0], sizes = [16, 256], strides = [1, 1]} : vector<144x256xf32> to vector<16x256xf32>
    %c5 = arith.constant 5 : index
    %c0_34 = arith.constant 0 : index
    %c0_35 = arith.constant 0 : index
    %38 = vector.load %arg10[%c5, %c0_34, %c0_35] : memref<9x256x256xf32, #tpu.memory_space<vmem>>, vector<1x256x256xf32>
    %39 = vector.shape_cast %38 : vector<1x256x256xf32> to vector<256x256xf32>
    %cst_36 = arith.constant dense<0.000000e+00> : vector<16x256xf32>
    %40 = tpu.matmul %37, %39, %cst_36 {dimension_numbers = #tpu.dot_dimension_numbers<[1], [0], [0], [1], [0, 0, 1, 1], [], []>} : vector<16x256xf32>, vector<256x256xf32>, vector<16x256xf32> -> vector<16x256xf32>
    %41 = arith.addf %36, %40 : vector<16x256xf32>
    %42 = vector.extract_strided_slice %10 {offsets = [96, 0], sizes = [16, 256], strides = [1, 1]} : vector<144x256xf32> to vector<16x256xf32>
    %c6 = arith.constant 6 : index
    %c0_37 = arith.constant 0 : index
    %c0_38 = arith.constant 0 : index
    %43 = vector.load %arg10[%c6, %c0_37, %c0_38] : memref<9x256x256xf32, #tpu.memory_space<vmem>>, vector<1x256x256xf32>
    %44 = vector.shape_cast %43 : vector<1x256x256xf32> to vector<256x256xf32>
    %cst_39 = arith.constant dense<0.000000e+00> : vector<16x256xf32>
    %45 = tpu.matmul %42, %44, %cst_39 {dimension_numbers = #tpu.dot_dimension_numbers<[1], [0], [0], [1], [0, 0, 1, 1], [], []>} : vector<16x256xf32>, vector<256x256xf32>, vector<16x256xf32> -> vector<16x256xf32>
    %46 = arith.addf %41, %45 : vector<16x256xf32>
    %47 = vector.extract_strided_slice %10 {offsets = [112, 0], sizes = [16, 256], strides = [1, 1]} : vector<144x256xf32> to vector<16x256xf32>
    %c7 = arith.constant 7 : index
    %c0_40 = arith.constant 0 : index
    %c0_41 = arith.constant 0 : index
    %48 = vector.load %arg10[%c7, %c0_40, %c0_41] : memref<9x256x256xf32, #tpu.memory_space<vmem>>, vector<1x256x256xf32>
    %49 = vector.shape_cast %48 : vector<1x256x256xf32> to vector<256x256xf32>
    %cst_42 = arith.constant dense<0.000000e+00> : vector<16x256xf32>
    %50 = tpu.matmul %47, %49, %cst_42 {dimension_numbers = #tpu.dot_dimension_numbers<[1], [0], [0], [1], [0, 0, 1, 1], [], []>} : vector<16x256xf32>, vector<256x256xf32>, vector<16x256xf32> -> vector<16x256xf32>
    %51 = arith.addf %46, %50 : vector<16x256xf32>
    %52 = vector.extract_strided_slice %10 {offsets = [128, 0], sizes = [16, 256], strides = [1, 1]} : vector<144x256xf32> to vector<16x256xf32>
    %c8 = arith.constant 8 : index
    %c0_43 = arith.constant 0 : index
    %c0_44 = arith.constant 0 : index
    %53 = vector.load %arg10[%c8, %c0_43, %c0_44] : memref<9x256x256xf32, #tpu.memory_space<vmem>>, vector<1x256x256xf32>
    %54 = vector.shape_cast %53 : vector<1x256x256xf32> to vector<256x256xf32>
    %cst_45 = arith.constant dense<0.000000e+00> : vector<16x256xf32>
    %55 = tpu.matmul %52, %54, %cst_45 {dimension_numbers = #tpu.dot_dimension_numbers<[1], [0], [0], [1], [0, 0, 1, 1], [], []>} : vector<16x256xf32>, vector<256x256xf32>, vector<16x256xf32> -> vector<16x256xf32>
    %56 = arith.addf %51, %55 : vector<16x256xf32>
    %cst_46 = arith.constant 0.000000e+00 : f32
    %57 = vector.broadcast %cst_46 : f32 to vector<16x256xf32>
    %58 = arith.maximumf %56, %57 : vector<16x256xf32>
    %c0_47 = arith.constant 0 : index
    %c0_48 = arith.constant 0 : index
    %c0_49 = arith.constant 0 : index
    %59 = vector.load %arg12[%c0_47, %c0_48, %c0_49] : memref<4x256x64xf32, #tpu.memory_space<vmem>>, vector<1x256x64xf32>
    %60 = vector.shape_cast %59 : vector<1x256x64xf32> to vector<256x64xf32>
    %cst_50 = arith.constant dense<0.000000e+00> : vector<16x64xf32>
    %61 = tpu.matmul %58, %60, %cst_50 {dimension_numbers = #tpu.dot_dimension_numbers<[1], [0], [0], [1], [0, 0, 1, 1], [], []>} : vector<16x256xf32>, vector<256x64xf32>, vector<16x64xf32> -> vector<16x64xf32>
    %c1_51 = arith.constant 1 : index
    %c0_52 = arith.constant 0 : index
    %c0_53 = arith.constant 0 : index
    %62 = vector.load %arg12[%c1_51, %c0_52, %c0_53] : memref<4x256x64xf32, #tpu.memory_space<vmem>>, vector<1x256x64xf32>
    %63 = vector.shape_cast %62 : vector<1x256x64xf32> to vector<256x64xf32>
    %cst_54 = arith.constant dense<0.000000e+00> : vector<16x64xf32>
    %64 = tpu.matmul %58, %63, %cst_54 {dimension_numbers = #tpu.dot_dimension_numbers<[1], [0], [0], [1], [0, 0, 1, 1], [], []>} : vector<16x256xf32>, vector<256x64xf32>, vector<16x64xf32> -> vector<16x64xf32>
    %65 = arith.maximumf %61, %64 : vector<16x64xf32>
    %c2_55 = arith.constant 2 : index
    %c0_56 = arith.constant 0 : index
    %c0_57 = arith.constant 0 : index
    %66 = vector.load %arg12[%c2_55, %c0_56, %c0_57] : memref<4x256x64xf32, #tpu.memory_space<vmem>>, vector<1x256x64xf32>
    %67 = vector.shape_cast %66 : vector<1x256x64xf32> to vector<256x64xf32>
    %cst_58 = arith.constant dense<0.000000e+00> : vector<16x64xf32>
    %68 = tpu.matmul %58, %67, %cst_58 {dimension_numbers = #tpu.dot_dimension_numbers<[1], [0], [0], [1], [0, 0, 1, 1], [], []>} : vector<16x256xf32>, vector<256x64xf32>, vector<16x64xf32> -> vector<16x64xf32>
    %69 = arith.maximumf %65, %68 : vector<16x64xf32>
    %c3_59 = arith.constant 3 : index
    %c0_60 = arith.constant 0 : index
    %c0_61 = arith.constant 0 : index
    %70 = vector.load %arg12[%c3_59, %c0_60, %c0_61] : memref<4x256x64xf32, #tpu.memory_space<vmem>>, vector<1x256x64xf32>
    %71 = vector.shape_cast %70 : vector<1x256x64xf32> to vector<256x64xf32>
    %cst_62 = arith.constant dense<0.000000e+00> : vector<16x64xf32>
    %72 = tpu.matmul %58, %71, %cst_62 {dimension_numbers = #tpu.dot_dimension_numbers<[1], [0], [0], [1], [0, 0, 1, 1], [], []>} : vector<16x256xf32>, vector<256x64xf32>, vector<16x64xf32> -> vector<16x64xf32>
    %73 = arith.maximumf %69, %72 : vector<16x64xf32>
    %cst_63 = arith.constant dense<0.000000e+00> : vector<36x64xf32>
    %74 = tpu.matmul %2, %73, %cst_63 {dimension_numbers = #tpu.dot_dimension_numbers<[1], [0], [0], [1], [0, 0, 1, 1], [], []>} : vector<36x16xf32>, vector<16x64xf32>, vector<36x64xf32> -> vector<36x64xf32>
    %75 = vector.extract_strided_slice %74 {offsets = [0, 0], sizes = [4, 64], strides = [1, 1]} : vector<36x64xf32> to vector<4x64xf32>
    %c0_64 = arith.constant 0 : index
    %c0_65 = arith.constant 0 : index
    %c0_66 = arith.constant 0 : index
    %76 = vector.load %arg11[%c0_64, %c0_65, %c0_66] : memref<9x64x64xf32, #tpu.memory_space<vmem>>, vector<1x64x64xf32>
    %77 = vector.shape_cast %76 : vector<1x64x64xf32> to vector<64x64xf32>
    %cst_67 = arith.constant dense<0.000000e+00> : vector<4x64xf32>
    %78 = tpu.matmul %75, %77, %cst_67 {dimension_numbers = #tpu.dot_dimension_numbers<[1], [0], [0], [1], [0, 0, 1, 1], [], []>} : vector<4x64xf32>, vector<64x64xf32>, vector<4x64xf32> -> vector<4x64xf32>
    %79 = vector.broadcast %3 : vector<4x1xf32> to vector<4x64xf32>
    %80 = arith.addf %79, %78 : vector<4x64xf32>
    %81 = vector.extract_strided_slice %74 {offsets = [4, 0], sizes = [4, 64], strides = [1, 1]} : vector<36x64xf32> to vector<4x64xf32>
    %c1_68 = arith.constant 1 : index
    %c0_69 = arith.constant 0 : index
    %c0_70 = arith.constant 0 : index
    %82 = vector.load %arg11[%c1_68, %c0_69, %c0_70] : memref<9x64x64xf32, #tpu.memory_space<vmem>>, vector<1x64x64xf32>
    %83 = vector.shape_cast %82 : vector<1x64x64xf32> to vector<64x64xf32>
    %cst_71 = arith.constant dense<0.000000e+00> : vector<4x64xf32>
    %84 = tpu.matmul %81, %83, %cst_71 {dimension_numbers = #tpu.dot_dimension_numbers<[1], [0], [0], [1], [0, 0, 1, 1], [], []>} : vector<4x64xf32>, vector<64x64xf32>, vector<4x64xf32> -> vector<4x64xf32>
    %85 = arith.addf %80, %84 : vector<4x64xf32>
    %86 = vector.extract_strided_slice %74 {offsets = [8, 0], sizes = [4, 64], strides = [1, 1]} : vector<36x64xf32> to vector<4x64xf32>
    %c2_72 = arith.constant 2 : index
    %c0_73 = arith.constant 0 : index
    %c0_74 = arith.constant 0 : index
    %87 = vector.load %arg11[%c2_72, %c0_73, %c0_74] : memref<9x64x64xf32, #tpu.memory_space<vmem>>, vector<1x64x64xf32>
    %88 = vector.shape_cast %87 : vector<1x64x64xf32> to vector<64x64xf32>
    %cst_75 = arith.constant dense<0.000000e+00> : vector<4x64xf32>
    %89 = tpu.matmul %86, %88, %cst_75 {dimension_numbers = #tpu.dot_dimension_numbers<[1], [0], [0], [1], [0, 0, 1, 1], [], []>} : vector<4x64xf32>, vector<64x64xf32>, vector<4x64xf32> -> vector<4x64xf32>
    %90 = arith.addf %85, %89 : vector<4x64xf32>
    %91 = vector.extract_strided_slice %74 {offsets = [12, 0], sizes = [4, 64], strides = [1, 1]} : vector<36x64xf32> to vector<4x64xf32>
    %c3_76 = arith.constant 3 : index
    %c0_77 = arith.constant 0 : index
    %c0_78 = arith.constant 0 : index
    %92 = vector.load %arg11[%c3_76, %c0_77, %c0_78] : memref<9x64x64xf32, #tpu.memory_space<vmem>>, vector<1x64x64xf32>
    %93 = vector.shape_cast %92 : vector<1x64x64xf32> to vector<64x64xf32>
    %cst_79 = arith.constant dense<0.000000e+00> : vector<4x64xf32>
    %94 = tpu.matmul %91, %93, %cst_79 {dimension_numbers = #tpu.dot_dimension_numbers<[1], [0], [0], [1], [0, 0, 1, 1], [], []>} : vector<4x64xf32>, vector<64x64xf32>, vector<4x64xf32> -> vector<4x64xf32>
    %95 = arith.addf %90, %94 : vector<4x64xf32>
    %96 = vector.extract_strided_slice %74 {offsets = [16, 0], sizes = [4, 64], strides = [1, 1]} : vector<36x64xf32> to vector<4x64xf32>
    %c4_80 = arith.constant 4 : index
    %c0_81 = arith.constant 0 : index
    %c0_82 = arith.constant 0 : index
    %97 = vector.load %arg11[%c4_80, %c0_81, %c0_82] : memref<9x64x64xf32, #tpu.memory_space<vmem>>, vector<1x64x64xf32>
    %98 = vector.shape_cast %97 : vector<1x64x64xf32> to vector<64x64xf32>
    %cst_83 = arith.constant dense<0.000000e+00> : vector<4x64xf32>
    %99 = tpu.matmul %96, %98, %cst_83 {dimension_numbers = #tpu.dot_dimension_numbers<[1], [0], [0], [1], [0, 0, 1, 1], [], []>} : vector<4x64xf32>, vector<64x64xf32>, vector<4x64xf32> -> vector<4x64xf32>
    %100 = arith.addf %95, %99 : vector<4x64xf32>
    %101 = vector.extract_strided_slice %74 {offsets = [20, 0], sizes = [4, 64], strides = [1, 1]} : vector<36x64xf32> to vector<4x64xf32>
    %c5_84 = arith.constant 5 : index
    %c0_85 = arith.constant 0 : index
    %c0_86 = arith.constant 0 : index
    %102 = vector.load %arg11[%c5_84, %c0_85, %c0_86] : memref<9x64x64xf32, #tpu.memory_space<vmem>>, vector<1x64x64xf32>
    %103 = vector.shape_cast %102 : vector<1x64x64xf32> to vector<64x64xf32>
    %cst_87 = arith.constant dense<0.000000e+00> : vector<4x64xf32>
    %104 = tpu.matmul %101, %103, %cst_87 {dimension_numbers = #tpu.dot_dimension_numbers<[1], [0], [0], [1], [0, 0, 1, 1], [], []>} : vector<4x64xf32>, vector<64x64xf32>, vector<4x64xf32> -> vector<4x64xf32>
    %105 = arith.addf %100, %104 : vector<4x64xf32>
    %106 = vector.extract_strided_slice %74 {offsets = [24, 0], sizes = [4, 64], strides = [1, 1]} : vector<36x64xf32> to vector<4x64xf32>
    %c6_88 = arith.constant 6 : index
    %c0_89 = arith.constant 0 : index
    %c0_90 = arith.constant 0 : index
    %107 = vector.load %arg11[%c6_88, %c0_89, %c0_90] : memref<9x64x64xf32, #tpu.memory_space<vmem>>, vector<1x64x64xf32>
    %108 = vector.shape_cast %107 : vector<1x64x64xf32> to vector<64x64xf32>
    %cst_91 = arith.constant dense<0.000000e+00> : vector<4x64xf32>
    %109 = tpu.matmul %106, %108, %cst_91 {dimension_numbers = #tpu.dot_dimension_numbers<[1], [0], [0], [1], [0, 0, 1, 1], [], []>} : vector<4x64xf32>, vector<64x64xf32>, vector<4x64xf32> -> vector<4x64xf32>
    %110 = arith.addf %105, %109 : vector<4x64xf32>
    %111 = vector.extract_strided_slice %74 {offsets = [28, 0], sizes = [4, 64], strides = [1, 1]} : vector<36x64xf32> to vector<4x64xf32>
    %c7_92 = arith.constant 7 : index
    %c0_93 = arith.constant 0 : index
    %c0_94 = arith.constant 0 : index
    %112 = vector.load %arg11[%c7_92, %c0_93, %c0_94] : memref<9x64x64xf32, #tpu.memory_space<vmem>>, vector<1x64x64xf32>
    %113 = vector.shape_cast %112 : vector<1x64x64xf32> to vector<64x64xf32>
    %cst_95 = arith.constant dense<0.000000e+00> : vector<4x64xf32>
    %114 = tpu.matmul %111, %113, %cst_95 {dimension_numbers = #tpu.dot_dimension_numbers<[1], [0], [0], [1], [0, 0, 1, 1], [], []>} : vector<4x64xf32>, vector<64x64xf32>, vector<4x64xf32> -> vector<4x64xf32>
    %115 = arith.addf %110, %114 : vector<4x64xf32>
    %116 = vector.extract_strided_slice %74 {offsets = [32, 0], sizes = [4, 64], strides = [1, 1]} : vector<36x64xf32> to vector<4x64xf32>
    %c8_96 = arith.constant 8 : index
    %c0_97 = arith.constant 0 : index
    %c0_98 = arith.constant 0 : index
    %117 = vector.load %arg11[%c8_96, %c0_97, %c0_98] : memref<9x64x64xf32, #tpu.memory_space<vmem>>, vector<1x64x64xf32>
    %118 = vector.shape_cast %117 : vector<1x64x64xf32> to vector<64x64xf32>
    %cst_99 = arith.constant dense<0.000000e+00> : vector<4x64xf32>
    %119 = tpu.matmul %116, %118, %cst_99 {dimension_numbers = #tpu.dot_dimension_numbers<[1], [0], [0], [1], [0, 0, 1, 1], [], []>} : vector<4x64xf32>, vector<64x64xf32>, vector<4x64xf32> -> vector<4x64xf32>
    %120 = arith.addf %115, %119 : vector<4x64xf32>
    %cst_100 = arith.constant 0.000000e+00 : f32
    %121 = vector.broadcast %cst_100 : f32 to vector<4x64xf32>
    %122 = arith.maximumf %120, %121 : vector<4x64xf32>
    %c0_101 = arith.constant 0 : index
    %c0_102 = arith.constant 0 : index
    %c0_103 = arith.constant 0 : index
    %123 = vector.load %arg13[%c0_101, %c0_102, %c0_103] : memref<4x64x16xf32, #tpu.memory_space<vmem>>, vector<1x64x16xf32>
    %124 = vector.shape_cast %123 : vector<1x64x16xf32> to vector<64x16xf32>
    %cst_104 = arith.constant dense<0.000000e+00> : vector<4x16xf32>
    %125 = tpu.matmul %122, %124, %cst_104 {dimension_numbers = #tpu.dot_dimension_numbers<[1], [0], [0], [1], [0, 0, 1, 1], [], []>} : vector<4x64xf32>, vector<64x16xf32>, vector<4x16xf32> -> vector<4x16xf32>
    %c1_105 = arith.constant 1 : index
    %c0_106 = arith.constant 0 : index
    %c0_107 = arith.constant 0 : index
    %126 = vector.load %arg13[%c1_105, %c0_106, %c0_107] : memref<4x64x16xf32, #tpu.memory_space<vmem>>, vector<1x64x16xf32>
    %127 = vector.shape_cast %126 : vector<1x64x16xf32> to vector<64x16xf32>
    %cst_108 = arith.constant dense<0.000000e+00> : vector<4x16xf32>
    %128 = tpu.matmul %122, %127, %cst_108 {dimension_numbers = #tpu.dot_dimension_numbers<[1], [0], [0], [1], [0, 0, 1, 1], [], []>} : vector<4x64xf32>, vector<64x16xf32>, vector<4x16xf32> -> vector<4x16xf32>
    %129 = arith.maximumf %125, %128 : vector<4x16xf32>
    %c2_109 = arith.constant 2 : index
    %c0_110 = arith.constant 0 : index
    %c0_111 = arith.constant 0 : index
    %130 = vector.load %arg13[%c2_109, %c0_110, %c0_111] : memref<4x64x16xf32, #tpu.memory_space<vmem>>, vector<1x64x16xf32>
    %131 = vector.shape_cast %130 : vector<1x64x16xf32> to vector<64x16xf32>
    %cst_112 = arith.constant dense<0.000000e+00> : vector<4x16xf32>
    %132 = tpu.matmul %122, %131, %cst_112 {dimension_numbers = #tpu.dot_dimension_numbers<[1], [0], [0], [1], [0, 0, 1, 1], [], []>} : vector<4x64xf32>, vector<64x16xf32>, vector<4x16xf32> -> vector<4x16xf32>
    %133 = arith.maximumf %129, %132 : vector<4x16xf32>
    %c3_113 = arith.constant 3 : index
    %c0_114 = arith.constant 0 : index
    %c0_115 = arith.constant 0 : index
    %134 = vector.load %arg13[%c3_113, %c0_114, %c0_115] : memref<4x64x16xf32, #tpu.memory_space<vmem>>, vector<1x64x16xf32>
    %135 = vector.shape_cast %134 : vector<1x64x16xf32> to vector<64x16xf32>
    %cst_116 = arith.constant dense<0.000000e+00> : vector<4x16xf32>
    %136 = tpu.matmul %122, %135, %cst_116 {dimension_numbers = #tpu.dot_dimension_numbers<[1], [0], [0], [1], [0, 0, 1, 1], [], []>} : vector<4x64xf32>, vector<64x16xf32>, vector<4x16xf32> -> vector<4x16xf32>
    %137 = arith.maximumf %133, %136 : vector<4x16xf32>
    %cst_117 = arith.constant dense<0.000000e+00> : vector<64x16xf32>
    %138 = tpu.matmul %4, %137, %cst_117 {dimension_numbers = #tpu.dot_dimension_numbers<[1], [0], [0], [1], [0, 0, 1, 1], [], []>} : vector<64x4xf32>, vector<4x16xf32>, vector<64x16xf32> -> vector<64x16xf32>
    %139 = vector.extract_strided_slice %138 {offsets = [0, 0], sizes = [16, 16], strides = [1, 1]} : vector<64x16xf32> to vector<16x16xf32>
    %c0_118 = arith.constant 0 : index
    %c0_119 = arith.constant 0 : index
    %c0_120 = arith.constant 0 : index
    %140 = vector.load %arg14[%c0_118, %c0_119, %c0_120] : memref<4x16x64xf32, #tpu.memory_space<vmem>>, vector<1x16x64xf32>
    %141 = vector.shape_cast %140 : vector<1x16x64xf32> to vector<16x64xf32>
    %cst_121 = arith.constant dense<0.000000e+00> : vector<16x64xf32>
    %142 = tpu.matmul %139, %141, %cst_121 {dimension_numbers = #tpu.dot_dimension_numbers<[1], [0], [0], [1], [0, 0, 1, 1], [], []>} : vector<16x16xf32>, vector<16x64xf32>, vector<16x64xf32> -> vector<16x64xf32>
    %143 = vector.broadcast %5 : vector<16x1xf32> to vector<16x64xf32>
    %144 = arith.addf %143, %142 : vector<16x64xf32>
    %145 = vector.extract_strided_slice %138 {offsets = [16, 0], sizes = [16, 16], strides = [1, 1]} : vector<64x16xf32> to vector<16x16xf32>
    %c1_122 = arith.constant 1 : index
    %c0_123 = arith.constant 0 : index
    %c0_124 = arith.constant 0 : index
    %146 = vector.load %arg14[%c1_122, %c0_123, %c0_124] : memref<4x16x64xf32, #tpu.memory_space<vmem>>, vector<1x16x64xf32>
    %147 = vector.shape_cast %146 : vector<1x16x64xf32> to vector<16x64xf32>
    %cst_125 = arith.constant dense<0.000000e+00> : vector<16x64xf32>
    %148 = tpu.matmul %145, %147, %cst_125 {dimension_numbers = #tpu.dot_dimension_numbers<[1], [0], [0], [1], [0, 0, 1, 1], [], []>} : vector<16x16xf32>, vector<16x64xf32>, vector<16x64xf32> -> vector<16x64xf32>
    %149 = arith.addf %144, %148 : vector<16x64xf32>
    %150 = vector.extract_strided_slice %138 {offsets = [32, 0], sizes = [16, 16], strides = [1, 1]} : vector<64x16xf32> to vector<16x16xf32>
    %c2_126 = arith.constant 2 : index
    %c0_127 = arith.constant 0 : index
    %c0_128 = arith.constant 0 : index
    %151 = vector.load %arg14[%c2_126, %c0_127, %c0_128] : memref<4x16x64xf32, #tpu.memory_space<vmem>>, vector<1x16x64xf32>
    %152 = vector.shape_cast %151 : vector<1x16x64xf32> to vector<16x64xf32>
    %cst_129 = arith.constant dense<0.000000e+00> : vector<16x64xf32>
    %153 = tpu.matmul %150, %152, %cst_129 {dimension_numbers = #tpu.dot_dimension_numbers<[1], [0], [0], [1], [0, 0, 1, 1], [], []>} : vector<16x16xf32>, vector<16x64xf32>, vector<16x64xf32> -> vector<16x64xf32>
    %154 = arith.addf %149, %153 : vector<16x64xf32>
    %155 = vector.extract_strided_slice %138 {offsets = [48, 0], sizes = [16, 16], strides = [1, 1]} : vector<64x16xf32> to vector<16x16xf32>
    %c3_130 = arith.constant 3 : index
    %c0_131 = arith.constant 0 : index
    %c0_132 = arith.constant 0 : index
    %156 = vector.load %arg14[%c3_130, %c0_131, %c0_132] : memref<4x16x64xf32, #tpu.memory_space<vmem>>, vector<1x16x64xf32>
    %157 = vector.shape_cast %156 : vector<1x16x64xf32> to vector<16x64xf32>
    %cst_133 = arith.constant dense<0.000000e+00> : vector<16x64xf32>
    %158 = tpu.matmul %155, %157, %cst_133 {dimension_numbers = #tpu.dot_dimension_numbers<[1], [0], [0], [1], [0, 0, 1, 1], [], []>} : vector<16x16xf32>, vector<16x64xf32>, vector<16x64xf32> -> vector<16x64xf32>
    %159 = arith.addf %154, %158 : vector<16x64xf32>
    %cst_134 = arith.constant 0.000000e+00 : f32
    %160 = vector.broadcast %cst_134 : f32 to vector<16x64xf32>
    %161 = arith.maximumf %159, %160 : vector<16x64xf32>
    %cst_135 = arith.constant dense<0.000000e+00> : vector<16x64xf32>
    %162 = tpu.matmul %6, %161, %cst_135 {dimension_numbers = #tpu.dot_dimension_numbers<[1], [0], [0], [1], [0, 0, 1, 1], [], []>} : vector<16x16xf32>, vector<16x64xf32>, vector<16x64xf32> -> vector<16x64xf32>
    %163 = vector.extract_strided_slice %162 {offsets = [0, 0], sizes = [4, 64], strides = [1, 1]} : vector<16x64xf32> to vector<4x64xf32>
    %c0_136 = arith.constant 0 : index
    %c0_137 = arith.constant 0 : index
    %c0_138 = arith.constant 0 : index
    %164 = vector.load %arg15[%c0_136, %c0_137, %c0_138] : memref<4x64x256xf32, #tpu.memory_space<vmem>>, vector<1x64x256xf32>
    %165 = vector.shape_cast %164 : vector<1x64x256xf32> to vector<64x256xf32>
    %cst_139 = arith.constant dense<0.000000e+00> : vector<4x256xf32>
    %166 = tpu.matmul %163, %165, %cst_139 {dimension_numbers = #tpu.dot_dimension_numbers<[1], [0], [0], [1], [0, 0, 1, 1], [], []>} : vector<4x64xf32>, vector<64x256xf32>, vector<4x256xf32> -> vector<4x256xf32>
    %167 = vector.broadcast %7 : vector<4x1xf32> to vector<4x256xf32>
    %168 = arith.addf %167, %166 : vector<4x256xf32>
    %169 = vector.extract_strided_slice %162 {offsets = [4, 0], sizes = [4, 64], strides = [1, 1]} : vector<16x64xf32> to vector<4x64xf32>
    %c1_140 = arith.constant 1 : index
    %c0_141 = arith.constant 0 : index
    %c0_142 = arith.constant 0 : index
    %170 = vector.load %arg15[%c1_140, %c0_141, %c0_142] : memref<4x64x256xf32, #tpu.memory_space<vmem>>, vector<1x64x256xf32>
    %171 = vector.shape_cast %170 : vector<1x64x256xf32> to vector<64x256xf32>
    %cst_143 = arith.constant dense<0.000000e+00> : vector<4x256xf32>
    %172 = tpu.matmul %169, %171, %cst_143 {dimension_numbers = #tpu.dot_dimension_numbers<[1], [0], [0], [1], [0, 0, 1, 1], [], []>} : vector<4x64xf32>, vector<64x256xf32>, vector<4x256xf32> -> vector<4x256xf32>
    %173 = arith.addf %168, %172 : vector<4x256xf32>
    %174 = vector.extract_strided_slice %162 {offsets = [8, 0], sizes = [4, 64], strides = [1, 1]} : vector<16x64xf32> to vector<4x64xf32>
    %c2_144 = arith.constant 2 : index
    %c0_145 = arith.constant 0 : index
    %c0_146 = arith.constant 0 : index
    %175 = vector.load %arg15[%c2_144, %c0_145, %c0_146] : memref<4x64x256xf32, #tpu.memory_space<vmem>>, vector<1x64x256xf32>
    %176 = vector.shape_cast %175 : vector<1x64x256xf32> to vector<64x256xf32>
    %cst_147 = arith.constant dense<0.000000e+00> : vector<4x256xf32>
    %177 = tpu.matmul %174, %176, %cst_147 {dimension_numbers = #tpu.dot_dimension_numbers<[1], [0], [0], [1], [0, 0, 1, 1], [], []>} : vector<4x64xf32>, vector<64x256xf32>, vector<4x256xf32> -> vector<4x256xf32>
    %178 = arith.addf %173, %177 : vector<4x256xf32>
    %179 = vector.extract_strided_slice %162 {offsets = [12, 0], sizes = [4, 64], strides = [1, 1]} : vector<16x64xf32> to vector<4x64xf32>
    %c3_148 = arith.constant 3 : index
    %c0_149 = arith.constant 0 : index
    %c0_150 = arith.constant 0 : index
    %180 = vector.load %arg15[%c3_148, %c0_149, %c0_150] : memref<4x64x256xf32, #tpu.memory_space<vmem>>, vector<1x64x256xf32>
    %181 = vector.shape_cast %180 : vector<1x64x256xf32> to vector<64x256xf32>
    %cst_151 = arith.constant dense<0.000000e+00> : vector<4x256xf32>
    %182 = tpu.matmul %179, %181, %cst_151 {dimension_numbers = #tpu.dot_dimension_numbers<[1], [0], [0], [1], [0, 0, 1, 1], [], []>} : vector<4x64xf32>, vector<64x256xf32>, vector<4x256xf32> -> vector<4x256xf32>
    %183 = arith.addf %178, %182 : vector<4x256xf32>
    %cst_152 = arith.constant 0.000000e+00 : f32
    %184 = vector.broadcast %cst_152 : f32 to vector<4x256xf32>
    %185 = arith.subf %184, %183 : vector<4x256xf32>
    %186 = math.exp %185 : vector<4x256xf32>
    %cst_153 = arith.constant 1.000000e+00 : f32
    %187 = vector.broadcast %cst_153 : f32 to vector<4x256xf32>
    %188 = arith.addf %187, %186 : vector<4x256xf32>
    %189 = tpu.reciprocal %188 {approx = true} : vector<4x256xf32> -> vector<4x256xf32>
    %c0_154 = arith.constant 0 : index
    %c0_155 = arith.constant 0 : index
    %c0_156 = arith.constant 0 : index
    %190 = vector.load %arg16[%c0_154, %c0_155, %c0_156] : memref<1x4x256xf32, #tpu.memory_space<vmem>>, vector<1x4x256xf32>
    %191 = vector.shape_cast %190 : vector<1x4x256xf32> to vector<4x256xf32>
    %192 = vector.shape_cast %189 : vector<4x256xf32> to vector<1x4x256xf32>
    tpu.vector_store %arg16[%c0_154, %c0_155, %c0_156], %192 {strides = array<i32>} : memref<1x4x256xf32, #tpu.memory_space<vmem>>, vector<1x4x256xf32>,
    return
  }
  func.func @transform_0(%arg0: i32) -> (i32, i32, i32) {
    %c0_i32 = arith.constant 0 : i32
    %c0_i32_0 = arith.constant 0 : i32
    %c0_i32_1 = arith.constant 0 : i32
    return %arg0, %c0_i32, %c0_i32_0 : i32, i32, i32
  }
  func.func @transform_1(%arg0: i32) -> (i32, i32) {
    %c0_i32 = arith.constant 0 : i32
    %c0_i32_0 = arith.constant 0 : i32
    %c0_i32_1 = arith.constant 0 : i32
    return %c0_i32, %c0_i32_0 : i32, i32
  }
  func.func @transform_2(%arg0: i32) -> (i32, i32) {
    %c0_i32 = arith.constant 0 : i32
    %c0_i32_0 = arith.constant 0 : i32
    %c0_i32_1 = arith.constant 0 : i32
    return %c0_i32, %c0_i32_0 : i32, i32
  }
  func.func @transform_3(%arg0: i32) -> (i32, i32) {
    %c0_i32 = arith.constant 0 : i32
    %c0_i32_0 = arith.constant 0 : i32
    %c0_i32_1 = arith.constant 0 : i32
    return %c0_i32, %c0_i32_0 : i32, i32
  }
  func.func @transform_4(%arg0: i32) -> (i32, i32) {
    %c0_i32 = arith.constant 0 : i32
    %c0_i32_0 = arith.constant 0 : i32
    %c0_i32_1 = arith.constant 0 : i32
    return %c0_i32, %c0_i32_0 : i32, i32
  }
  func.func @transform_5(%arg0: i32) -> (i32, i32) {
    %c0_i32 = arith.constant 0 : i32
    %c0_i32_0 = arith.constant 0 : i32
    %c0_i32_1 = arith.constant 0 : i32
    return %c0_i32, %c0_i32_0 : i32, i32
  }
  func.func @transform_6(%arg0: i32) -> (i32, i32) {
    %c0_i32 = arith.constant 0 : i32
    %c0_i32_0 = arith.constant 0 : i32
    %c0_i32_1 = arith.constant 0 : i32
    return %c0_i32, %c0_i32_0 : i32, i32
  }
  func.func @transform_7(%arg0: i32) -> (i32, i32) {
    %c0_i32 = arith.constant 0 : i32
    %c0_i32_0 = arith.constant 0 : i32
    %c0_i32_1 = arith.constant 0 : i32
    return %c0_i32, %c0_i32_0 : i32, i32
  }
  func.func @transform_8(%arg0: i32) -> (i32, i32) {
    %c0_i32 = arith.constant 0 : i32
    %c0_i32_0 = arith.constant 0 : i32
    %c0_i32_1 = arith.constant 0 : i32
    return %c0_i32, %c0_i32_0 : i32, i32
  }
  func.func @transform_9(%arg0: i32) -> (i32, i32, i32) {
    %c0_i32 = arith.constant 0 : i32
    %c0_i32_0 = arith.constant 0 : i32
    %c0_i32_1 = arith.constant 0 : i32
    %c0_i32_2 = arith.constant 0 : i32
    return %c0_i32, %c0_i32_0, %c0_i32_1 : i32, i32, i32
  }
  func.func @transform_10(%arg0: i32) -> (i32, i32, i32) {
    %c0_i32 = arith.constant 0 : i32
    %c0_i32_0 = arith.constant 0 : i32
    %c0_i32_1 = arith.constant 0 : i32
    %c0_i32_2 = arith.constant 0 : i32
    return %c0_i32, %c0_i32_0, %c0_i32_1 : i32, i32, i32
  }
  func.func @transform_11(%arg0: i32) -> (i32, i32, i32) {
    %c0_i32 = arith.constant 0 : i32
    %c0_i32_0 = arith.constant 0 : i32
    %c0_i32_1 = arith.constant 0 : i32
    %c0_i32_2 = arith.constant 0 : i32
    return %c0_i32, %c0_i32_0, %c0_i32_1 : i32, i32, i32
  }
  func.func @transform_12(%arg0: i32) -> (i32, i32, i32) {
    %c0_i32 = arith.constant 0 : i32
    %c0_i32_0 = arith.constant 0 : i32
    %c0_i32_1 = arith.constant 0 : i32
    %c0_i32_2 = arith.constant 0 : i32
    return %c0_i32, %c0_i32_0, %c0_i32_1 : i32, i32, i32
  }
  func.func @transform_13(%arg0: i32) -> (i32, i32, i32) {
    %c0_i32 = arith.constant 0 : i32
    %c0_i32_0 = arith.constant 0 : i32
    %c0_i32_1 = arith.constant 0 : i32
    %c0_i32_2 = arith.constant 0 : i32
    return %c0_i32, %c0_i32_0, %c0_i32_1 : i32, i32, i32
  }
  func.func @transform_14(%arg0: i32) -> (i32, i32, i32) {
    %c0_i32 = arith.constant 0 : i32
    %c0_i32_0 = arith.constant 0 : i32
    %c0_i32_1 = arith.constant 0 : i32
    %c0_i32_2 = arith.constant 0 : i32
    return %c0_i32, %c0_i32_0, %c0_i32_1 : i32, i32, i32
  }
  func.func @transform_15(%arg0: i32) -> (i32, i32, i32) {
    %c0_i32 = arith.constant 0 : i32
    %c0_i32_0 = arith.constant 0 : i32
    %c0_i32_1 = arith.constant 0 : i32
    return %arg0, %c0_i32, %c0_i32_0 : i32, i32, i32
  }
}

</mosaic_0001>

<bundles_post_ra>
// kernel: conv_autoencoder_forward.1
= control target key start
LH: loop header
LB: loop body
LE: loop exit
PB: predicated region body
PF: predicated region fallthrough
CT: control target
= control target key end

     0   :  { %s4793_s0 = inlined_call_operand.vmem [shape: f32[2,4,256], index: 0, kind: input, shape index: {}]   ;;  %s4794_s1 = inlined_call_operand.vmem [shape: f32[144,4], index: 1, kind: input, shape index: {}]   ;;  %s4795_s2 = inlined_call_operand.vmem [shape: f32[16,1], index: 2, kind: input, shape index: {}]   ;;  %s4796_s3 = inlined_call_operand.vmem [shape: f32[36,16], index: 3, kind: input, shape index: {}]   ;;  %s4797_s4 = inlined_call_operand.vmem [shape: f32[4,1], index: 4, kind: input, shape index: {}]   ;;  %s4798_s5 = inlined_call_operand.vmem [shape: f32[64,4], index: 5, kind: input, shape index: {}]   ;;  %s4799_s6 = inlined_call_operand.vmem [shape: f32[16,1], index: 6, kind: input, shape index: {}]   ;;  %s4800_s7 = inlined_call_operand.vmem [shape: f32[16,16], index: 7, kind: input, shape index: {}]   ;;  %s4801_s8 = inlined_call_operand.vmem [shape: f32[4,1], index: 8, kind: input, shape index: {}]   ;;  %s4802_s9 = inlined_call_operand.hbm [shape: f32[9,256,256], index: 9, kind: input, shape index: {}]   ;;  %s4803_s10 = inlined_call_operand.hbm [shape: f32[9,64,64], index: 10, kind: input, shape index: {}]   ;;  %s4804_s11 = inlined_call_operand.hbm [shape: f32[4,256,64], index: 11, kind: input, shape index: {}]   ;;  %s4805_s12 = inlined_call_operand.hbm [shape: f32[4,64,16], index: 12, kind: input, shape index: {}]   ;;  %s4806_s13 = inlined_call_operand.hbm [shape: f32[4,16,64], index: 13, kind: input, shape index: {}]   ;;  %s4807_s14 = inlined_call_operand.hbm [shape: f32[4,64,256], index: 14, kind: input, shape index: {}]   ;;  %s4808_s15 = inlined_call_operand.vmem [shape: f32[2,4,256], index: 15, kind: output, shape index: {}]  }
   0x1   :  { %4811 = sst [smem:[#allocation17_spill]] %s4800_s7 }
   0x2   :  { %4812 = sst [smem:[#allocation18_spill]] %s4802_s9 }
   0x3   :  { %4813 = sst [smem:[#allocation19_spill]] %s4803_s10 }
   0x4   :  { %4814 = sst [smem:[#allocation20_spill]] %s4805_s12 }
   0x5   :  { %4815 = sst [smem:[#allocation21_spill]] %s4808_s15 }
   0x6   :  { %20 = vsyncpa [#allocation3], 0 }
   0x7   :  { %21 = vsyncpa [#allocation5], 0 }
   0x8   :  { %22 = vsyncpa [#allocation8], 0 }
   0x9   :  { %23 = vsyncpa [#allocation11], 0  ;;  %s4211_s18 = smov 0  }
   0xa LB: > { %4816 = sst [smem:[#allocation16_spill]] %s4118_s18  ;;  %s4220_s22 = sadd.s32 4294967295, %s4118_s18   ;;  %s4118_s18 = sphi %s4211_s18, %s29_s18  }
   0xb   : > { %s4817_s10 = sld [smem:[#allocation19_spill]]  ;;  %p3725_p0 = scmp.ge.s32.totalorder %s4118_s18, 1 }
   0xc   : > { %p380_p1 = scmp.lt.s32.totalorder %s4118_s18, 3  ;;  %p3874_p2 = scmp.eq.s32.totalorder %s4220_s22, 0 }
   0xd   : > { %s4120_s24 = smov [#allocation4]   ;;  %s4819_s12 = sld [smem:[#allocation20_spill]] }
   0xe   : > { %p4225_p3 = pnand %p3725_p0, %p380_p1  ;;  %s431_s25 = sshll.u32 %s4120_s24, 4  ;;  %s432_s25 = int_to_ptr.vmem [resolvable:$true] %s431_s25 }
   0xf   : > { %s4121_s30 = smov [#allocation7]   ;;  %s4821_s9 = sld [smem:[#allocation18_spill]] }
  0x10   : > { %p3855_p4 = pneg %p4225_p3  ;;  %s459_s16 = sshll.u32 %s4121_s30, 4  ;;  %s460_s16 = int_to_ptr.vmem [resolvable:$true] %s459_s16 }
  0x11   : > { %s429_s21 = sshll.u32 %s4817_s10, 4  ;;  %s4122_s24 = smov 128   ;;  %s430_s21 = int_to_ptr.hbm [resolvable:$true] %s429_s21 }
  0x12   : > { %p4236_p5 = pnand %p3874_p2, %p3855_p4  ;;  %s4123_s10 = smov 8  }
  0x13   : > { %s457_s28 = sshll.u32 %s4819_s12, 4  ;;  %s4124_s26 = smov [#allocation2]   ;;  %s458_s28 = int_to_ptr.hbm [resolvable:$true] %s457_s28 }
  0x14   : > { %3861 = dma.hbm_to_vmem [thread:$0]  (!%p4236_p5), %s430_s21, 9216, %s432_s25, [#allocation5], %s4122_s24, %s4122_s24, %s4123_s10  }
  0x15   : > { %s415_s20 = sshll.u32 %s4821_s9, 4  ;;  %s417_s27 = sshll.u32 %s4124_s26, 4  ;;  %s416_s20 = int_to_ptr.hbm [resolvable:$true] %s415_s20  ;;  %s418_s27 = int_to_ptr.vmem [resolvable:$true] %s417_s27 }
  0x16   : > { %3867 = dma.hbm_to_vmem [thread:$0]  (!%p4236_p5), %s458_s28, 4096, %s460_s16, [#allocation8], %s4122_s24, %s4122_s24, %s4123_s10  }
  0x17   : > { %s4125_s12 = smov 256   ;;  %s4126_s18 = smov 16  }
  0x18   : > { %3858 = dma.hbm_to_vmem [thread:$0]  (!%p4236_p5), %s416_s20, 73728, %s418_s27, [#allocation3], %s4125_s12, %s4125_s12, %s4126_s18  }
  0x19   : > { %s443_s19 = sshll.u32 %s4804_s11, 4  ;;  %s4127_s9 = smov [#allocation6]   ;;  %s444_s19 = int_to_ptr.hbm [resolvable:$true] %s443_s19 }
  0x1a   : > { %s445_s15 = sshll.u32 %s4127_s9, 4  ;;  %s471_s28 = sshll.u32 %s4806_s13, 4  ;;  %s446_s15 = int_to_ptr.vmem [resolvable:$true] %s445_s15  ;;  %s472_s28 = int_to_ptr.hbm [resolvable:$true] %s471_s28 }
  0x1b   : > { %3864 = dma.hbm_to_vmem [thread:$0]  (!%p4236_p5), %s444_s19, 16384, %s446_s15, [#allocation5], %s4122_s24, %s4122_s24, %s4123_s10  }
  0x1c   : > { %s4128_s16 = smov [#allocation9]   ;;  %s485_s27 = sshll.u32 %s4807_s14, 4  ;;  %s486_s27 = int_to_ptr.hbm [resolvable:$true] %s485_s27 }
  0x1d   : > { %s473_s26 = sshll.u32 %s4128_s16, 4  ;;  %s4129_s30 = smov [#allocation10]   ;;  %s474_s26 = int_to_ptr.vmem [resolvable:$true] %s473_s26 }
  0x1e   : > { %3870 = dma.hbm_to_vmem [thread:$0]  (!%p4236_p5), %s472_s28, 1024, %s474_s26, [#allocation8], %s4122_s24, %s4122_s24, %s4123_s10  }
  0x1f   : > { %s487_s9 = sshll.u32 %s4129_s30, 4  ;;  %511 = sbr.rel (%p4225_p3) target bundleno = 1847 (0x737), region = 80  ;;  %s488_s9 = int_to_ptr.vmem [resolvable:$true] %s487_s9 }
  0x20   : > { %3873 = dma.hbm_to_vmem [thread:$0]  (!%p4236_p5), %s486_s27, 8192, %s488_s9, [#allocation11], %s4125_s12, %s4125_s12, %s4126_s18  }
  0x24   : > { %4101 = dma.done.wait (%p3874_p2), [#allocation3], 73728  }
  0x25   : > { %4103 = vsyncadd (%p3874_p2), [#allocation3], 4294893568 }
  0x26   : > { %4105 = dma.done.wait (%p3874_p2), [#allocation5], 25600  }
  0x27   : > { %4107 = vsyncadd (%p3874_p2), [#allocation5], 4294941696 }
  0x28   : > { %4109 = dma.done.wait (%p3874_p2), [#allocation8], 5120  }
  0x29   : > { %4111 = vsyncadd (%p3874_p2), [#allocation8], 4294962176 }
  0x2a   : > { %4113 = dma.done.wait (%p3874_p2), [#allocation11], 8192  }
  0x2b   : > { %4115 = vsyncadd (%p3874_p2), [#allocation11], 4294959104  ;;  %p585_p6 = scmp.lt.s32.totalorder %s4220_s22, 1  ;;  %vm694_vm0 = vcmask 1043456   ;;  %v595_v1 = vld [vmem:[%s4794_s1] sm:$0xff]  ;;  %vm639_vm1 = vcmask 31744  }
  0x2c   : > { %v596_v4 = vld [vmem:[%s4794_s1 + $0x8] sm:$0xff]  ;;  %v597_v5 = vld [vmem:[%s4794_s1 + $0x10] sm:$0xff]  ;;  %v598_v6 = vld [vmem:[%s4794_s1 + $0x18] sm:$0xff]  ;;  %vm2624_vm2 = vcmask 130048   ;;  %vm2680_vm3 = vcmask 523264   ;;  %s4822_s17 = sld [smem:[#allocation17_spill]] }
  0x2d   : > { %s4826_s22 = smov (!%p585_p6, %s4220_s22), 1  ;;  %v599_v7 = vld [vmem:[%s4794_s1 + $0x20] sm:$0xff]  ;;  %v871_v8 = vld [vmem:[#allocation2 + $0xf0] sm:$0xff]  ;;  %v869_v10 = vld [vmem:[#allocation2 + $0xe0] sm:$0xff]  ;;  %s4823_s16 = sld [smem:[#allocation21_spill]] }
  0x2e   : > { %s3829_s7 = sshll.u32 %s4826_s22, 3  ;;  %v903_v9 = vld [vmem:[#allocation2 + $0x1f0] sm:$0xff]  ;;  %v901_v11 = vld [vmem:[#allocation2 + $0x1e0] sm:$0xff]  ;;  %905 = vmatpush.msra.mxu2 %v871_v8  ;;  %v601_v25 = vld [vmem:[%s4794_s1 + $0x30] sm:$0xff] }
  0x2f   : > { %s589_s15 = scalar_lea.vmem %s4793_s0, %s3829_s7  ;;  %928 = vmatpush.msra.mxu3 %v903_v9  ;;  %v867_v12 = vld [vmem:[#allocation2 + $0xd0] sm:$0xff]  ;;  %v865_v14 = vld [vmem:[#allocation2 + $0xc0] sm:$0xff]  ;;  %v603_v55 = vld [vmem:[%s4794_s1 + $0x40] sm:$0xff] }
  0x30   : > { %v634_v0 = vld [vmem:[%s589_s15] sm:$0xff]  ;;  %v899_v13 = vld [vmem:[#allocation2 + $0x1d0] sm:$0xff]  ;;  %906 = vmatpush.msra.mxu2 %v869_v10  ;;  %v897_v15 = vld [vmem:[#allocation2 + $0x1c0] sm:$0xff] }
  0x31   : > { %636 = vst [vmem:[#allocation1] ss:$2 sm:$0xff] %v634_v0  ;;  %929 = vmatpush.msra.mxu3 %v901_v11  ;;  %v600_v16 = vld [vmem:[%s4794_s1 + $0x28] sm:$0xff]  ;;  %v863_v17 = vld [vmem:[#allocation2 + $0xb0] sm:$0xff]  ;;  %v872_v56 = vld [vmem:[#allocation2 + $0xf8] sm:$0xff] }
  0x32   : > { %907 = vmatpush.msra.mxu2 %v867_v12  ;;  %v895_v18 = vld [vmem:[#allocation2 + $0x1b0] sm:$0xff]  ;;  %v861_v19 = vld [vmem:[#allocation2 + $0xa0] sm:$0xff]  ;;  %v904_v57 = vld [vmem:[#allocation2 + $0x1f8] sm:$0xff] }
  0x33   : > { %930 = vmatpush.msra.mxu3 %v899_v13  ;;  %v893_v20 = vld [vmem:[#allocation2 + $0x1a0] sm:$0xff]  ;;  %v859_v21 = vld [vmem:[#allocation2 + $0x90] sm:$0xff]  ;;  %v870_v60 = vld [vmem:[#allocation2 + $0xe8] sm:$0xff]  ;;  %s594_s26 = scalar_lea.vmem %s4823_s16, %s3829_s7 }
  0x34   : > { %908 = vmatpush.msra.mxu2 %v865_v14  ;;  %v891_v22 = vld [vmem:[#allocation2 + $0x190] sm:$0xff]  ;;  %v857_v23 = vld [vmem:[#allocation2 + $0x80] sm:$0xff]  ;;  %v902_v61 = vld [vmem:[#allocation2 + $0x1e8] sm:$0xff] }
  0x35   : > { %931 = vmatpush.msra.mxu3 %v897_v15  ;;  %v889_v24 = vld [vmem:[#allocation2 + $0x180] sm:$0xff]  ;;  %v855_v26 = vld [vmem:[#allocation2 + $0x70] sm:$0xff]  ;;  %v868_v0 = vld [vmem:[#allocation2 + $0xd8] sm:$0xff] }
  0x36   : > { %909 = vmatpush.msra.mxu2 %v863_v17  ;;  %v887_v27 = vld [vmem:[#allocation2 + $0x170] sm:$0xff]  ;;  %v853_v28 = vld [vmem:[#allocation2 + $0x60] sm:$0xff]  ;;  %v896_v8 = vld [vmem:[#allocation2 + $0x1b8] sm:$0xff] }
  0x37   : > { %932 = vmatpush.msra.mxu3 %v895_v18  ;;  %v885_v29 = vld [vmem:[#allocation2 + $0x160] sm:$0xff]  ;;  %v1203_v30 = vld [vmem:[#allocation2 + $0x4f0] sm:$0xff]  ;;  %v862_v11 = vld [vmem:[#allocation2 + $0xa8] sm:$0xff] }
  0x38   : > { %v637_v2 = vld.sshfl [vmem:[#allocation1] sm:$0xff pattern:$0x75316420]  ;;  %v638_v3 = vld.sshfl [vmem:[#allocation1 + $0x8] sm:$0xff pattern:$0x75316420]  ;;  %910 = vmatpush.msra.mxu2 %v861_v19 }
  0x39   : > { %3744 = vmatpush.msk.msra.mxu0 %vm694_vm0, %v637_v2  ;;  %3763 = vmatpush.msk.msra.mxu1 %vm694_vm0, %v638_v3  ;;  %v1235_v31 = vld [vmem:[#allocation2 + $0x5f0] sm:$0xff]  ;;  %v1201_v34 = vld [vmem:[#allocation2 + $0x4e0] sm:$0xff]  ;;  %v894_v12 = vld [vmem:[#allocation2 + $0x1a8] sm:$0xff] }
  0x3a   : > { %3745 = vmatmul.msk.f32.vlgmr.msra.gmra.mxu0 %vm639_vm1, %v595_v1  ;;  %3764 = vmatmul.msk.f32.vlgmr.msra.gmra.mxu1 %vm639_vm1, %v595_v1  ;;  %v851_v32 = vld [vmem:[#allocation2 + $0x50] sm:$0xff]  ;;  %v849_v35 = vld [vmem:[#allocation2 + $0x40] sm:$0xff]  ;;  %v900_v1 = vld [vmem:[#allocation2 + $0x1d8] sm:$0xff] }
  0x3b   : > { %933 = vmatpush.msra.mxu3 %v893_v20  ;;  %911 = vmatpush.msra.mxu2 %v859_v21  ;;  %v883_v33 = vld [vmem:[#allocation2 + $0x150] sm:$0xff]  ;;  %v1233_v36 = vld [vmem:[#allocation2 + $0x5e0] sm:$0xff]  ;;  %v860_v15 = vld [vmem:[#allocation2 + $0x98] sm:$0xff] }
  0x3c   : > { %1237 = vmatpush.msrb.mxu0 %v1203_v30  ;;  %1260 = vmatpush.msrb.mxu1 %v1235_v31  ;;  %v881_v37 = vld [vmem:[#allocation2 + $0x140] sm:$0xff]  ;;  %v1199_v38 = vld [vmem:[#allocation2 + $0x4d0] sm:$0xff]  ;;  %v858_v19 = vld [vmem:[#allocation2 + $0x88] sm:$0xff] }
  0x3d   : > { %934 = vmatpush.msra.mxu3 %v891_v22  ;;  %912 = vmatpush.msra.mxu2 %v857_v23  ;;  %v1231_v39 = vld [vmem:[#allocation2 + $0x5d0] sm:$0xff]  ;;  %v845_v43 = vld [vmem:[#allocation2 + $0x20] sm:$0xff]  ;;  %v890_v20 = vld [vmem:[#allocation2 + $0x188] sm:$0xff] }
  0x3e   : > { %1238 = vmatpush.msrb.mxu0 %v1201_v34  ;;  %1261 = vmatpush.msrb.mxu1 %v1233_v36  ;;  %v602_v40 = vld [vmem:[%s4794_s1 + $0x38] sm:$0xff]  ;;  %v877_v44 = vld [vmem:[#allocation2 + $0x120] sm:$0xff]  ;;  %v605_v21 = vld [vmem:[%s4794_s1 + $0x50] sm:$0xff] }
  0x3f   : > { %935 = vmatpush.msra.mxu3 %v889_v24  ;;  %913 = vmatpush.msra.mxu2 %v855_v26  ;;  %v847_v41 = vld [vmem:[#allocation2 + $0x30] sm:$0xff]  ;;  %v1197_v45 = vld [vmem:[#allocation2 + $0x4c0] sm:$0xff]  ;;  %v856_v22 = vld [vmem:[#allocation2 + $0x78] sm:$0xff] }
  0x40   : > { %v879_v42 = vld [vmem:[#allocation2 + $0x130] sm:$0xff]  ;;  %1239 = vmatpush.msrb.mxu0 %v1199_v38  ;;  %1262 = vmatpush.msrb.mxu1 %v1231_v39  ;;  %v1229_v46 = vld [vmem:[#allocation2 + $0x5c0] sm:$0xff]  ;;  %v888_v23 = vld [vmem:[#allocation2 + $0x178] sm:$0xff] }
  0x41   : > { %936 = vmatpush.msra.mxu3 %v887_v27  ;;  %914 = vmatpush.msra.mxu2 %v853_v28  ;;  %v1195_v47 = vld [vmem:[#allocation2 + $0x4b0] sm:$0xff]  ;;  %v1193_v51 = vld [vmem:[#allocation2 + $0x4a0] sm:$0xff]  ;;  %v854_v26 = vld [vmem:[#allocation2 + $0x68] sm:$0xff] }
  0x42   : > { %3746 = vmatmul.msk.f32.gmra.mxu0 %vm639_vm1, %v596_v4  ;;  %3765 = vmatmul.msk.f32.gmra.mxu1 %vm639_vm1, %v596_v4  ;;  %v1227_v48 = vld [vmem:[#allocation2 + $0x5b0] sm:$0xff]  ;;  %v1225_v52 = vld [vmem:[#allocation2 + $0x5a0] sm:$0xff]  ;;  %v866_v4 = vld [vmem:[#allocation2 + $0xc8] sm:$0xff] }
  0x43   : > { %937 = vmatpush.msra.mxu3 %v885_v29  ;;  %915 = vmatpush.msra.mxu2 %v851_v32  ;;  %v843_v49 = vld [vmem:[#allocation2 + $0x10] sm:$0xff]  ;;  %v841_v53 = vld [vmem:[#allocation2] sm:$0xff]  ;;  %v886_v27 = vld [vmem:[#allocation2 + $0x168] sm:$0xff] }
  0x44   : > { %v875_v50 = vld [vmem:[#allocation2 + $0x110] sm:$0xff]  ;;  %1240 = vmatpush.msrb.mxu0 %v1197_v45  ;;  %1263 = vmatpush.msrb.mxu1 %v1229_v46  ;;  %v873_v54 = vld [vmem:[#allocation2 + $0x100] sm:$0xff]  ;;  %v852_v30 = vld [vmem:[#allocation2 + $0x58] sm:$0xff] }
  0x45   : > { %938 = vmatpush.msra.mxu3 %v883_v33  ;;  %916 = vmatpush.msra.mxu2 %v849_v35  ;;  %v1191_v58 = vld [vmem:[#allocation2 + $0x490] sm:$0xff]  ;;  %v1189_v62 = vld [vmem:[#allocation2 + $0x480] sm:$0xff]  ;;  %v884_v31 = vld [vmem:[#allocation2 + $0x158] sm:$0xff] }
  0x46   : > { %1241 = vmatpush.msrb.mxu0 %v1195_v47  ;;  %1264 = vmatpush.msrb.mxu1 %v1227_v48  ;;  %v1223_v59 = vld [vmem:[#allocation2 + $0x590] sm:$0xff]  ;;  %v1221_v63 = vld [vmem:[#allocation2 + $0x580] sm:$0xff]  ;;  %v850_v34 = vld [vmem:[#allocation2 + $0x48] sm:$0xff] }
  0x47   : > { %939 = vmatpush.msra.mxu3 %v881_v37  ;;  %917 = vmatpush.msra.mxu2 %v847_v41  ;;  %v1187_v2 = vld [vmem:[#allocation2 + $0x470] sm:$0xff]  ;;  %v1185_v9 = vld [vmem:[#allocation2 + $0x460] sm:$0xff]  ;;  %v882_v35 = vld [vmem:[#allocation2 + $0x148] sm:$0xff] }
  0x48   : > { %1242 = vmatpush.msrb.mxu0 %v1193_v51  ;;  %1265 = vmatpush.msrb.mxu1 %v1225_v52  ;;  %v1219_v3 = vld [vmem:[#allocation2 + $0x570] sm:$0xff]  ;;  %v1217_v10 = vld [vmem:[#allocation2 + $0x560] sm:$0xff]  ;;  %v848_v37 = vld [vmem:[#allocation2 + $0x38] sm:$0xff] }
  0x49   : > { %940 = vmatpush.msra.mxu3 %v879_v42  ;;  %918 = vmatpush.msra.mxu2 %v845_v43  ;;  %v1183_v13 = vld [vmem:[#allocation2 + $0x450] sm:$0xff]  ;;  %v1181_v17 = vld [vmem:[#allocation2 + $0x440] sm:$0xff]  ;;  %v880_v38 = vld [vmem:[#allocation2 + $0x138] sm:$0xff] }
  0x4a   : > { %3747 = vmatmul.msk.f32.gmra.mxu0 %vm639_vm1, %v597_v5  ;;  %3766 = vmatmul.msk.f32.gmra.mxu1 %vm639_vm1, %v597_v5  ;;  %v898_v5 = vld [vmem:[#allocation2 + $0x1c8] sm:$0xff]  ;;  %v1215_v14 = vld [vmem:[#allocation2 + $0x550] sm:$0xff]  ;;  %v1213_v18 = vld [vmem:[#allocation2 + $0x540] sm:$0xff] }
  0x4b   : > { %941 = vmatpush.msra.mxu3 %v877_v44  ;;  %919 = vmatpush.msra.mxu2 %v843_v49  ;;  %v1179_v24 = vld [vmem:[#allocation2 + $0x430] sm:$0xff]  ;;  %v1177_v28 = vld [vmem:[#allocation2 + $0x420] sm:$0xff]  ;;  %v846_v39 = vld [vmem:[#allocation2 + $0x28] sm:$0xff] }
  0x4c   : > { %1243 = vmatpush.msrb.mxu0 %v1191_v58  ;;  %1266 = vmatpush.msrb.mxu1 %v1223_v59  ;;  %v1209_v29 = vld [vmem:[#allocation2 + $0x520] sm:$0xff]  ;;  %v1175_v32 = vld [vmem:[#allocation2 + $0x410] sm:$0xff]  ;;  %v844_v41 = vld [vmem:[#allocation2 + $0x18] sm:$0xff] }
  0x4d   : > { %942 = vmatpush.msra.mxu3 %v875_v50  ;;  %920 = vmatpush.msra.mxu2 %v841_v53  ;;  %v1207_v33 = vld [vmem:[#allocation2 + $0x510] sm:$0xff]  ;;  %v876_v42 = vld [vmem:[#allocation2 + $0x118] sm:$0xff]  ;;  %v842_v43 = vld [vmem:[#allocation2 + $0x8] sm:$0xff] }
  0x4e   : > { %1244 = vmatpush.msrb.mxu0 %v1189_v62  ;;  %1267 = vmatpush.msrb.mxu1 %v1221_v63  ;;  %v606_v36 = vld [vmem:[%s4794_s1 + $0x58] sm:$0xff]  ;;  %v874_v44 = vld [vmem:[#allocation2 + $0x108] sm:$0xff]  ;;  %v607_v45 = vld [vmem:[%s4794_s1 + $0x60] sm:$0xff] }
  0x4f   : > { %943 = vmatpush.msra.mxu3 %v873_v54  ;;  %951 = vmatpush.msrb.mxu2 %v872_v56  ;;  %v1173_v46 = vld [vmem:[#allocation2 + $0x400] sm:$0xff]  ;;  %v1364_v48 = vld [vmem:[#allocation2 + $0x6f0] sm:$0xff]  ;;  %v609_v63 = vld [vmem:[%s4794_s1 + $0x70] sm:$0xff] }
  0x50   : > { %1245 = vmatpush.msrb.mxu0 %v1187_v2  ;;  %1268 = vmatpush.msrb.mxu1 %v1219_v3  ;;  %v1205_v47 = vld [vmem:[#allocation2 + $0x500] sm:$0xff]  ;;  %v1396_v49 = vld [vmem:[#allocation2 + $0x7f0] sm:$0xff] }
  0x51   : > { %974 = vmatpush.msrb.mxu3 %v904_v57  ;;  %952 = vmatpush.msrb.mxu2 %v870_v60  ;;  %v1362_v50 = vld [vmem:[#allocation2 + $0x6e0] sm:$0xff]  ;;  %v1360_v52 = vld [vmem:[#allocation2 + $0x6d0] sm:$0xff] }
  0x52   : > { %3748 = vmatmul.msk.f32.gmra.mxu0 %vm639_vm1, %v598_v6  ;;  %3767 = vmatmul.msk.f32.gmra.mxu1 %vm639_vm1, %v598_v6  ;;  %v604_v6 = vld [vmem:[%s4794_s1 + $0x48] sm:$0xff]  ;;  %v1392_v53 = vld [vmem:[#allocation2 + $0x7d0] sm:$0xff] }
  0x53   : > { %975 = vmatpush.msrb.mxu3 %v902_v61  ;;  %953 = vmatpush.msrb.mxu2 %v868_v0  ;;  %v1394_v51 = vld [vmem:[#allocation2 + $0x7e0] sm:$0xff]  ;;  %v1356_v57 = vld [vmem:[#allocation2 + $0x6b0] sm:$0xff] }
  0x54   : > { %1246 = vmatpush.msrb.mxu0 %v1185_v9  ;;  %1269 = vmatpush.msrb.mxu1 %v1217_v10  ;;  %v608_v54 = vld [vmem:[%s4794_s1 + $0x68] sm:$0xff]  ;;  %v1388_v58 = vld [vmem:[#allocation2 + $0x7b0] sm:$0xff] }
  0x55   : > { %976 = vmatpush.msrb.mxu3 %v900_v1  ;;  %954 = vmatpush.msrb.mxu2 %v866_v4  ;;  %v1390_v56 = vld [vmem:[#allocation2 + $0x7c0] sm:$0xff]  ;;  %v1352_v61 = vld [vmem:[#allocation2 + $0x690] sm:$0xff]  ;;  %v613_v4 = vld [vmem:[%s4795_s2] sm:$0xff] }
  0x56   : > { %1247 = vmatpush.msrb.mxu0 %v1183_v13  ;;  %1270 = vmatpush.msrb.mxu1 %v1215_v14  ;;  %v1354_v59 = vld [vmem:[#allocation2 + $0x6a0] sm:$0xff]  ;;  %v1384_v62 = vld [vmem:[#allocation2 + $0x790] sm:$0xff] }
  0x57   : > { %977 = vmatpush.msrb.mxu3 %v898_v5  ;;  %v1386_v60 = vld [vmem:[#allocation2 + $0x7a0] sm:$0xff]  ;;  %v1348_v2 = vld [vmem:[#allocation2 + $0x670] sm:$0xff]  ;;  %v4130_v5 = vmov 0  }
  0x58   : > { %1248 = vmatpush.msrb.mxu0 %v1181_v17  ;;  %1271 = vmatpush.msrb.mxu1 %v1213_v18  ;;  %v1350_v0 = vld [vmem:[#allocation2 + $0x680] sm:$0xff]  ;;  %v1380_v3 = vld [vmem:[#allocation2 + $0x770] sm:$0xff] }
  0x59   : > { %978 = vmatpush.msrb.mxu3 %v896_v8  ;;  %v1382_v1 = vld [vmem:[#allocation2 + $0x780] sm:$0xff]  ;;  %3905 = vset.pattern.permute.xlu0 %v4130_v5  ;;  %v1344_v8 = vld [vmem:[#allocation2 + $0x650] sm:$0xff] }
  0x5a   : > { %3749 = vmatmul.msk.f32.gmra.mxu0 %vm639_vm1, %v599_v7  ;;  %3768 = vmatmul.msk.f32.gmra.mxu1 %vm639_vm1, %v599_v7  ;;  %v864_v7 = vld [vmem:[#allocation2 + $0xb8] sm:$0xff]  ;;  %v1376_v9 = vld [vmem:[#allocation2 + $0x750] sm:$0xff] }
  0x5b   : > { %955 = vmatpush.msrb.mxu2 %v864_v7  ;;  %979 = vmatpush.msrb.mxu3 %v894_v12  ;;  %v1378_v7 = vld [vmem:[#allocation2 + $0x760] sm:$0xff]  ;;  %v610_v10 = vld [vmem:[%s4794_s1 + $0x78] sm:$0xff] }
  0x5c   : > { %1249 = vmatpush.msrb.mxu0 %v1179_v24  ;;  %3906 = vset.pattern.permute.xlu1 %v4130_v5  ;;  %v1374_v12 = vld [vmem:[#allocation2 + $0x740] sm:$0xff]  ;;  %v1340_v13 = vld [vmem:[#allocation2 + $0x630] sm:$0xff] }
  0x5d   : > { %956 = vmatpush.msrb.mxu2 %v862_v11  ;;  %999 = vperm.xlu0 %3905, %v613_v4   ;;  %v1342_v11 = vld [vmem:[#allocation2 + $0x640] sm:$0xff]  ;;  %v1372_v14 = vld [vmem:[#allocation2 + $0x730] sm:$0xff] }
  0x5e   : > { %1250 = vmatpush.msrb.mxu0 %v1177_v28  ;;  %3907 = vset.pattern.permute.xlu2 %v4130_v5  ;;  %v1042_v17 = vld [vmem:[#allocation2 + $0x2f0] sm:$0xff]  ;;  %v1334_v28 = vld [vmem:[#allocation2 + $0x600] sm:$0xff] }
  0x5f   : > { %957 = vmatpush.msrb.mxu2 %v860_v15  ;;  %v1338_v15 = vld [vmem:[#allocation2 + $0x620] sm:$0xff]  ;;  %v1074_v18 = vld [vmem:[#allocation2 + $0x3f0] sm:$0xff] }
  0x60   : > { %1251 = vmatpush.msrb.mxu0 %v1175_v32  ;;  %v1336_v24 = vld [vmem:[#allocation2 + $0x610] sm:$0xff] }
  0x61   : > { %958 = vmatpush.msrb.mxu2 %v858_v19  ;;  %v1034_v32 = vld [vmem:[#allocation2 + $0x2b0] sm:$0xff] }
  0x62   : > { %3750 = vmatmul.msk.f32.gmra.mxu0 %vm639_vm1, %v600_v16  ;;  %3769 = vmatmul.msk.f32.gmra.mxu1 %vm639_vm1, %v600_v16  ;;  %v892_v16 = vld [vmem:[#allocation2 + $0x198] sm:$0xff]  ;;  %v1525_v4 = vld [vmem:[#allocation2 + $0x8f0] sm:$0xff] }
  0x63   : > { %980 = vmatpush.msrb.mxu3 %v892_v16  ;;  %959 = vmatpush.msrb.mxu2 %v856_v22  ;;  %v1370_v16 = vld [vmem:[#allocation2 + $0x720] sm:$0xff]  ;;  %v1557_v5 = vld [vmem:[#allocation2 + $0x9f0] sm:$0xff] }
  0x64   : > { %1252 = vmatpush.msrb.mxu0 %v1173_v46  ;;  %v1040_v22 = vld [vmem:[#allocation2 + $0x2e0] sm:$0xff] }
  0x65   : > { %981 = vmatpush.msrb.mxu3 %v890_v20  ;;  %960 = vmatpush.msrb.mxu2 %v854_v26  ;;  %v1038_v26 = vld [vmem:[#allocation2 + $0x2d0] sm:$0xff] }
  0x66   : > { %1398 = vmatpush.msra.mxu0 %v1364_v48  ;;  %v1024_v48 = vld [vmem:[#allocation2 + $0x260] sm:$0xff] }
  0x67   : > { %982 = vmatpush.msrb.mxu3 %v888_v23  ;;  %961 = vmatpush.msrb.mxu2 %v852_v30  ;;  %v1072_v23 = vld [vmem:[#allocation2 + $0x3e0] sm:$0xff] }
  0x68   : > { %1399 = vmatpush.msra.mxu0 %v1362_v50  ;;  %v1036_v30 = vld [vmem:[#allocation2 + $0x2c0] sm:$0xff]  ;;  %v1022_v50 = vld [vmem:[#allocation2 + $0x250] sm:$0xff] }
  0x69   : > { %983 = vmatpush.msrb.mxu3 %v886_v27  ;;  %962 = vmatpush.msrb.mxu2 %v850_v34  ;;  %v1070_v27 = vld [vmem:[#allocation2 + $0x3d0] sm:$0xff] }
  0x6a   : > { %3751 = vmatmul.msk.f32.gmra.mxu0 %vm639_vm1, %v601_v25  ;;  %3770 = vmatmul.msk.f32.gmra.mxu1 %vm639_vm1, %v601_v25  ;;  %v1211_v25 = vld [vmem:[#allocation2 + $0x530] sm:$0xff] }
  0x6b   : > { %1272 = vmatpush.msrb.mxu1 %v1211_v25  ;;  %984 = vmatpush.msrb.mxu3 %v884_v31  ;;  %v1368_v25 = vld [vmem:[#allocation2 + $0x710] sm:$0xff]  ;;  %v1068_v31 = vld [vmem:[#allocation2 + $0x3c0] sm:$0xff] }
  0x6c   : > { %963 = vmatpush.msrb.mxu2 %v848_v37  ;;  %1400 = vmatpush.msra.mxu0 %v1360_v52  ;;  %v1032_v37 = vld [vmem:[#allocation2 + $0x2a0] sm:$0xff] }
  0x6d   : > { %1273 = vmatpush.msrb.mxu1 %v1209_v29  ;;  %985 = vmatpush.msrb.mxu3 %v882_v35  ;;  %v1366_v29 = vld [vmem:[#allocation2 + $0x700] sm:$0xff] }
  0x6e   : > { %964 = vmatpush.msrb.mxu2 %v846_v39  ;;  %v1030_v39 = vld [vmem:[#allocation2 + $0x290] sm:$0xff]  ;;  %v1020_v52 = vld [vmem:[#allocation2 + $0x240] sm:$0xff] }
  0x6f   : > { %1274 = vmatpush.msrb.mxu1 %v1207_v33  ;;  %986 = vmatpush.msrb.mxu3 %v880_v38  ;;  %v1066_v33 = vld [vmem:[#allocation2 + $0x3b0] sm:$0xff]  ;;  %v1064_v38 = vld [vmem:[#allocation2 + $0x3a0] sm:$0xff] }
  0x70   : > { %965 = vmatpush.msrb.mxu2 %v844_v41  ;;  %v1028_v41 = vld [vmem:[#allocation2 + $0x280] sm:$0xff] }
  0x71   : > { %1275 = vmatpush.msrb.mxu1 %v1205_v47  ;;  %v614_v47 = vld [vmem:[%s4795_s2 + $0x8] sm:$0xff] }
  0x72   : > { %3752 = vmatmul.msk.f32.gmra.mxu0 %vm639_vm1, %v602_v40  ;;  %3771 = vmatmul.msk.f32.gmra.mxu1 %vm639_vm1, %v602_v40  ;;  %v878_v40 = vld [vmem:[#allocation2 + $0x128] sm:$0xff] }
  0x73   : > { %987 = vmatpush.msrb.mxu3 %v878_v40  ;;  %966 = vmatpush.msrb.mxu2 %v842_v43  ;;  %v1062_v40 = vld [vmem:[#allocation2 + $0x390] sm:$0xff] }
  0x74   : > { %1421 = vmatpush.msra.mxu1 %v1396_v49  ;;  %v1026_v43 = vld [vmem:[#allocation2 + $0x270] sm:$0xff]  ;;  %v1056_v49 = vld [vmem:[#allocation2 + $0x360] sm:$0xff]  ;;  %1004 = vperm.xlu0 %3905, %v614_v47  }
  0x75   : > { %988 = vmatpush.msrb.mxu3 %v876_v42  ;;  %v1060_v42 = vld [vmem:[#allocation2 + $0x380] sm:$0xff] }
  0x76   : > { %1422 = vmatpush.msra.mxu1 %v1394_v51  ;;  %v1054_v51 = vld [vmem:[#allocation2 + $0x350] sm:$0xff]  ;;  %v1539_v47 = vld [vmem:[#allocation2 + $0x960] sm:$0xff] }
  0x77   : > { %989 = vmatpush.msrb.mxu3 %v874_v44  ;;  %v1058_v44 = vld [vmem:[#allocation2 + $0x370] sm:$0xff] }
  0x78   : > { %1423 = vmatpush.msra.mxu1 %v1392_v53  ;;  %v1052_v53 = vld [vmem:[#allocation2 + $0x340] sm:$0xff] }
  0x7a   : > { %3753 = vmatmul.msk.f32.gmra.mxu0 %vm639_vm1, %v603_v55  ;;  %3772 = vmatmul.msk.f32.gmra.mxu1 %vm639_vm1, %v603_v55  ;;  %v1358_v55 = vld [vmem:[#allocation2 + $0x6c0] sm:$0xff] }
  0x7b   : > { %1401 = vmatpush.msra.mxu0 %v1358_v55  ;;  %1424 = vmatpush.msra.mxu1 %v1390_v56  ;;  %v1050_v55 = vld [vmem:[#allocation2 + $0x330] sm:$0xff] }
  0x7d   : > { %1402 = vmatpush.msra.mxu0 %v1356_v57  ;;  %1425 = vmatpush.msra.mxu1 %v1388_v58  ;;  %v1016_v58 = vld [vmem:[#allocation2 + $0x220] sm:$0xff] }
  0x7f   : > { %1403 = vmatpush.msra.mxu0 %v1354_v59  ;;  %1426 = vmatpush.msra.mxu1 %v1386_v60  ;;  %v1048_v59 = vld [vmem:[#allocation2 + $0x320] sm:$0xff]  ;;  %v1014_v60 = vld [vmem:[#allocation2 + $0x210] sm:$0xff] }
  0x81   : > { %1404 = vmatpush.msra.mxu0 %v1352_v61  ;;  %1427 = vmatpush.msra.mxu1 %v1384_v62  ;;  %v1046_v61 = vld [vmem:[#allocation2 + $0x310] sm:$0xff]  ;;  %v1012_v62 = vld [vmem:[#allocation2 + $0x200] sm:$0xff] }
  0x82   : > { %3754 = vmatmul.msk.f32.gmra.mxu0 %vm639_vm1, %v604_v6  ;;  %3773 = vmatmul.msk.f32.gmra.mxu1 %vm639_vm1, %v604_v6  ;;  %v1346_v6 = vld [vmem:[#allocation2 + $0x660] sm:$0xff] }
  0x83   : > { %1405 = vmatpush.msra.mxu0 %v1350_v0  ;;  %1428 = vmatpush.msra.mxu1 %v1382_v1  ;;  %v1043_v0 = vld [vmem:[#allocation2 + $0x2f8] sm:$0xff] }
  0x84   : > { %v1075_v1 = vld [vmem:[#allocation2 + $0x3f8] sm:$0xff] }
  0x85   : > { %1406 = vmatpush.msra.mxu0 %v1348_v2  ;;  %1429 = vmatpush.msra.mxu1 %v1380_v3 }
  0x87   : > { %1407 = vmatpush.msra.mxu0 %v1346_v6  ;;  %1430 = vmatpush.msra.mxu1 %v1378_v7  ;;  %v1041_v6 = vld [vmem:[#allocation2 + $0x2e8] sm:$0xff] }
  0x88   : > { %v1073_v7 = vld [vmem:[#allocation2 + $0x3e8] sm:$0xff] }
  0x89   : > { %1408 = vmatpush.msra.mxu0 %v1344_v8  ;;  %1431 = vmatpush.msra.mxu1 %v1376_v9  ;;  %v1523_v8 = vld [vmem:[#allocation2 + $0x8e0] sm:$0xff] }
  0x8a   : > { %3755 = vmatmul.msk.f32.gmra.mxu0 %vm639_vm1, %v605_v21  ;;  %3774 = vmatmul.msk.f32.gmra.mxu1 %vm639_vm1, %v605_v21  ;;  %v611_v21 = vld [vmem:[%s4794_s1 + $0x80] sm:$0xff]  ;;  %v1555_v9 = vld [vmem:[#allocation2 + $0x9e0] sm:$0xff] }
  0x8b   : > { %1409 = vmatpush.msra.mxu0 %v1342_v11  ;;  %1432 = vmatpush.msra.mxu1 %v1374_v12  ;;  %v1071_v11 = vld [vmem:[#allocation2 + $0x3d8] sm:$0xff]  ;;  %v1521_v12 = vld [vmem:[#allocation2 + $0x8d0] sm:$0xff] }
  0x8d   : > { %1410 = vmatpush.msra.mxu0 %v1340_v13  ;;  %1433 = vmatpush.msra.mxu1 %v1372_v14  ;;  %v1553_v13 = vld [vmem:[#allocation2 + $0x9d0] sm:$0xff]  ;;  %v1037_v14 = vld [vmem:[#allocation2 + $0x2c8] sm:$0xff] }
  0x8f   : > { %1411 = vmatpush.msra.mxu0 %v1338_v15  ;;  %1434 = vmatpush.msra.mxu1 %v1370_v16  ;;  %v1069_v15 = vld [vmem:[#allocation2 + $0x3c8] sm:$0xff]  ;;  %v1519_v16 = vld [vmem:[#allocation2 + $0x8c0] sm:$0xff] }
  0x91   : > { %1412 = vmatpush.msra.mxu0 %v1336_v24  ;;  %1435 = vmatpush.msra.mxu1 %v1368_v25  ;;  %v1033_v24 = vld [vmem:[#allocation2 + $0x2a8] sm:$0xff] }
  0x92   : > { %3756 = vmatmul.msk.f32.gmra.mxu0 %vm639_vm1, %v606_v36  ;;  %3775 = vmatmul.msk.f32.gmra.mxu1 %vm639_vm1, %v606_v36  ;;  %v612_v36 = vld [vmem:[%s4794_s1 + $0x88] sm:$0xff]  ;;  %v1065_v25 = vld [vmem:[#allocation2 + $0x3a8] sm:$0xff] }
  0x93   : > { %1413 = vmatpush.msra.mxu0 %v1334_v28  ;;  %1436 = vmatpush.msra.mxu1 %v1366_v29  ;;  %v1031_v28 = vld [vmem:[#allocation2 + $0x298] sm:$0xff] }
  0x94   : > { %v1063_v29 = vld [vmem:[#allocation2 + $0x398] sm:$0xff] }
  0x9a   : > { %3757 = vmatmul.msk.f32.gmra.mxu0 %vm639_vm1, %v607_v45  ;;  %3776 = vmatmul.msk.f32.gmra.mxu1 %vm639_vm1, %v607_v45 }
  0xa2   : > { %3758 = vmatmul.msk.f32.gmra.mxu0 %vm639_vm1, %v608_v54  ;;  %3777 = vmatmul.msk.f32.gmra.mxu1 %vm639_vm1, %v608_v54  ;;  %v1018_v54 = vld [vmem:[#allocation2 + $0x230] sm:$0xff] }
  0xaa   : > { %3759 = vmatmul.msk.f32.gmra.mxu0 %vm639_vm1, %v609_v63  ;;  %3778 = vmatmul.msk.f32.gmra.mxu1 %vm639_vm1, %v609_v63  ;;  %v1044_v63 = vld [vmem:[#allocation2 + $0x300] sm:$0xff] }
  0xb2   : > { %3760 = vmatmul.msk.f32.gmra.mxu0 %vm639_vm1, %v610_v10  ;;  %3779 = vmatmul.msk.f32.gmra.mxu1 %vm639_vm1, %v610_v10  ;;  %v1039_v10 = vld [vmem:[#allocation2 + $0x2d8] sm:$0xff] }
  0xb7   : > { %v716_v19 = vpop.f32.mrf.mxu0  ;;  %v787_v20 = vpop.f32.mrf.mxu1 }
  0xb8   : > { %921 = vmatmul.f32.vlgmr.msra.gmra.mxu2 %v716_v19  ;;  %944 = vmatmul.f32.vlgmr.msra.gmra.mxu3 %v787_v20 }
  0xb9   : > { %1076 = vmatpush.msra.mxu2 %v1042_v17  ;;  %1099 = vmatpush.msra.mxu3 %v1074_v18  ;;  %v1551_v17 = vld [vmem:[#allocation2 + $0x9c0] sm:$0xff] }
  0xba   : > { %3761 = vmatmul.msk.f32.gmra.mxu0 %vm639_vm1, %v611_v21  ;;  %3780 = vmatmul.msk.f32.gmra.mxu1 %vm639_vm1, %v611_v21  ;;  %v1067_v21 = vld [vmem:[#allocation2 + $0x3b8] sm:$0xff] }
  0xbb   : > { %1077 = vmatpush.msra.mxu2 %v1040_v22  ;;  %1100 = vmatpush.msra.mxu3 %v1072_v23  ;;  %v1517_v22 = vld [vmem:[#allocation2 + $0x8b0] sm:$0xff] }
  0xbc   : > { %v1549_v23 = vld [vmem:[#allocation2 + $0x9b0] sm:$0xff] }
  0xbd   : > { %1078 = vmatpush.msra.mxu2 %v1038_v26  ;;  %1101 = vmatpush.msra.mxu3 %v1070_v27  ;;  %v1515_v26 = vld [vmem:[#allocation2 + $0x8a0] sm:$0xff] }
  0xbe   : > { %v1547_v27 = vld [vmem:[#allocation2 + $0x9a0] sm:$0xff] }
  0xbf   : > { %1079 = vmatpush.msra.mxu2 %v1036_v30  ;;  %1102 = vmatpush.msra.mxu3 %v1068_v31  ;;  %v719_v34 = vpop.f32.mrf.mxu0  ;;  %v790_v35 = vpop.f32.mrf.mxu1  ;;  %v1513_v30 = vld [vmem:[#allocation2 + $0x890] sm:$0xff] }
  0xc0   : > { %924 = vmatmul.f32.gmra.mxu2 %v719_v34  ;;  %947 = vmatmul.f32.gmra.mxu3 %v790_v35  ;;  %v1545_v31 = vld [vmem:[#allocation2 + $0x990] sm:$0xff] }
  0xc1   : > { %1080 = vmatpush.msra.mxu2 %v1034_v32  ;;  %1103 = vmatpush.msra.mxu3 %v1066_v33  ;;  %v1029_v32 = vld [vmem:[#allocation2 + $0x288] sm:$0xff] }
  0xc2   : > { %3762 = vmatmul.msk.f32.gmra.mxu0 %vm639_vm1, %v612_v36  ;;  %3781 = vmatmul.msk.f32.gmra.mxu1 %vm639_vm1, %v612_v36  ;;  %v1061_v33 = vld [vmem:[#allocation2 + $0x388] sm:$0xff] }
  0xc3   : > { %1081 = vmatpush.msra.mxu2 %v1032_v37  ;;  %1104 = vmatpush.msra.mxu3 %v1064_v38  ;;  %v1027_v38 = vld [vmem:[#allocation2 + $0x278] sm:$0xff] }
  0xc5   : > { %1082 = vmatpush.msra.mxu2 %v1030_v39  ;;  %1105 = vmatpush.msra.mxu3 %v1062_v40  ;;  %v1059_v39 = vld [vmem:[#allocation2 + $0x378] sm:$0xff]  ;;  %v1509_v40 = vld [vmem:[#allocation2 + $0x870] sm:$0xff] }
  0xc7   : > { %1083 = vmatpush.msra.mxu2 %v1028_v41  ;;  %1106 = vmatpush.msra.mxu3 %v1060_v42  ;;  %v4387_v45 = vpop.f32.mrf.mxu0  ;;  %v4389_v46 = vpop.f32.mrf.mxu1  ;;  %v1541_v41 = vld [vmem:[#allocation2 + $0x970] sm:$0xff]  ;;  %v1025_v42 = vld [vmem:[#allocation2 + $0x268] sm:$0xff] }
  0xc8   : > { %967 = vmatmul.f32.vlgmr.msrb.gmra.mxu2 %v716_v19  ;;  %990 = vmatmul.f32.vlgmr.msrb.gmra.mxu3 %v787_v20  ;;  %v1035_v20 = vld [vmem:[#allocation2 + $0x2b8] sm:$0xff] }
  0xc9   : > { %1084 = vmatpush.msra.mxu2 %v1026_v43  ;;  %1107 = vmatpush.msra.mxu3 %v1058_v44  ;;  %v1057_v43 = vld [vmem:[#allocation2 + $0x368] sm:$0xff]  ;;  %v1507_v44 = vld [vmem:[#allocation2 + $0x860] sm:$0xff] }
  0xcb   : > { %1085 = vmatpush.msra.mxu2 %v1024_v48  ;;  %1108 = vmatpush.msra.mxu3 %v1056_v49  ;;  %v1023_v48 = vld [vmem:[#allocation2 + $0x258] sm:$0xff] }
  0xcc   : > { %v1055_v49 = vld [vmem:[#allocation2 + $0x358] sm:$0xff] }
  0xcd   : > { %1086 = vmatpush.msra.mxu2 %v1022_v50  ;;  %1109 = vmatpush.msra.mxu3 %v1054_v51  ;;  %v1505_v50 = vld [vmem:[#allocation2 + $0x850] sm:$0xff] }
  0xce   : > { %v1537_v51 = vld [vmem:[#allocation2 + $0x950] sm:$0xff] }
  0xcf   : > { %1087 = vmatpush.msra.mxu2 %v1020_v52  ;;  %1110 = vmatpush.msra.mxu3 %v1052_v53  ;;  %v4394_v56 = vpop.f32.mrf.mxu0  ;;  %v4396_v57 = vpop.f32.mrf.mxu1  ;;  %v1021_v52 = vld [vmem:[#allocation2 + $0x248] sm:$0xff] }
  0xd0   : > { %970 = vmatmul.f32.gmra.mxu2 %v719_v34  ;;  %993 = vmatmul.f32.gmra.mxu3 %v790_v35  ;;  %v1511_v34 = vld [vmem:[#allocation2 + $0x880] sm:$0xff]  ;;  %v1053_v53 = vld [vmem:[#allocation2 + $0x348] sm:$0xff] }
  0xd1   : > { %1088 = vmatpush.msra.mxu2 %v1018_v54  ;;  %1111 = vmatpush.msra.mxu3 %v1050_v55  ;;  %v1543_v35 = vld [vmem:[#allocation2 + $0x980] sm:$0xff] }
  0xd2   : > { %v1503_v54 = vld [vmem:[#allocation2 + $0x840] sm:$0xff] }
  0xd3   : > { %1089 = vmatpush.msra.mxu2 %v1016_v58  ;;  %1112 = vmatpush.msra.mxu3 %v1048_v59  ;;  %v1535_v55 = vld [vmem:[#allocation2 + $0x940] sm:$0xff]  ;;  %v1019_v58 = vld [vmem:[#allocation2 + $0x238] sm:$0xff] }
  0xd4   : > { %v1051_v59 = vld [vmem:[#allocation2 + $0x338] sm:$0xff] }
  0xd5   : > { %1090 = vmatpush.msra.mxu2 %v1014_v60  ;;  %1113 = vmatpush.msra.mxu3 %v1046_v61 }
  0xd7   : > { %1091 = vmatpush.msra.mxu2 %v1012_v62  ;;  %1114 = vmatpush.msra.mxu3 %v1044_v63  ;;  %v4398_v2 = vpop.f32.mrf.mxu0  ;;  %v4400_v3 = vpop.f32.mrf.mxu1  ;;  %v1501_v62 = vld [vmem:[#allocation2 + $0x830] sm:$0xff] }
  0xd8   : > { %1092 = vmatmul.f32.vlgmr.msra.gmra.mxu2 %v4387_v45  ;;  %1115 = vmatmul.f32.vlgmr.msra.gmra.mxu3 %v4389_v46  ;;  %v1533_v63 = vld [vmem:[#allocation2 + $0x930] sm:$0xff] }
  0xd9   : > { %1122 = vmatpush.msrb.mxu2 %v1043_v0  ;;  %1145 = vmatpush.msrb.mxu3 %v1075_v1  ;;  %v1017_v0 = vld [vmem:[#allocation2 + $0x228] sm:$0xff] }
  0xda   : > { %1253 = vmatmul.f32.vlgmr.msrb.gmra.mxu0 %v4398_v2  ;;  %1276 = vmatmul.f32.vlgmr.msrb.gmra.mxu1 %v4400_v3  ;;  %v1049_v1 = vld [vmem:[#allocation2 + $0x328] sm:$0xff] }
  0xdb   : > { %1559 = vmatpush.msrb.mxu0 %v1525_v4  ;;  %1582 = vmatpush.msrb.mxu1 %v1557_v5  ;;  %v1499_v4 = vld [vmem:[#allocation2 + $0x820] sm:$0xff] }
  0xdc   : > { %1123 = vmatpush.msrb.mxu2 %v1041_v6  ;;  %1146 = vmatpush.msrb.mxu3 %v1073_v7  ;;  %v1531_v5 = vld [vmem:[#allocation2 + $0x920] sm:$0xff]  ;;  %v1015_v6 = vld [vmem:[#allocation2 + $0x218] sm:$0xff] }
  0xdd   : > { %1560 = vmatpush.msrb.mxu0 %v1523_v8  ;;  %1583 = vmatpush.msrb.mxu1 %v1555_v9  ;;  %v1047_v7 = vld [vmem:[#allocation2 + $0x318] sm:$0xff]  ;;  %v1497_v8 = vld [vmem:[#allocation2 + $0x810] sm:$0xff] }
  0xde   : > { %1124 = vmatpush.msrb.mxu2 %v1039_v10  ;;  %1147 = vmatpush.msrb.mxu3 %v1071_v11  ;;  %v1529_v9 = vld [vmem:[#allocation2 + $0x910] sm:$0xff]  ;;  %v1013_v10 = vld [vmem:[#allocation2 + $0x208] sm:$0xff] }
  0xdf   : > { %1561 = vmatpush.msrb.mxu0 %v1521_v12  ;;  %1584 = vmatpush.msrb.mxu1 %v1553_v13  ;;  %v4406_v18 = vpop.f32.mrf.mxu0  ;;  %v4408_v19 = vpop.f32.mrf.mxu1  ;;  %v1045_v11 = vld [vmem:[#allocation2 + $0x308] sm:$0xff]  ;;  %v1204_v12 = vld [vmem:[#allocation2 + $0x4f8] sm:$0xff] }
  0xe0   : > { %1125 = vmatpush.msrb.mxu2 %v1037_v14  ;;  %1148 = vmatpush.msrb.mxu3 %v1069_v15  ;;  %v1236_v13 = vld [vmem:[#allocation2 + $0x5f8] sm:$0xff]  ;;  %v1495_v14 = vld [vmem:[#allocation2 + $0x800] sm:$0xff] }
  0xe1   : > { %1562 = vmatpush.msrb.mxu0 %v1519_v16  ;;  %1585 = vmatpush.msrb.mxu1 %v1551_v17  ;;  %v1527_v15 = vld [vmem:[#allocation2 + $0x900] sm:$0xff]  ;;  %v1686_v16 = vld [vmem:[#allocation2 + $0xaf0] sm:$0xff] }
  0xe2   : > { %1126 = vmatpush.msrb.mxu2 %v1035_v20  ;;  %1149 = vmatpush.msrb.mxu3 %v1067_v21  ;;  %v1718_v17 = vld [vmem:[#allocation2 + $0xbf0] sm:$0xff]  ;;  %v1202_v20 = vld [vmem:[#allocation2 + $0x4e8] sm:$0xff] }
  0xe3   : > { %1095 = vmatmul.f32.gmra.mxu2 %v4394_v56  ;;  %1118 = vmatmul.f32.gmra.mxu3 %v4396_v57  ;;  %v1234_v21 = vld [vmem:[#allocation2 + $0x5e8] sm:$0xff] }
  0xe4   : > { %1256 = vmatmul.f32.gmra.mxu0 %v4406_v18  ;;  %1279 = vmatmul.f32.gmra.mxu1 %v4408_v19 }
  0xe5   : > { %1563 = vmatpush.msrb.mxu0 %v1517_v22  ;;  %1586 = vmatpush.msrb.mxu1 %v1549_v23 }
  0xe6   : > { %1127 = vmatpush.msrb.mxu2 %v1033_v24  ;;  %1150 = vmatpush.msrb.mxu3 %v1065_v25  ;;  %v1684_v24 = vld [vmem:[#allocation2 + $0xae0] sm:$0xff] }
  0xe7   : > { %1564 = vmatpush.msrb.mxu0 %v1515_v26  ;;  %1587 = vmatpush.msrb.mxu1 %v1547_v27  ;;  %v4414_v36 = vpop.f32.mrf.mxu0  ;;  %v4416_v37 = vpop.f32.mrf.mxu1  ;;  %v1716_v25 = vld [vmem:[#allocation2 + $0xbe0] sm:$0xff]  ;;  %v1682_v26 = vld [vmem:[#allocation2 + $0xad0] sm:$0xff] }
  0xe8   : > { %1128 = vmatpush.msrb.mxu2 %v1031_v28  ;;  %1151 = vmatpush.msrb.mxu3 %v1063_v29  ;;  %v1714_v27 = vld [vmem:[#allocation2 + $0xbd0] sm:$0xff]  ;;  %v1198_v28 = vld [vmem:[#allocation2 + $0x4c8] sm:$0xff] }
  0xe9   : > { %1565 = vmatpush.msrb.mxu0 %v1513_v30  ;;  %1588 = vmatpush.msrb.mxu1 %v1545_v31  ;;  %v1230_v29 = vld [vmem:[#allocation2 + $0x5c8] sm:$0xff]  ;;  %v1680_v30 = vld [vmem:[#allocation2 + $0xac0] sm:$0xff] }
  0xea   : > { %1129 = vmatpush.msrb.mxu2 %v1029_v32  ;;  %1152 = vmatpush.msrb.mxu3 %v1061_v33  ;;  %v1712_v31 = vld [vmem:[#allocation2 + $0xbc0] sm:$0xff]  ;;  %v1196_v32 = vld [vmem:[#allocation2 + $0x4b8] sm:$0xff] }
  0xeb   : > { %1566 = vmatpush.msrb.mxu0 %v1511_v34  ;;  %1589 = vmatpush.msrb.mxu1 %v1543_v35  ;;  %v1228_v33 = vld [vmem:[#allocation2 + $0x5b8] sm:$0xff]  ;;  %v1678_v34 = vld [vmem:[#allocation2 + $0xab0] sm:$0xff] }
  0xec   : > { %1130 = vmatpush.msrb.mxu2 %v1027_v38  ;;  %1153 = vmatpush.msrb.mxu3 %v1059_v39  ;;  %v1710_v35 = vld [vmem:[#allocation2 + $0xbb0] sm:$0xff]  ;;  %v1194_v38 = vld [vmem:[#allocation2 + $0x4a8] sm:$0xff] }
  0xed   : > { %1414 = vmatmul.f32.vlgmr.msra.gmra.mxu0 %v4414_v36  ;;  %1437 = vmatmul.f32.vlgmr.msra.gmra.mxu1 %v4416_v37  ;;  %v1226_v39 = vld [vmem:[#allocation2 + $0x5a8] sm:$0xff] }
  0xee   : > { %1567 = vmatpush.msrb.mxu0 %v1509_v40  ;;  %1590 = vmatpush.msrb.mxu1 %v1541_v41 }
  0xef   : > { %1131 = vmatpush.msrb.mxu2 %v1025_v42  ;;  %1154 = vmatpush.msrb.mxu3 %v1057_v43  ;;  %v4420_v60 = vpop.f32.mrf.mxu0  ;;  %v4422_v61 = vpop.f32.mrf.mxu1  ;;  %v1676_v42 = vld [vmem:[#allocation2 + $0xaa0] sm:$0xff] }
  0xf0   : > { %1568 = vmatpush.msrb.mxu0 %v1507_v44  ;;  %1591 = vmatpush.msrb.mxu1 %v1539_v47  ;;  %v1708_v43 = vld [vmem:[#allocation2 + $0xba0] sm:$0xff]  ;;  %v1192_v44 = vld [vmem:[#allocation2 + $0x498] sm:$0xff] }
  0xf1   : > { %1132 = vmatpush.msrb.mxu2 %v1023_v48  ;;  %1155 = vmatpush.msrb.mxu3 %v1055_v49  ;;  %v1224_v47 = vld [vmem:[#allocation2 + $0x598] sm:$0xff]  ;;  %v1190_v48 = vld [vmem:[#allocation2 + $0x488] sm:$0xff] }
  0xf2   : > { %1569 = vmatpush.msrb.mxu0 %v1505_v50  ;;  %1592 = vmatpush.msrb.mxu1 %v1537_v51  ;;  %v1222_v49 = vld [vmem:[#allocation2 + $0x588] sm:$0xff]  ;;  %v1672_v50 = vld [vmem:[#allocation2 + $0xa80] sm:$0xff] }
  0xf3   : > { %1133 = vmatpush.msrb.mxu2 %v1021_v52  ;;  %1156 = vmatpush.msrb.mxu3 %v1053_v53  ;;  %v1704_v51 = vld [vmem:[#allocation2 + $0xb80] sm:$0xff]  ;;  %v1188_v52 = vld [vmem:[#allocation2 + $0x478] sm:$0xff] }
  0xf4   : > { %1570 = vmatpush.msrb.mxu0 %v1503_v54  ;;  %1593 = vmatpush.msrb.mxu1 %v1535_v55  ;;  %v1220_v53 = vld [vmem:[#allocation2 + $0x578] sm:$0xff]  ;;  %v1670_v54 = vld [vmem:[#allocation2 + $0xa70] sm:$0xff] }
  0xf5   : > { %1134 = vmatpush.msrb.mxu2 %v1019_v58  ;;  %1157 = vmatpush.msrb.mxu3 %v1051_v59  ;;  %v1702_v55 = vld [vmem:[#allocation2 + $0xb70] sm:$0xff]  ;;  %v1186_v58 = vld [vmem:[#allocation2 + $0x468] sm:$0xff] }
  0xf6   : > { %1417 = vmatmul.f32.gmra.mxu0 %v4420_v60  ;;  %1440 = vmatmul.f32.gmra.mxu1 %v4422_v61  ;;  %v1218_v59 = vld [vmem:[#allocation2 + $0x568] sm:$0xff] }
  0xf7   : > { %1571 = vmatpush.msrb.mxu0 %v1501_v62  ;;  %1594 = vmatpush.msrb.mxu1 %v1533_v63  ;;  %v4428_v22 = vpop.f32.mrf.mxu0  ;;  %v4430_v23 = vpop.f32.mrf.mxu1  ;;  %v1668_v62 = vld [vmem:[#allocation2 + $0xa60] sm:$0xff] }
  0xf8   : > { %1135 = vmatpush.msrb.mxu2 %v1017_v0  ;;  %1158 = vmatpush.msrb.mxu3 %v1049_v1  ;;  %v1700_v63 = vld [vmem:[#allocation2 + $0xb60] sm:$0xff]  ;;  %v1184_v0 = vld [vmem:[#allocation2 + $0x458] sm:$0xff] }
  0xf9   : > { %1572 = vmatpush.msrb.mxu0 %v1499_v4  ;;  %1595 = vmatpush.msrb.mxu1 %v1531_v5  ;;  %v1216_v1 = vld [vmem:[#allocation2 + $0x558] sm:$0xff]  ;;  %v1666_v4 = vld [vmem:[#allocation2 + $0xa50] sm:$0xff] }
  0xfa   : > { %1136 = vmatpush.msrb.mxu2 %v1015_v6  ;;  %1159 = vmatpush.msrb.mxu3 %v1047_v7  ;;  %v1698_v5 = vld [vmem:[#allocation2 + $0xb50] sm:$0xff]  ;;  %v1182_v6 = vld [vmem:[#allocation2 + $0x448] sm:$0xff] }
  0xfb   : > { %1573 = vmatpush.msrb.mxu0 %v1497_v8  ;;  %1596 = vmatpush.msrb.mxu1 %v1529_v9  ;;  %v1214_v7 = vld [vmem:[#allocation2 + $0x548] sm:$0xff]  ;;  %v1664_v8 = vld [vmem:[#allocation2 + $0xa40] sm:$0xff] }
  0xfc   : > { %1137 = vmatpush.msrb.mxu2 %v1013_v10  ;;  %1160 = vmatpush.msrb.mxu3 %v1045_v11  ;;  %v1696_v9 = vld [vmem:[#allocation2 + $0xb40] sm:$0xff]  ;;  %v1180_v10 = vld [vmem:[#allocation2 + $0x438] sm:$0xff] }
  0xfd   : > { %1138 = vmatmul.f32.vlgmr.msrb.gmra.mxu2 %v4387_v45  ;;  %1161 = vmatmul.f32.vlgmr.msrb.gmra.mxu3 %v4389_v46  ;;  %v1200_v45 = vld [vmem:[#allocation2 + $0x4d8] sm:$0xff] }
  0xfe   : > { %1283 = vmatpush.msra.mxu2 %v1204_v12  ;;  %1306 = vmatpush.msra.mxu3 %v1236_v13  ;;  %v1232_v46 = vld [vmem:[#allocation2 + $0x5d8] sm:$0xff]  ;;  %v1662_v12 = vld [vmem:[#allocation2 + $0xa30] sm:$0xff] }
  0xff   : > { %1574 = vmatpush.msrb.mxu0 %v1495_v14  ;;  %1597 = vmatpush.msrb.mxu1 %v1527_v15  ;;  %v4436_v40 = vpop.f32.mrf.mxu0  ;;  %v4438_v41 = vpop.f32.mrf.mxu1  ;;  %v1212_v11 = vld [vmem:[#allocation2 + $0x538] sm:$0xff]  ;;  %v1694_v13 = vld [vmem:[#allocation2 + $0xb30] sm:$0xff]  ;;  %v1178_v14 = vld [vmem:[#allocation2 + $0x428] sm:$0xff] }
 0x100   : > { %1284 = vmatpush.msra.mxu2 %v1202_v20  ;;  %1307 = vmatpush.msra.mxu3 %v1234_v21  ;;  %v1210_v15 = vld [vmem:[#allocation2 + $0x528] sm:$0xff]  ;;  %v1176_v20 = vld [vmem:[#allocation2 + $0x418] sm:$0xff] }
 0x101   : > { %1720 = vmatpush.msra.mxu0 %v1686_v16  ;;  %1743 = vmatpush.msra.mxu1 %v1718_v17  ;;  %v1660_v16 = vld [vmem:[#allocation2 + $0xa20] sm:$0xff]  ;;  %v1208_v21 = vld [vmem:[#allocation2 + $0x518] sm:$0xff] }
 0x102   : > { %1575 = vmatmul.f32.vlgmr.msrb.gmra.mxu0 %v4428_v22  ;;  %1598 = vmatmul.f32.vlgmr.msrb.gmra.mxu1 %v4430_v23  ;;  %v1692_v17 = vld [vmem:[#allocation2 + $0xb20] sm:$0xff] }
 0x103   : > { %1721 = vmatpush.msra.mxu0 %v1684_v24  ;;  %1744 = vmatpush.msra.mxu1 %v1716_v25  ;;  %v1658_v24 = vld [vmem:[#allocation2 + $0xa10] sm:$0xff] }
 0x104   : > { %1285 = vmatpush.msra.mxu2 %v1200_v45  ;;  %1308 = vmatpush.msra.mxu3 %v1232_v46  ;;  %v1690_v25 = vld [vmem:[#allocation2 + $0xb10] sm:$0xff]  ;;  %v1174_v45 = vld [vmem:[#allocation2 + $0x408] sm:$0xff] }
 0x105   : > { %1722 = vmatpush.msra.mxu0 %v1682_v26  ;;  %1745 = vmatpush.msra.mxu1 %v1714_v27  ;;  %v1206_v46 = vld [vmem:[#allocation2 + $0x508] sm:$0xff]  ;;  %v1365_v26 = vld [vmem:[#allocation2 + $0x6f8] sm:$0xff] }
 0x106   : > { %1286 = vmatpush.msra.mxu2 %v1198_v28  ;;  %1309 = vmatpush.msra.mxu3 %v1230_v29  ;;  %v1397_v27 = vld [vmem:[#allocation2 + $0x7f8] sm:$0xff]  ;;  %v1656_v28 = vld [vmem:[#allocation2 + $0xa00] sm:$0xff] }
 0x107   : > { %1723 = vmatpush.msra.mxu0 %v1680_v30  ;;  %1746 = vmatpush.msra.mxu1 %v1712_v31  ;;  %v1688_v29 = vld [vmem:[#allocation2 + $0xb00] sm:$0xff]  ;;  %v4442_v30 = vpop.f32.mrf.mxu0  ;;  %v4444_v31 = vpop.f32.mrf.mxu1 }
 0x108   : > { %1141 = vmatmul.f32.gmra.mxu2 %v4394_v56  ;;  %1164 = vmatmul.f32.gmra.mxu3 %v4396_v57  ;;  %v1674_v56 = vld [vmem:[#allocation2 + $0xa90] sm:$0xff] }
 0x109   : > { %1287 = vmatpush.msra.mxu2 %v1196_v32  ;;  %1310 = vmatpush.msra.mxu3 %v1228_v33  ;;  %v1706_v57 = vld [vmem:[#allocation2 + $0xb90] sm:$0xff] }
 0x10a   : > { %1724 = vmatpush.msra.mxu0 %v1678_v34  ;;  %1747 = vmatpush.msra.mxu1 %v1710_v35  ;;  %v1847_v32 = vld [vmem:[#allocation2 + $0xcf0] sm:$0xff]  ;;  %v1363_v34 = vld [vmem:[#allocation2 + $0x6e8] sm:$0xff] }
 0x10b   : > { %1288 = vmatpush.msra.mxu2 %v1194_v38  ;;  %1311 = vmatpush.msra.mxu3 %v1226_v39  ;;  %v1879_v33 = vld [vmem:[#allocation2 + $0xdf0] sm:$0xff]  ;;  %v1395_v35 = vld [vmem:[#allocation2 + $0x7e8] sm:$0xff]  ;;  %v1845_v38 = vld [vmem:[#allocation2 + $0xce0] sm:$0xff] }
 0x10c   : > { %1578 = vmatmul.f32.gmra.mxu0 %v4436_v40  ;;  %1601 = vmatmul.f32.gmra.mxu1 %v4438_v41  ;;  %v1877_v39 = vld [vmem:[#allocation2 + $0xde0] sm:$0xff] }
 0x10d   : > { %1725 = vmatpush.msra.mxu0 %v1676_v42  ;;  %1748 = vmatpush.msra.mxu1 %v1708_v43  ;;  %v1361_v42 = vld [vmem:[#allocation2 + $0x6d8] sm:$0xff]  ;;  %v1875_v43 = vld [vmem:[#allocation2 + $0xdd0] sm:$0xff] }
 0x10e   : > { %1289 = vmatpush.msra.mxu2 %v1192_v44  ;;  %1312 = vmatpush.msra.mxu3 %v1224_v47  ;;  %v1359_v44 = vld [vmem:[#allocation2 + $0x6c8] sm:$0xff] }
 0x10f   : > { %1726 = vmatpush.msra.mxu0 %v1674_v56  ;;  %1749 = vmatpush.msra.mxu1 %v1706_v57  ;;  %v1391_v47 = vld [vmem:[#allocation2 + $0x7c8] sm:$0xff]  ;;  %v1841_v56 = vld [vmem:[#allocation2 + $0xcc0] sm:$0xff] }
 0x110   : > { %1290 = vmatpush.msra.mxu2 %v1190_v48  ;;  %1313 = vmatpush.msra.mxu3 %v1222_v49  ;;  %v1873_v57 = vld [vmem:[#allocation2 + $0xdc0] sm:$0xff]  ;;  %v1357_v48 = vld [vmem:[#allocation2 + $0x6b8] sm:$0xff] }
 0x111   : > { %1727 = vmatpush.msra.mxu0 %v1672_v50  ;;  %1750 = vmatpush.msra.mxu1 %v1704_v51  ;;  %v1389_v49 = vld [vmem:[#allocation2 + $0x7b8] sm:$0xff]  ;;  %v4450_v50 = vpop.f32.mrf.mxu0  ;;  %v4452_v51 = vpop.f32.mrf.mxu1 }
 0x112   : > { %1291 = vmatpush.msra.mxu2 %v1188_v52  ;;  %1314 = vmatpush.msra.mxu3 %v1220_v53  ;;  %v1839_v52 = vld [vmem:[#allocation2 + $0xcb0] sm:$0xff] }
 0x113   : > { %1728 = vmatpush.msra.mxu0 %v1670_v54  ;;  %1751 = vmatpush.msra.mxu1 %v1702_v55  ;;  %v1871_v53 = vld [vmem:[#allocation2 + $0xdb0] sm:$0xff]  ;;  %v1355_v54 = vld [vmem:[#allocation2 + $0x6a8] sm:$0xff] }
 0x114   : > { %1292 = vmatpush.msra.mxu2 %v1186_v58  ;;  %1315 = vmatpush.msra.mxu3 %v1218_v59  ;;  %v1387_v55 = vld [vmem:[#allocation2 + $0x7a8] sm:$0xff]  ;;  %v1837_v58 = vld [vmem:[#allocation2 + $0xca0] sm:$0xff] }
 0x115   : > { %1729 = vmatpush.msra.mxu0 %v1668_v62  ;;  %1752 = vmatpush.msra.mxu1 %v1700_v63  ;;  %v1869_v59 = vld [vmem:[#allocation2 + $0xda0] sm:$0xff]  ;;  %v1353_v62 = vld [vmem:[#allocation2 + $0x698] sm:$0xff] }
 0x116   : > { %1293 = vmatpush.msra.mxu2 %v1184_v0  ;;  %1316 = vmatpush.msra.mxu3 %v1216_v1  ;;  %v1385_v63 = vld [vmem:[#allocation2 + $0x798] sm:$0xff]  ;;  %v1351_v0 = vld [vmem:[#allocation2 + $0x688] sm:$0xff] }
 0x117   : > { %1730 = vmatpush.msra.mxu0 %v1666_v4  ;;  %1753 = vmatpush.msra.mxu1 %v1698_v5  ;;  %v1383_v1 = vld [vmem:[#allocation2 + $0x788] sm:$0xff]  ;;  %v1833_v4 = vld [vmem:[#allocation2 + $0xc80] sm:$0xff] }
 0x118   : > { %1294 = vmatpush.msra.mxu2 %v1182_v6  ;;  %1317 = vmatpush.msra.mxu3 %v1214_v7  ;;  %v1865_v5 = vld [vmem:[#allocation2 + $0xd80] sm:$0xff]  ;;  %v1349_v6 = vld [vmem:[#allocation2 + $0x678] sm:$0xff] }
 0x119   : > { %1731 = vmatpush.msra.mxu0 %v1664_v8  ;;  %1754 = vmatpush.msra.mxu1 %v1696_v9  ;;  %v1381_v7 = vld [vmem:[#allocation2 + $0x778] sm:$0xff]  ;;  %v1831_v8 = vld [vmem:[#allocation2 + $0xc70] sm:$0xff] }
 0x11a   : > { %1295 = vmatpush.msra.mxu2 %v1180_v10  ;;  %1318 = vmatpush.msra.mxu3 %v1212_v11  ;;  %v1863_v9 = vld [vmem:[#allocation2 + $0xd70] sm:$0xff]  ;;  %v1347_v10 = vld [vmem:[#allocation2 + $0x668] sm:$0xff] }
 0x11b   : > { %1732 = vmatpush.msra.mxu0 %v1662_v12  ;;  %1755 = vmatpush.msra.mxu1 %v1694_v13  ;;  %v1379_v11 = vld [vmem:[#allocation2 + $0x768] sm:$0xff]  ;;  %v1829_v12 = vld [vmem:[#allocation2 + $0xc60] sm:$0xff] }
 0x11c   : > { %1296 = vmatpush.msra.mxu2 %v1178_v14  ;;  %1319 = vmatpush.msra.mxu3 %v1210_v15  ;;  %v1861_v13 = vld [vmem:[#allocation2 + $0xd60] sm:$0xff]  ;;  %v1345_v14 = vld [vmem:[#allocation2 + $0x658] sm:$0xff] }
 0x11d   : > { %1733 = vmatpush.msra.mxu0 %v1660_v16  ;;  %1756 = vmatpush.msra.mxu1 %v1692_v17  ;;  %v1377_v15 = vld [vmem:[#allocation2 + $0x758] sm:$0xff]  ;;  %v1827_v16 = vld [vmem:[#allocation2 + $0xc50] sm:$0xff] }
 0x11e   : > { %1297 = vmatpush.msra.mxu2 %v1176_v20  ;;  %1320 = vmatpush.msra.mxu3 %v1208_v21  ;;  %v1859_v17 = vld [vmem:[#allocation2 + $0xd50] sm:$0xff]  ;;  %v1343_v20 = vld [vmem:[#allocation2 + $0x648] sm:$0xff] }
 0x11f   : > { %1734 = vmatpush.msra.mxu0 %v1658_v24  ;;  %1757 = vmatpush.msra.mxu1 %v1690_v25  ;;  %v1375_v21 = vld [vmem:[#allocation2 + $0x748] sm:$0xff]  ;;  %v1825_v24 = vld [vmem:[#allocation2 + $0xc40] sm:$0xff] }
 0x120   : > { %1298 = vmatpush.msra.mxu2 %v1174_v45  ;;  %1321 = vmatpush.msra.mxu3 %v1206_v46  ;;  %v1857_v25 = vld [vmem:[#allocation2 + $0xd40] sm:$0xff]  ;;  %v1341_v45 = vld [vmem:[#allocation2 + $0x638] sm:$0xff] }
 0x121   : > { %1299 = vmatmul.f32.vlgmr.msra.gmra.mxu2 %v4398_v2  ;;  %1322 = vmatmul.f32.vlgmr.msra.gmra.mxu3 %v4400_v3  ;;  %v1393_v2 = vld [vmem:[#allocation2 + $0x7d8] sm:$0xff]  ;;  %v1843_v3 = vld [vmem:[#allocation2 + $0xcd0] sm:$0xff] }
 0x122   : > { %1444 = vmatpush.msrb.mxu2 %v1365_v26  ;;  %1467 = vmatpush.msrb.mxu3 %v1397_v27  ;;  %v1373_v46 = vld [vmem:[#allocation2 + $0x738] sm:$0xff]  ;;  %v1823_v26 = vld [vmem:[#allocation2 + $0xc30] sm:$0xff] }
 0x123   : > { %1735 = vmatpush.msra.mxu0 %v1656_v28  ;;  %1758 = vmatpush.msra.mxu1 %v1688_v29  ;;  %v1855_v27 = vld [vmem:[#allocation2 + $0xd30] sm:$0xff]  ;;  %v1339_v28 = vld [vmem:[#allocation2 + $0x628] sm:$0xff] }
 0x124   : > { %1736 = vmatmul.f32.vlgmr.msra.gmra.mxu0 %v4442_v30  ;;  %1759 = vmatmul.f32.vlgmr.msra.gmra.mxu1 %v4444_v31  ;;  %v1371_v29 = vld [vmem:[#allocation2 + $0x728] sm:$0xff] }
 0x125   : > { %1881 = vmatpush.msrb.mxu0 %v1847_v32  ;;  %1904 = vmatpush.msrb.mxu1 %v1879_v33  ;;  %v1821_v32 = vld [vmem:[#allocation2 + $0xc20] sm:$0xff] }
 0x126   : > { %1445 = vmatpush.msrb.mxu2 %v1363_v34  ;;  %1468 = vmatpush.msrb.mxu3 %v1395_v35  ;;  %v1853_v33 = vld [vmem:[#allocation2 + $0xd20] sm:$0xff]  ;;  %v1337_v34 = vld [vmem:[#allocation2 + $0x618] sm:$0xff] }
 0x127   : > { %1882 = vmatpush.msrb.mxu0 %v1845_v38  ;;  %1905 = vmatpush.msrb.mxu1 %v1877_v39  ;;  %v1369_v35 = vld [vmem:[#allocation2 + $0x718] sm:$0xff]  ;;  %v1819_v38 = vld [vmem:[#allocation2 + $0xc10] sm:$0xff] }
 0x128   : > { %1446 = vmatpush.msrb.mxu2 %v1361_v42  ;;  %1469 = vmatpush.msrb.mxu3 %v1393_v2  ;;  %v1851_v39 = vld [vmem:[#allocation2 + $0xd10] sm:$0xff]  ;;  %v1335_v42 = vld [vmem:[#allocation2 + $0x608] sm:$0xff] }
 0x129   : > { %1883 = vmatpush.msrb.mxu0 %v1843_v3  ;;  %1906 = vmatpush.msrb.mxu1 %v1875_v43  ;;  %v1367_v2 = vld [vmem:[#allocation2 + $0x708] sm:$0xff]  ;;  %v1526_v3 = vld [vmem:[#allocation2 + $0x8f8] sm:$0xff] }
 0x12a   : > { %1447 = vmatpush.msrb.mxu2 %v1359_v44  ;;  %1470 = vmatpush.msrb.mxu3 %v1391_v47  ;;  %v1558_v43 = vld [vmem:[#allocation2 + $0x9f8] sm:$0xff]  ;;  %v1817_v44 = vld [vmem:[#allocation2 + $0xc00] sm:$0xff] }
 0x12b   : > { %1884 = vmatpush.msrb.mxu0 %v1841_v56  ;;  %1907 = vmatpush.msrb.mxu1 %v1873_v57  ;;  %v1849_v47 = vld [vmem:[#allocation2 + $0xd00] sm:$0xff]  ;;  %v2008_v56 = vld [vmem:[#allocation2 + $0xef0] sm:$0xff] }
 0x12c   : > { %1302 = vmatmul.f32.gmra.mxu2 %v4406_v18  ;;  %1325 = vmatmul.f32.gmra.mxu3 %v4408_v19  ;;  %v1835_v18 = vld [vmem:[#allocation2 + $0xc90] sm:$0xff] }
 0x12d   : > { %1448 = vmatpush.msrb.mxu2 %v1357_v48  ;;  %1471 = vmatpush.msrb.mxu3 %v1389_v49  ;;  %v1867_v19 = vld [vmem:[#allocation2 + $0xd90] sm:$0xff]  ;;  %v4460_v48 = vpop.f32.mrf.mxu0  ;;  %v4462_v49 = vpop.f32.mrf.mxu1 }
 0x12e   : > { %1739 = vmatmul.f32.gmra.mxu0 %v4450_v50  ;;  %1762 = vmatmul.f32.gmra.mxu1 %v4452_v51  ;;  %v2040_v57 = vld [vmem:[#allocation2 + $0xff0] sm:$0xff] }
 0x12f   : > { %1885 = vmatpush.msrb.mxu0 %v1839_v52  ;;  %1908 = vmatpush.msrb.mxu1 %v1871_v53  ;;  %v1524_v52 = vld [vmem:[#allocation2 + $0x8e8] sm:$0xff] }
 0x130   : > { %1449 = vmatpush.msrb.mxu2 %v1355_v54  ;;  %1472 = vmatpush.msrb.mxu3 %v1387_v55  ;;  %v1556_v53 = vld [vmem:[#allocation2 + $0x9e8] sm:$0xff]  ;;  %v2006_v54 = vld [vmem:[#allocation2 + $0xee0] sm:$0xff]  ;;  %v1554_v55 = vld [vmem:[#allocation2 + $0x9d8] sm:$0xff] }
 0x131   : > { %1886 = vmatpush.msrb.mxu0 %v1837_v58  ;;  %1909 = vmatpush.msrb.mxu1 %v1869_v59  ;;  %v2004_v58 = vld [vmem:[#allocation2 + $0xed0] sm:$0xff] }
 0x132   : > { %1450 = vmatpush.msrb.mxu2 %v1353_v62  ;;  %1473 = vmatpush.msrb.mxu3 %v1385_v63  ;;  %v2036_v59 = vld [vmem:[#allocation2 + $0xfd0] sm:$0xff]  ;;  %v1520_v62 = vld [vmem:[#allocation2 + $0x8c8] sm:$0xff] }
 0x133   : > { %1887 = vmatpush.msrb.mxu0 %v1835_v18  ;;  %1910 = vmatpush.msrb.mxu1 %v1867_v19  ;;  %v1552_v63 = vld [vmem:[#allocation2 + $0x9c8] sm:$0xff]  ;;  %v2002_v18 = vld [vmem:[#allocation2 + $0xec0] sm:$0xff] }
 0x134   : > { %1451 = vmatpush.msrb.mxu2 %v1351_v0  ;;  %1474 = vmatpush.msrb.mxu3 %v1383_v1  ;;  %v2034_v19 = vld [vmem:[#allocation2 + $0xfc0] sm:$0xff]  ;;  %v1518_v0 = vld [vmem:[#allocation2 + $0x8b8] sm:$0xff] }
 0x135   : > { %1888 = vmatpush.msrb.mxu0 %v1833_v4  ;;  %1911 = vmatpush.msrb.mxu1 %v1865_v5  ;;  %v1550_v1 = vld [vmem:[#allocation2 + $0x9b8] sm:$0xff]  ;;  %v2000_v4 = vld [vmem:[#allocation2 + $0xeb0] sm:$0xff] }
 0x136   : > { %1452 = vmatpush.msrb.mxu2 %v1349_v6  ;;  %1475 = vmatpush.msrb.mxu3 %v1381_v7  ;;  %v2032_v5 = vld [vmem:[#allocation2 + $0xfb0] sm:$0xff]  ;;  %v4468_v6 = vpop.f32.mrf.mxu0  ;;  %v4470_v7 = vpop.f32.mrf.mxu1 }
 0x137   : > { %1889 = vmatpush.msrb.mxu0 %v1831_v8  ;;  %1912 = vmatpush.msrb.mxu1 %v1863_v9  ;;  %v1516_v8 = vld [vmem:[#allocation2 + $0x8a8] sm:$0xff] }
 0x138   : > { %1453 = vmatpush.msrb.mxu2 %v1347_v10  ;;  %1476 = vmatpush.msrb.mxu3 %v1379_v11  ;;  %v1548_v9 = vld [vmem:[#allocation2 + $0x9a8] sm:$0xff]  ;;  %v1998_v10 = vld [vmem:[#allocation2 + $0xea0] sm:$0xff] }
 0x139   : > { %1890 = vmatpush.msrb.mxu0 %v1829_v12  ;;  %1913 = vmatpush.msrb.mxu1 %v1861_v13  ;;  %v2030_v11 = vld [vmem:[#allocation2 + $0xfa0] sm:$0xff]  ;;  %v1996_v12 = vld [vmem:[#allocation2 + $0xe90] sm:$0xff] }
 0x13a   : > { %1454 = vmatpush.msrb.mxu2 %v1345_v14  ;;  %1477 = vmatpush.msrb.mxu3 %v1377_v15  ;;  %v2028_v13 = vld [vmem:[#allocation2 + $0xf90] sm:$0xff]  ;;  %v1512_v14 = vld [vmem:[#allocation2 + $0x888] sm:$0xff] }
 0x13b   : > { %1891 = vmatpush.msrb.mxu0 %v1827_v16  ;;  %1914 = vmatpush.msrb.mxu1 %v1859_v17  ;;  %v1544_v15 = vld [vmem:[#allocation2 + $0x988] sm:$0xff]  ;;  %v1994_v16 = vld [vmem:[#allocation2 + $0xe80] sm:$0xff] }
 0x13c   : > { %1455 = vmatpush.msrb.mxu2 %v1343_v20  ;;  %1478 = vmatpush.msrb.mxu3 %v1375_v21  ;;  %v2026_v17 = vld [vmem:[#allocation2 + $0xf80] sm:$0xff]  ;;  %v1510_v20 = vld [vmem:[#allocation2 + $0x878] sm:$0xff] }
 0x13d   : > { %1892 = vmatpush.msrb.mxu0 %v1825_v24  ;;  %1915 = vmatpush.msrb.mxu1 %v1857_v25  ;;  %v1542_v21 = vld [vmem:[#allocation2 + $0x978] sm:$0xff]  ;;  %v1992_v24 = vld [vmem:[#allocation2 + $0xe70] sm:$0xff] }
 0x13e   : > { %1456 = vmatpush.msrb.mxu2 %v1341_v45  ;;  %1479 = vmatpush.msrb.mxu3 %v1373_v46  ;;  %v2024_v25 = vld [vmem:[#allocation2 + $0xf70] sm:$0xff]  ;;  %v1508_v45 = vld [vmem:[#allocation2 + $0x868] sm:$0xff] }
 0x13f   : > { %1893 = vmatpush.msrb.mxu0 %v1823_v26  ;;  %1916 = vmatpush.msrb.mxu1 %v1855_v27  ;;  %v1540_v46 = vld [vmem:[#allocation2 + $0x968] sm:$0xff]  ;;  %v1990_v26 = vld [vmem:[#allocation2 + $0xe60] sm:$0xff] }
 0x140   : > { %1457 = vmatpush.msrb.mxu2 %v1339_v28  ;;  %1480 = vmatpush.msrb.mxu3 %v1371_v29  ;;  %v2022_v27 = vld [vmem:[#allocation2 + $0xf60] sm:$0xff]  ;;  %v1506_v28 = vld [vmem:[#allocation2 + $0x858] sm:$0xff] }
 0x141   : > { %1894 = vmatpush.msrb.mxu0 %v1821_v32  ;;  %1917 = vmatpush.msrb.mxu1 %v1853_v33  ;;  %v1538_v29 = vld [vmem:[#allocation2 + $0x958] sm:$0xff]  ;;  %v1988_v32 = vld [vmem:[#allocation2 + $0xe50] sm:$0xff] }
 0x142   : > { %1458 = vmatpush.msrb.mxu2 %v1337_v34  ;;  %1481 = vmatpush.msrb.mxu3 %v1369_v35  ;;  %v2020_v33 = vld [vmem:[#allocation2 + $0xf50] sm:$0xff]  ;;  %v1504_v34 = vld [vmem:[#allocation2 + $0x848] sm:$0xff] }
 0x143   : > { %1895 = vmatpush.msrb.mxu0 %v1819_v38  ;;  %1918 = vmatpush.msrb.mxu1 %v1851_v39  ;;  %v1536_v35 = vld [vmem:[#allocation2 + $0x948] sm:$0xff]  ;;  %v1986_v38 = vld [vmem:[#allocation2 + $0xe40] sm:$0xff] }
 0x144   : > { %1459 = vmatpush.msrb.mxu2 %v1335_v42  ;;  %1482 = vmatpush.msrb.mxu3 %v1367_v2  ;;  %v2018_v39 = vld [vmem:[#allocation2 + $0xf40] sm:$0xff]  ;;  %v1502_v42 = vld [vmem:[#allocation2 + $0x838] sm:$0xff] }
 0x145   : > { %1460 = vmatmul.f32.vlgmr.msrb.gmra.mxu2 %v4414_v36  ;;  %1483 = vmatmul.f32.vlgmr.msrb.gmra.mxu3 %v4416_v37  ;;  %v2038_v36 = vld [vmem:[#allocation2 + $0xfe0] sm:$0xff]  ;;  %v1522_v37 = vld [vmem:[#allocation2 + $0x8d8] sm:$0xff] }
 0x146   : > { %1605 = vmatpush.msra.mxu2 %v1526_v3  ;;  %1628 = vmatpush.msra.mxu3 %v1558_v43  ;;  %v1534_v2 = vld [vmem:[#allocation2 + $0x938] sm:$0xff]  ;;  %v1984_v3 = vld [vmem:[#allocation2 + $0xe30] sm:$0xff] }
 0x147   : > { %1896 = vmatpush.msrb.mxu0 %v1817_v44  ;;  %1919 = vmatpush.msrb.mxu1 %v1849_v47  ;;  %v2016_v43 = vld [vmem:[#allocation2 + $0xf30] sm:$0xff]  ;;  %v1500_v44 = vld [vmem:[#allocation2 + $0x828] sm:$0xff] }
 0x148   : > { %1897 = vmatmul.f32.vlgmr.msrb.gmra.mxu0 %v4460_v48  ;;  %1920 = vmatmul.f32.vlgmr.msrb.gmra.mxu1 %v4462_v49  ;;  %v1532_v47 = vld [vmem:[#allocation2 + $0x928] sm:$0xff] }
 0x149   : > { %2042 = vmatpush.msra.mxu0 %v2008_v56  ;;  %2065 = vmatpush.msra.mxu1 %v2040_v57  ;;  %v1982_v56 = vld [vmem:[#allocation2 + $0xe20] sm:$0xff] }
 0x14a   : > { %1606 = vmatpush.msra.mxu2 %v1524_v52  ;;  %1629 = vmatpush.msra.mxu3 %v1556_v53  ;;  %v2014_v57 = vld [vmem:[#allocation2 + $0xf20] sm:$0xff]  ;;  %v1498_v52 = vld [vmem:[#allocation2 + $0x818] sm:$0xff] }
 0x14b   : > { %2043 = vmatpush.msra.mxu0 %v2006_v54  ;;  %2066 = vmatpush.msra.mxu1 %v2038_v36  ;;  %v1530_v53 = vld [vmem:[#allocation2 + $0x918] sm:$0xff]  ;;  %v1980_v54 = vld [vmem:[#allocation2 + $0xe10] sm:$0xff] }
 0x14c   : > { %1607 = vmatpush.msra.mxu2 %v1522_v37  ;;  %1630 = vmatpush.msra.mxu3 %v1554_v55  ;;  %v2012_v36 = vld [vmem:[#allocation2 + $0xf10] sm:$0xff]  ;;  %v1496_v37 = vld [vmem:[#allocation2 + $0x808] sm:$0xff] }
 0x14d   : > { %2044 = vmatpush.msra.mxu0 %v2004_v58  ;;  %2067 = vmatpush.msra.mxu1 %v2036_v59  ;;  %v1528_v55 = vld [vmem:[#allocation2 + $0x908] sm:$0xff]  ;;  %v1687_v58 = vld [vmem:[#allocation2 + $0xaf8] sm:$0xff] }
 0x14e   : > { %1608 = vmatpush.msra.mxu2 %v1520_v62  ;;  %1631 = vmatpush.msra.mxu3 %v1552_v63  ;;  %v1719_v59 = vld [vmem:[#allocation2 + $0xbf8] sm:$0xff]  ;;  %v1978_v62 = vld [vmem:[#allocation2 + $0xe00] sm:$0xff] }
 0x14f   : > { %2045 = vmatpush.msra.mxu0 %v2002_v18  ;;  %2068 = vmatpush.msra.mxu1 %v2034_v19  ;;  %v2010_v63 = vld [vmem:[#allocation2 + $0xf00] sm:$0xff]  ;;  %v4476_v18 = vpop.f32.mrf.mxu0  ;;  %v4478_v19 = vpop.f32.mrf.mxu1 }
 0x150   : > { %1463 = vmatmul.f32.gmra.mxu2 %v4420_v60  ;;  %1486 = vmatmul.f32.gmra.mxu3 %v4422_v61  ;;  %v1514_v60 = vld [vmem:[#allocation2 + $0x898] sm:$0xff] }
 0x151   : > { %1609 = vmatpush.msra.mxu2 %v1518_v0  ;;  %1632 = vmatpush.msra.mxu3 %v1550_v1  ;;  %v1546_v61 = vld [vmem:[#allocation2 + $0x998] sm:$0xff]  ;;  %v2169_v0 = vld [vmem:[#allocation2 + $0x10f0] sm:$0xff] }
 0x152   : > { %1900 = vmatmul.f32.gmra.mxu0 %v4468_v6  ;;  %1923 = vmatmul.f32.gmra.mxu1 %v4470_v7  ;;  %v2201_v1 = vld [vmem:[#allocation2 + $0x11f0] sm:$0xff] }
 0x153   : > { %2046 = vmatpush.msra.mxu0 %v2000_v4  ;;  %2069 = vmatpush.msra.mxu1 %v2032_v5  ;;  %v4480_v4 = vpop.f32.mrf.mxu2  ;;  %v4482_v5 = vpop.f32.mrf.mxu3 }
 0x154   : > { %1610 = vmatpush.msra.mxu2 %v1516_v8  ;;  %1633 = vmatpush.msra.mxu3 %v1548_v9  ;;  %v1685_v8 = vld [vmem:[#allocation2 + $0xae8] sm:$0xff] }
 0x155   : > { %2047 = vmatpush.msra.mxu0 %v1998_v10  ;;  %2070 = vmatpush.msra.mxu1 %v2030_v11  ;;  %v1717_v9 = vld [vmem:[#allocation2 + $0xbe8] sm:$0xff]  ;;  %v1683_v10 = vld [vmem:[#allocation2 + $0xad8] sm:$0xff] }
 0x156   : > { %1611 = vmatpush.msra.mxu2 %v1514_v60  ;;  %1634 = vmatpush.msra.mxu3 %v1546_v61  ;;  %v1715_v11 = vld [vmem:[#allocation2 + $0xbd8] sm:$0xff]  ;;  %v2165_v60 = vld [vmem:[#allocation2 + $0x10d0] sm:$0xff] }
 0x157   : > { %2048 = vmatpush.msra.mxu0 %v1996_v12  ;;  %2071 = vmatpush.msra.mxu1 %v2028_v13  ;;  %v2197_v61 = vld [vmem:[#allocation2 + $0x11d0] sm:$0xff]  ;;  %v1681_v12 = vld [vmem:[#allocation2 + $0xac8] sm:$0xff] }
 0x158   : > { %1612 = vmatpush.msra.mxu2 %v1512_v14  ;;  %1635 = vmatpush.msra.mxu3 %v1544_v15  ;;  %v1713_v13 = vld [vmem:[#allocation2 + $0xbc8] sm:$0xff]  ;;  %v2163_v14 = vld [vmem:[#allocation2 + $0x10c0] sm:$0xff] }
 0x159   : > { %2049 = vmatpush.msra.mxu0 %v1994_v16  ;;  %2072 = vmatpush.msra.mxu1 %v2026_v17  ;;  %v2195_v15 = vld [vmem:[#allocation2 + $0x11c0] sm:$0xff]  ;;  %v1679_v16 = vld [vmem:[#allocation2 + $0xab8] sm:$0xff] }
 0x15a   : > { %1613 = vmatpush.msra.mxu2 %v1510_v20  ;;  %1636 = vmatpush.msra.mxu3 %v1542_v21  ;;  %v1711_v17 = vld [vmem:[#allocation2 + $0xbb8] sm:$0xff]  ;;  %v4486_v20 = vpop.f32.mrf.mxu0  ;;  %v4488_v21 = vpop.f32.mrf.mxu1 }
 0x15b   : > { %2050 = vmatpush.msra.mxu0 %v1992_v24  ;;  %2073 = vmatpush.msra.mxu1 %v2024_v25  ;;  %v2161_v24 = vld [vmem:[#allocation2 + $0x10b0] sm:$0xff] }
 0x15c   : > { %1614 = vmatpush.msra.mxu2 %v1508_v45  ;;  %1637 = vmatpush.msra.mxu3 %v1540_v46  ;;  %v2193_v25 = vld [vmem:[#allocation2 + $0x11b0] sm:$0xff]  ;;  %v4492_v45 = vpop.f32.mrf.mxu2  ;;  %v4494_v46 = vpop.f32.mrf.mxu3 }
 0x15d   : > { %2051 = vmatpush.msra.mxu0 %v1990_v26  ;;  %2074 = vmatpush.msra.mxu1 %v2022_v27  ;;  %v1677_v26 = vld [vmem:[#allocation2 + $0xaa8] sm:$0xff] }
 0x15e   : > { %1615 = vmatpush.msra.mxu2 %v1506_v28  ;;  %1638 = vmatpush.msra.mxu3 %v1538_v29  ;;  %v1709_v27 = vld [vmem:[#allocation2 + $0xba8] sm:$0xff]  ;;  %v2159_v28 = vld [vmem:[#allocation2 + $0x10a0] sm:$0xff] }
 0x15f   : > { %2052 = vmatpush.msra.mxu0 %v1988_v32  ;;  %2075 = vmatpush.msra.mxu1 %v2020_v33  ;;  %v2191_v29 = vld [vmem:[#allocation2 + $0x11a0] sm:$0xff]  ;;  %v2157_v32 = vld [vmem:[#allocation2 + $0x1090] sm:$0xff] }
 0x160   : > { %1616 = vmatpush.msra.mxu2 %v1504_v34  ;;  %1639 = vmatpush.msra.mxu3 %v1536_v35  ;;  %v2189_v33 = vld [vmem:[#allocation2 + $0x1190] sm:$0xff]  ;;  %v1673_v34 = vld [vmem:[#allocation2 + $0xa88] sm:$0xff] }
 0x161   : > { %2053 = vmatpush.msra.mxu0 %v1986_v38  ;;  %2076 = vmatpush.msra.mxu1 %v2018_v39  ;;  %v1705_v35 = vld [vmem:[#allocation2 + $0xb88] sm:$0xff]  ;;  %v2155_v38 = vld [vmem:[#allocation2 + $0x1080] sm:$0xff] }
 0x162   : > { %1617 = vmatpush.msra.mxu2 %v1502_v42  ;;  %1640 = vmatpush.msra.mxu3 %v1534_v2  ;;  %v2187_v39 = vld [vmem:[#allocation2 + $0x1180] sm:$0xff]  ;;  %v1671_v42 = vld [vmem:[#allocation2 + $0xa78] sm:$0xff] }
 0x163   : > { %2054 = vmatpush.msra.mxu0 %v1984_v3  ;;  %2077 = vmatpush.msra.mxu1 %v2016_v43  ;;  %v1703_v2 = vld [vmem:[#allocation2 + $0xb78] sm:$0xff]  ;;  %v2153_v3 = vld [vmem:[#allocation2 + $0x1070] sm:$0xff] }
 0x164   : > { %1618 = vmatpush.msra.mxu2 %v1500_v44  ;;  %1641 = vmatpush.msra.mxu3 %v1532_v47  ;;  %v2185_v43 = vld [vmem:[#allocation2 + $0x1170] sm:$0xff]  ;;  %v1669_v44 = vld [vmem:[#allocation2 + $0xa68] sm:$0xff] }
 0x165   : > { %2055 = vmatpush.msra.mxu0 %v1982_v56  ;;  %2078 = vmatpush.msra.mxu1 %v2014_v57  ;;  %v1701_v47 = vld [vmem:[#allocation2 + $0xb68] sm:$0xff]  ;;  %v2151_v56 = vld [vmem:[#allocation2 + $0x1060] sm:$0xff] }
 0x166   : > { %1619 = vmatpush.msra.mxu2 %v1498_v52  ;;  %1642 = vmatpush.msra.mxu3 %v1530_v53  ;;  %v2183_v57 = vld [vmem:[#allocation2 + $0x1160] sm:$0xff]  ;;  %v4498_v52 = vpop.f32.mrf.mxu2  ;;  %v4500_v53 = vpop.f32.mrf.mxu3 }
 0x167   : > { %2056 = vmatpush.msra.mxu0 %v1980_v54  ;;  %2079 = vmatpush.msra.mxu1 %v2012_v36  ;;  %v1667_v54 = vld [vmem:[#allocation2 + $0xa58] sm:$0xff] }
 0x168   : > { %1620 = vmatpush.msra.mxu2 %v1496_v37  ;;  %1643 = vmatpush.msra.mxu3 %v1528_v55  ;;  %v1699_v36 = vld [vmem:[#allocation2 + $0xb58] sm:$0xff]  ;;  %v2149_v37 = vld [vmem:[#allocation2 + $0x1050] sm:$0xff] }
 0x169   : > { %1621 = vmatmul.f32.vlgmr.msra.gmra.mxu2 %v4428_v22  ;;  %1644 = vmatmul.f32.vlgmr.msra.gmra.mxu3 %v4430_v23  ;;  %v2167_v22 = vld [vmem:[#allocation2 + $0x10e0] sm:$0xff]  ;;  %v2181_v55 = vld [vmem:[#allocation2 + $0x1150] sm:$0xff] }
 0x16a   : > { %1766 = vmatpush.msrb.mxu2 %v1687_v58  ;;  %1789 = vmatpush.msrb.mxu3 %v1719_v59  ;;  %v2199_v23 = vld [vmem:[#allocation2 + $0x11e0] sm:$0xff]  ;;  %v1665_v58 = vld [vmem:[#allocation2 + $0xa48] sm:$0xff] }
 0x16b   : > { %2057 = vmatpush.msra.mxu0 %v1978_v62  ;;  %2080 = vmatpush.msra.mxu1 %v2010_v63  ;;  %v1697_v59 = vld [vmem:[#allocation2 + $0xb48] sm:$0xff]  ;;  %v2147_v62 = vld [vmem:[#allocation2 + $0x1040] sm:$0xff] }
 0x16c   : > { %2058 = vmatmul.f32.vlgmr.msra.gmra.mxu0 %v4476_v18  ;;  %2081 = vmatmul.f32.vlgmr.msra.gmra.mxu1 %v4478_v19  ;;  %v2179_v63 = vld [vmem:[#allocation2 + $0x1140] sm:$0xff] }
 0x16d   : > { %2203 = vmatpush.msrb.mxu0 %v2169_v0  ;;  %2226 = vmatpush.msrb.mxu1 %v2201_v1  ;;  %v1663_v0 = vld [vmem:[#allocation2 + $0xa38] sm:$0xff] }
 0x16e   : > { %1767 = vmatpush.msrb.mxu2 %v1685_v8  ;;  %1790 = vmatpush.msrb.mxu3 %v1717_v9  ;;  %v1695_v1 = vld [vmem:[#allocation2 + $0xb38] sm:$0xff]  ;;  %v2145_v8 = vld [vmem:[#allocation2 + $0x1030] sm:$0xff] }
 0x16f   : > { %2204 = vmatpush.msrb.mxu0 %v2167_v22  ;;  %2227 = vmatpush.msrb.mxu1 %v2199_v23  ;;  %v2177_v9 = vld [vmem:[#allocation2 + $0x1130] sm:$0xff]  ;;  %v1661_v22 = vld [vmem:[#allocation2 + $0xa28] sm:$0xff] }
 0x170   : > { %1768 = vmatpush.msrb.mxu2 %v1683_v10  ;;  %1791 = vmatpush.msrb.mxu3 %v1715_v11  ;;  %v1693_v23 = vld [vmem:[#allocation2 + $0xb28] sm:$0xff]  ;;  %v2143_v10 = vld [vmem:[#allocation2 + $0x1020] sm:$0xff] }
 0x171   : > { %2205 = vmatpush.msrb.mxu0 %v2165_v60  ;;  %2228 = vmatpush.msrb.mxu1 %v2197_v61  ;;  %v2175_v11 = vld [vmem:[#allocation2 + $0x1120] sm:$0xff]  ;;  %v1659_v60 = vld [vmem:[#allocation2 + $0xa18] sm:$0xff] }
 0x172   : > { %1769 = vmatpush.msrb.mxu2 %v1681_v12  ;;  %1792 = vmatpush.msrb.mxu3 %v1713_v13  ;;  %v1691_v61 = vld [vmem:[#allocation2 + $0xb18] sm:$0xff]  ;;  %v4502_v12 = vpop.f32.mrf.mxu0  ;;  %v4504_v13 = vpop.f32.mrf.mxu1 }
 0x173   : > { %2206 = vmatpush.msrb.mxu0 %v2163_v14  ;;  %2229 = vmatpush.msrb.mxu1 %v2195_v15  ;;  %v2141_v14 = vld [vmem:[#allocation2 + $0x1010] sm:$0xff] }
 0x174   : > { %1624 = vmatmul.f32.gmra.mxu2 %v4436_v40  ;;  %1647 = vmatmul.f32.gmra.mxu3 %v4438_v41  ;;  %v1675_v40 = vld [vmem:[#allocation2 + $0xa98] sm:$0xff]  ;;  %v2173_v15 = vld [vmem:[#allocation2 + $0x1110] sm:$0xff] }
 0x175   : > { %1770 = vmatpush.msrb.mxu2 %v1679_v16  ;;  %1793 = vmatpush.msrb.mxu3 %v1711_v17  ;;  %v1707_v41 = vld [vmem:[#allocation2 + $0xb98] sm:$0xff]  ;;  %v4506_v16 = vpop.f32.mrf.mxu2  ;;  %v4508_v17 = vpop.f32.mrf.mxu3 }
 0x176   : > { %2061 = vmatmul.f32.gmra.mxu0 %v4486_v20  ;;  %2084 = vmatmul.f32.gmra.mxu1 %v4488_v21 }
 0x177   : > { %2207 = vmatpush.msrb.mxu0 %v2161_v24  ;;  %2230 = vmatpush.msrb.mxu1 %v2193_v25  ;;  %v1657_v24 = vld [vmem:[#allocation2 + $0xa08] sm:$0xff] }
 0x178   : > { %1771 = vmatpush.msrb.mxu2 %v1677_v26  ;;  %1794 = vmatpush.msrb.mxu3 %v1709_v27  ;;  %v1689_v25 = vld [vmem:[#allocation2 + $0xb08] sm:$0xff]  ;;  %v1848_v26 = vld [vmem:[#allocation2 + $0xcf8] sm:$0xff] }
 0x179   : > { %2208 = vmatpush.msrb.mxu0 %v2159_v28  ;;  %2231 = vmatpush.msrb.mxu1 %v2191_v29  ;;  %v1880_v27 = vld [vmem:[#allocation2 + $0xdf8] sm:$0xff]  ;;  %v2139_v28 = vld [vmem:[#allocation2 + $0x1000] sm:$0xff] }
 0x17a   : > { %1772 = vmatpush.msrb.mxu2 %v1675_v40  ;;  %1795 = vmatpush.msrb.mxu3 %v1707_v41  ;;  %v2171_v29 = vld [vmem:[#allocation2 + $0x1100] sm:$0xff]  ;;  %v1846_v40 = vld [vmem:[#allocation2 + $0xce8] sm:$0xff] }
 0x17b   : > { %2209 = vmatpush.msrb.mxu0 %v2157_v32  ;;  %2232 = vmatpush.msrb.mxu1 %v2189_v33  ;;  %v1878_v41 = vld [vmem:[#allocation2 + $0xde8] sm:$0xff]  ;;  %v1844_v32 = vld [vmem:[#allocation2 + $0xcd8] sm:$0xff] }
 0x17c   : > { %1773 = vmatpush.msrb.mxu2 %v1673_v34  ;;  %1796 = vmatpush.msrb.mxu3 %v1705_v35  ;;  %v1876_v33 = vld [vmem:[#allocation2 + $0xdd8] sm:$0xff]  ;;  %v4514_v34 = vpop.f32.mrf.mxu0  ;;  %v4516_v35 = vpop.f32.mrf.mxu1 }
 0x17d   : > { %2210 = vmatpush.msrb.mxu0 %v2155_v38  ;;  %2233 = vmatpush.msrb.mxu1 %v2187_v39  ;;  %v4518_v38 = vpop.f32.mrf.mxu2  ;;  %v4520_v39 = vpop.f32.mrf.mxu3 }
 0x17e   : > { %1774 = vmatpush.msrb.mxu2 %v1671_v42  ;;  %1797 = vmatpush.msrb.mxu3 %v1703_v2  ;;  %v1840_v42 = vld [vmem:[#allocation2 + $0xcb8] sm:$0xff] }
 0x17f   : > { %2211 = vmatpush.msrb.mxu0 %v2153_v3  ;;  %2234 = vmatpush.msrb.mxu1 %v2185_v43  ;;  %v1872_v2 = vld [vmem:[#allocation2 + $0xdb8] sm:$0xff]  ;;  %v1838_v3 = vld [vmem:[#allocation2 + $0xca8] sm:$0xff] }
 0x180   : > { %1775 = vmatpush.msrb.mxu2 %v1669_v44  ;;  %1798 = vmatpush.msrb.mxu3 %v1701_v47  ;;  %v1870_v43 = vld [vmem:[#allocation2 + $0xda8] sm:$0xff]  ;;  %v1836_v44 = vld [vmem:[#allocation2 + $0xc98] sm:$0xff] }
 0x181   : > { %2212 = vmatpush.msrb.mxu0 %v2151_v56  ;;  %2235 = vmatpush.msrb.mxu1 %v2183_v57  ;;  %v1868_v47 = vld [vmem:[#allocation2 + $0xd98] sm:$0xff]  ;;  %v1834_v56 = vld [vmem:[#allocation2 + $0xc88] sm:$0xff] }
 0x182   : > { %1776 = vmatpush.msrb.mxu2 %v1667_v54  ;;  %1799 = vmatpush.msrb.mxu3 %v1699_v36  ;;  %v1866_v57 = vld [vmem:[#allocation2 + $0xd88] sm:$0xff]  ;;  %v1864_v36 = vld [vmem:[#allocation2 + $0xd78] sm:$0xff] }
 0x183   : > { %2213 = vmatpush.msrb.mxu0 %v2149_v37  ;;  %2236 = vmatpush.msrb.mxu1 %v2181_v55 }
 0x184   : > { %1777 = vmatpush.msrb.mxu2 %v1665_v58  ;;  %1800 = vmatpush.msrb.mxu3 %v1697_v59  ;;  %v4526_v54 = vpop.f32.mrf.mxu0  ;;  %v1830_v58 = vld [vmem:[#allocation2 + $0xc68] sm:$0xff] }
 0x185   : > { %2214 = vmatpush.msrb.mxu0 %v2147_v62  ;;  %2237 = vmatpush.msrb.mxu1 %v2179_v63  ;;  %v4530_v37 = vpop.f32.mrf.mxu2  ;;  %v4532_v55 = vpop.f32.mrf.mxu3  ;;  %v1862_v59 = vld [vmem:[#allocation2 + $0xd68] sm:$0xff]  ;;  %v1828_v62 = vld [vmem:[#allocation2 + $0xc58] sm:$0xff] }
 0x186   : > { %1778 = vmatpush.msrb.mxu2 %v1663_v0  ;;  %1801 = vmatpush.msrb.mxu3 %v1695_v1  ;;  %v1860_v63 = vld [vmem:[#allocation2 + $0xd58] sm:$0xff]  ;;  %v1826_v0 = vld [vmem:[#allocation2 + $0xc48] sm:$0xff] }
 0x187   : > { %2215 = vmatpush.msrb.mxu0 %v2145_v8  ;;  %2238 = vmatpush.msrb.mxu1 %v2177_v9  ;;  %v1858_v1 = vld [vmem:[#allocation2 + $0xd48] sm:$0xff]  ;;  %v1824_v8 = vld [vmem:[#allocation2 + $0xc38] sm:$0xff] }
 0x188   : > { %1779 = vmatpush.msrb.mxu2 %v1661_v22  ;;  %1802 = vmatpush.msrb.mxu3 %v1693_v23  ;;  %v1856_v9 = vld [vmem:[#allocation2 + $0xd38] sm:$0xff] }
 0x189   : > { %2216 = vmatpush.msrb.mxu0 %v2143_v10  ;;  %2239 = vmatpush.msrb.mxu1 %v2175_v11  ;;  %v1822_v10 = vld [vmem:[#allocation2 + $0xc28] sm:$0xff] }
 0x18a   : > { %1780 = vmatpush.msrb.mxu2 %v1659_v60  ;;  %1803 = vmatpush.msrb.mxu3 %v1691_v61  ;;  %v1854_v11 = vld [vmem:[#allocation2 + $0xd28] sm:$0xff] }
 0x18b   : > { %2217 = vmatpush.msrb.mxu0 %v2141_v14  ;;  %2240 = vmatpush.msrb.mxu1 %v2173_v15  ;;  %v1820_v14 = vld [vmem:[#allocation2 + $0xc18] sm:$0xff] }
 0x18c   : > { %1781 = vmatpush.msrb.mxu2 %v1657_v24  ;;  %1804 = vmatpush.msrb.mxu3 %v1689_v25  ;;  %v4538_v60 = vpop.f32.mrf.mxu0  ;;  %v1852_v15 = vld [vmem:[#allocation2 + $0xd18] sm:$0xff]  ;;  %v1818_v24 = vld [vmem:[#allocation2 + $0xc08] sm:$0xff] }
 0x18d   : > { %1782 = vmatmul.f32.vlgmr.msrb.gmra.mxu2 %v4442_v30  ;;  %1805 = vmatmul.f32.vlgmr.msrb.gmra.mxu3 %v4444_v31  ;;  %v1842_v30 = vld [vmem:[#allocation2 + $0xcc8] sm:$0xff]  ;;  %v4534_v22 = vpop.f32.mrf.mxu2  ;;  %v4536_v23 = vpop.f32.mrf.mxu3 }
 0x18e   : > { %1927 = vmatpush.msra.mxu2 %v1848_v26  ;;  %1950 = vmatpush.msra.mxu3 %v1880_v27  ;;  %v1874_v31 = vld [vmem:[#allocation2 + $0xdc8] sm:$0xff]  ;;  %v2009_v26 = vld [vmem:[#allocation2 + $0xef8] sm:$0xff] }
 0x18f   : > { %2218 = vmatpush.msrb.mxu0 %v2139_v28  ;;  %2241 = vmatpush.msrb.mxu1 %v2171_v29  ;;  %v1850_v25 = vld [vmem:[#allocation2 + $0xd08] sm:$0xff]  ;;  %v2041_v27 = vld [vmem:[#allocation2 + $0xff8] sm:$0xff] }
 0x190   : > { %2219 = vmatmul.f32.vlgmr.msrb.gmra.mxu0 %v4502_v12  ;;  %2242 = vmatmul.f32.vlgmr.msrb.gmra.mxu1 %v4504_v13  ;;  %v2007_v28 = vld [vmem:[#allocation2 + $0xee8] sm:$0xff] }
 0x191   : > { %1928 = vmatpush.msra.mxu2 %v1846_v40  ;;  %1951 = vmatpush.msra.mxu3 %v1878_v41  ;;  %v2039_v29 = vld [vmem:[#allocation2 + $0xfe8] sm:$0xff] }
 0x193   : > { %1929 = vmatpush.msra.mxu2 %v1844_v32  ;;  %1952 = vmatpush.msra.mxu3 %v1876_v33  ;;  %v2005_v32 = vld [vmem:[#allocation2 + $0xed8] sm:$0xff] }
 0x194   : > { %v2037_v33 = vld [vmem:[#allocation2 + $0xfd8] sm:$0xff] }
 0x195   : > { %1930 = vmatpush.msra.mxu2 %v1842_v30  ;;  %1953 = vmatpush.msra.mxu3 %v1874_v31  ;;  %v4544_v40 = vpop.f32.mrf.mxu2  ;;  %v4546_v41 = vpop.f32.mrf.mxu3 }
 0x196   : > { %1785 = vmatmul.f32.gmra.mxu2 %v4450_v50  ;;  %1808 = vmatmul.f32.gmra.mxu3 %v4452_v51  ;;  %v4528_v50 = vpop.f32.mrf.mxu1  ;;  %v1832_v51 = vld [vmem:[#allocation2 + $0xc78] sm:$0xff]  ;;  %v4548_v30 = vpop.f32.mrf.mxu0 }
 0x197   : > { %1931 = vmatpush.msra.mxu2 %v1840_v42  ;;  %1954 = vmatpush.msra.mxu3 %v1872_v2  ;;  %v2003_v42 = vld [vmem:[#allocation2 + $0xec8] sm:$0xff]  ;;  %v2033_v2 = vld [vmem:[#allocation2 + $0xfb8] sm:$0xff] }
 0x198   : > { %2222 = vmatmul.f32.gmra.mxu0 %v4514_v34  ;;  %2245 = vmatmul.f32.gmra.mxu1 %v4516_v35 }
 0x199   : > { %1932 = vmatpush.msra.mxu2 %v1838_v3  ;;  %1955 = vmatpush.msra.mxu3 %v1870_v43  ;;  %v1999_v3 = vld [vmem:[#allocation2 + $0xea8] sm:$0xff] }
 0x19a   : > { %v2031_v43 = vld [vmem:[#allocation2 + $0xfa8] sm:$0xff] }
 0x19b   : > { %1933 = vmatpush.msra.mxu2 %v1836_v44  ;;  %1956 = vmatpush.msra.mxu3 %v1868_v47 }
 0x19d   : > { %1934 = vmatpush.msra.mxu2 %v1834_v56  ;;  %1957 = vmatpush.msra.mxu3 %v1866_v57  ;;  %v1997_v56 = vld [vmem:[#allocation2 + $0xe98] sm:$0xff] }
 0x19e   : > { %v4540_v61 = vpop.f32.mrf.mxu1  ;;  %v2029_v57 = vld [vmem:[#allocation2 + $0xf98] sm:$0xff] }
 0x19f   : > { %1935 = vmatpush.msra.mxu2 %v1832_v51  ;;  %1958 = vmatpush.msra.mxu3 %v1864_v36  ;;  %v1995_v51 = vld [vmem:[#allocation2 + $0xe88] sm:$0xff] }
 0x1a0   : > { %v2027_v36 = vld [vmem:[#allocation2 + $0xf88] sm:$0xff] }
 0x1a1   : > { %1936 = vmatpush.msra.mxu2 %v1830_v58  ;;  %1959 = vmatpush.msra.mxu3 %v1862_v59  ;;  %v4558_v58 = vpop.f32.mrf.mxu0 }
 0x1a3   : > { %1937 = vmatpush.msra.mxu2 %v1828_v62  ;;  %1960 = vmatpush.msra.mxu3 %v1860_v63  ;;  %v1991_v62 = vld [vmem:[#allocation2 + $0xe68] sm:$0xff] }
 0x1a4   : > { %v4554_v44 = vpop.f32.mrf.mxu2  ;;  %v4556_v47 = vpop.f32.mrf.mxu3  ;;  %v2023_v63 = vld [vmem:[#allocation2 + $0xf68] sm:$0xff] }
 0x1a5   : > { %1938 = vmatpush.msra.mxu2 %v1826_v0  ;;  %1961 = vmatpush.msra.mxu3 %v1858_v1  ;;  %v1989_v0 = vld [vmem:[#allocation2 + $0xe58] sm:$0xff] }
 0x1a6   : > { %v4550_v31 = vpop.f32.mrf.mxu1  ;;  %v2021_v1 = vld [vmem:[#allocation2 + $0xf58] sm:$0xff] }
 0x1a7   : > { %1939 = vmatpush.msra.mxu2 %v1824_v8  ;;  %1962 = vmatpush.msra.mxu3 %v1856_v9 }
 0x1a9   : > { %1940 = vmatpush.msra.mxu2 %v1822_v10  ;;  %1963 = vmatpush.msra.mxu3 %v1854_v11  ;;  %v1987_v10 = vld [vmem:[#allocation2 + $0xe48] sm:$0xff] }
 0x1aa   : > { %v2019_v11 = vld [vmem:[#allocation2 + $0xf48] sm:$0xff] }
 0x1ab   : > { %1941 = vmatpush.msra.mxu2 %v1820_v14  ;;  %1964 = vmatpush.msra.mxu3 %v1852_v15  ;;  %v4562_v14 = vpop.permute.xlu0 %999  ;;  %v1985_v15 = vld [vmem:[#allocation2 + $0xe38] sm:$0xff] }
 0x1ad   : > { %1942 = vmatpush.msra.mxu2 %v1818_v24  ;;  %1965 = vmatpush.msra.mxu3 %v1850_v25  ;;  %v2017_v24 = vld [vmem:[#allocation2 + $0xf38] sm:$0xff]  ;;  %v4564_v25 = vpop.f32.mrf.mxu0 }
 0x1ae   : > { %1943 = vmatmul.f32.vlgmr.msra.gmra.mxu2 %v4460_v48  ;;  %1966 = vmatmul.f32.vlgmr.msra.gmra.mxu3 %v4462_v49  ;;  %v2035_v48 = vld [vmem:[#allocation2 + $0xfc8] sm:$0xff]  ;;  %v2001_v49 = vld [vmem:[#allocation2 + $0xeb8] sm:$0xff]  ;;  %v4560_v59 = vpop.f32.mrf.mxu1 }
 0x1af   : > { %2088 = vmatpush.msrb.mxu2 %v2009_v26  ;;  %2111 = vmatpush.msrb.mxu3 %v2041_v27  ;;  %v1303_v8 = vpop.f32.mrf.mxu2  ;;  %v1326_v9 = vpop.f32.mrf.mxu3  ;;  %v1983_v27 = vld [vmem:[#allocation2 + $0xe28] sm:$0xff] }
 0x1b1   : > { %2089 = vmatpush.msrb.mxu2 %v2007_v28  ;;  %2112 = vmatpush.msrb.mxu3 %v2039_v29  ;;  %v2015_v28 = vld [vmem:[#allocation2 + $0xf28] sm:$0xff]  ;;  %v2318_v29 = vld [vmem:[#allocation6 + $0x78] sm:$0xff] }
 0x1b2   : > { %2335 = vmatpush.msra.mxu0 %v2318_v29  ;;  %v2162_v29 = vld [vmem:[#allocation2 + $0x10b8] sm:$0xff] }
 0x1b3   : > { %2090 = vmatpush.msrb.mxu2 %v2005_v32  ;;  %2113 = vmatpush.msrb.mxu3 %v2037_v33  ;;  %v1981_v32 = vld [vmem:[#allocation2 + $0xe18] sm:$0xff] }
 0x1b4   : > { %v2013_v33 = vld [vmem:[#allocation2 + $0xf18] sm:$0xff] }
 0x1b5   : > { %2091 = vmatpush.msrb.mxu2 %v2003_v42  ;;  %2114 = vmatpush.msrb.mxu3 %v2035_v48 }
 0x1b6   : > { %1946 = vmatmul.f32.gmra.mxu2 %v4468_v6  ;;  %1969 = vmatmul.f32.gmra.mxu3 %v4470_v7  ;;  %v1993_v6 = vld [vmem:[#allocation2 + $0xe78] sm:$0xff]  ;;  %v4566_v26 = vpop.f32.mrf.mxu1 }
 0x1b7   : > { %2092 = vmatpush.msrb.mxu2 %v2001_v49  ;;  %2115 = vmatpush.msrb.mxu3 %v2033_v2  ;;  %v2025_v7 = vld [vmem:[#allocation2 + $0xf78] sm:$0xff]  ;;  %v2317_v49 = vld [vmem:[#allocation6 + $0x70] sm:$0xff]  ;;  %v1979_v2 = vld [vmem:[#allocation2 + $0xe08] sm:$0xff] }
 0x1b8   : > { %2336 = vmatpush.msra.mxu0 %v2317_v49  ;;  %v2192_v49 = vld [vmem:[#allocation2 + $0x11a8] sm:$0xff] }
 0x1b9   : > { %2093 = vmatpush.msrb.mxu2 %v1999_v3  ;;  %2116 = vmatpush.msrb.mxu3 %v2031_v43  ;;  %v2011_v3 = vld [vmem:[#allocation2 + $0xf08] sm:$0xff] }
 0x1ba   : > { %v2316_v43 = vld [vmem:[#allocation6 + $0x68] sm:$0xff] }
 0x1bb   : > { %2094 = vmatpush.msrb.mxu2 %v1997_v56  ;;  %2117 = vmatpush.msrb.mxu3 %v2029_v57  ;;  %v995_v56 = vadd.f32 %v4508_v17, %v4506_v16  ;;  %v2170_v57 = vld [vmem:[#allocation2 + $0x10f8] sm:$0xff] }
 0x1bc   : > { %2337 = vmatpush.msra.mxu0 %v2316_v43  ;;  %v2314_v17 = vld [vmem:[#allocation6 + $0x58] sm:$0xff] }
 0x1bd   : > { %2095 = vmatpush.msrb.mxu2 %v1995_v51  ;;  %2118 = vmatpush.msrb.mxu3 %v2027_v36  ;;  %v2202_v51 = vld [vmem:[#allocation2 + $0x11f8] sm:$0xff]  ;;  %v4574_v36 = vpop.permute.xlu0 %1004 }
 0x1be   : > { %v4582_v16 = vpop.f32.mrf.mxu1 }
 0x1bf   : > { %2096 = vmatpush.msrb.mxu2 %v1993_v6  ;;  %2119 = vmatpush.msrb.mxu3 %v2025_v7  ;;  %v2315_v6 = vld [vmem:[#allocation6 + $0x60] sm:$0xff]  ;;  %v1166_v7 = vadd.f32 %v4546_v41, %v4544_v40  ;;  %v2196_v41 = vld [vmem:[#allocation2 + $0x11c8] sm:$0xff] }
 0x1c0   : > { %2338 = vmatpush.msra.mxu0 %v2315_v6  ;;  %v2310_v6 = vld [vmem:[#allocation6 + $0x38] sm:$0xff] }
 0x1c1   : > { %2097 = vmatpush.msrb.mxu2 %v1991_v62  ;;  %2120 = vmatpush.msrb.mxu3 %v2023_v63  ;;  %v2168_v62 = vld [vmem:[#allocation2 + $0x10e8] sm:$0xff] }
 0x1c2   : > { %v2200_v63 = vld [vmem:[#allocation2 + $0x11e8] sm:$0xff]  ;;  %2339 = vmatpush.msra.mxu0 %v2314_v17 }
 0x1c3   : > { %2098 = vmatpush.msrb.mxu2 %v1989_v0  ;;  %2121 = vmatpush.msrb.mxu3 %v2021_v1  ;;  %v4580_v0 = vpop.f32.mrf.mxu0  ;;  %v1010_v1 = vadd.f32 %v4574_v36, %v995_v56  ;;  %v2311_v56 = vld [vmem:[#allocation6 + $0x40] sm:$0xff]  ;;  %v2308_v17 = vld [vmem:[#allocation6 + $0x28] sm:$0xff] }
 0x1c5   : > { %2099 = vmatpush.msrb.mxu2 %v1987_v10  ;;  %2122 = vmatpush.msrb.mxu3 %v2019_v11  ;;  %v1327_v10 = vadd.f32 %v1326_v9, %v1303_v8  ;;  %v2166_v11 = vld [vmem:[#allocation2 + $0x10d8] sm:$0xff]  ;;  %v1171_v40 = vadd.f32 %v1166_v7, %v1010_v1  ;;  %v2312_v8 = vld [vmem:[#allocation6 + $0x48] sm:$0xff] }
 0x1c6   : > { %v2160_v9 = vld [vmem:[#allocation2 + $0x10a8] sm:$0xff]  ;;  %v4591_v43 = vpop.f32.mrf.mxu1 }
 0x1c7   : > { %2100 = vmatpush.msrb.mxu2 %v1985_v15  ;;  %2123 = vmatpush.msrb.mxu3 %v2017_v24  ;;  %v2198_v15 = vld [vmem:[#allocation2 + $0x11d8] sm:$0xff]  ;;  %v2188_v7 = vld [vmem:[#allocation2 + $0x1188] sm:$0xff] }
 0x1c8   : > { %v4568_v42 = vpop.f32.mrf.mxu2  ;;  %v4570_v48 = vpop.f32.mrf.mxu3  ;;  %v2152_v1 = vld [vmem:[#allocation2 + $0x1068] sm:$0xff] }
 0x1c9   : > { %2101 = vmatpush.msrb.mxu2 %v1983_v27  ;;  %2124 = vmatpush.msrb.mxu3 %v2015_v28  ;;  %v1332_v28 = vadd.f32 %v1327_v10, %v1171_v40  ;;  %v2184_v10 = vld [vmem:[#allocation2 + $0x1168] sm:$0xff] }
 0x1cb   : > { %2102 = vmatpush.msrb.mxu2 %v1981_v32  ;;  %2125 = vmatpush.msrb.mxu3 %v2013_v33  ;;  %v2194_v32 = vld [vmem:[#allocation2 + $0x11b8] sm:$0xff] }
 0x1cd   : > { %2103 = vmatpush.msrb.mxu2 %v1979_v2  ;;  %2126 = vmatpush.msrb.mxu3 %v2011_v3  ;;  %v4589_v3 = vpop.f32.mrf.mxu0 }
 0x1ce   : > { %2104 = vmatmul.f32.vlgmr.msrb.gmra.mxu2 %v4476_v18  ;;  %2127 = vmatmul.f32.vlgmr.msrb.gmra.mxu3 %v4478_v19  ;;  %v2313_v18 = vld [vmem:[#allocation6 + $0x50] sm:$0xff]  ;;  %v2164_v19 = vld [vmem:[#allocation2 + $0x10c8] sm:$0xff] }
 0x1cf   : > { %2249 = vmatpush.msra.mxu2 %v2170_v57  ;;  %2272 = vmatpush.msra.mxu3 %v2202_v51  ;;  %v2158_v57 = vld [vmem:[#allocation2 + $0x1098] sm:$0xff] }
 0x1d0   : > { %2340 = vmatpush.msra.mxu0 %v2313_v18  ;;  %v2190_v51 = vld [vmem:[#allocation2 + $0x1198] sm:$0xff] }
 0x1d1   : > { %2250 = vmatpush.msra.mxu2 %v2168_v62  ;;  %2273 = vmatpush.msra.mxu3 %v2200_v63  ;;  %v2154_v62 = vld [vmem:[#allocation2 + $0x1078] sm:$0xff] }
 0x1d2   : > { %2341 = vmatpush.msra.mxu0 %v2312_v8  ;;  %v2186_v63 = vld [vmem:[#allocation2 + $0x1178] sm:$0xff]  ;;  %v2144_v8 = vld [vmem:[#allocation2 + $0x1028] sm:$0xff] }
 0x1d3   : > { %2251 = vmatpush.msra.mxu2 %v2166_v11  ;;  %2274 = vmatpush.msra.mxu3 %v2198_v15  ;;  %v1464_v24 = vpop.f32.mrf.mxu2  ;;  %v1487_v27 = vpop.f32.mrf.mxu3  ;;  %v2307_v11 = vld [vmem:[#allocation6 + $0x20] sm:$0xff]  ;;  %v2150_v15 = vld [vmem:[#allocation2 + $0x1058] sm:$0xff] }
 0x1d4   : > { %v1488_v33 = vadd.f32 %v1487_v27, %v1464_v24  ;;  %2342 = vmatpush.msra.mxu0 %v2311_v56  ;;  %v2182_v18 = vld [vmem:[#allocation2 + $0x1158] sm:$0xff]  ;;  %v2148_v24 = vld [vmem:[#allocation2 + $0x1048] sm:$0xff] }
 0x1d5   : > { %2252 = vmatpush.msra.mxu2 %v2164_v19  ;;  %2275 = vmatpush.msra.mxu3 %v2196_v41  ;;  %v4593_v40 = vpop.f32.mrf.mxu0  ;;  %v4595_v19 = vpop.f32.mrf.mxu1  ;;  %v2306_v41 = vld [vmem:[#allocation6 + $0x18] sm:$0xff]  ;;  %v2180_v27 = vld [vmem:[#allocation2 + $0x1148] sm:$0xff] }
 0x1d6   : > { %2107 = vmatmul.f32.gmra.mxu2 %v4486_v20  ;;  %2130 = vmatmul.f32.gmra.mxu3 %v4488_v21  ;;  %v4587_v2 = vadd.f32 %v1488_v33, %v1332_v28  ;;  %v2156_v20 = vld [vmem:[#allocation2 + $0x1088] sm:$0xff]  ;;  %v2309_v21 = vld [vmem:[#allocation6 + $0x30] sm:$0xff]  ;;  %v2142_v56 = vld [vmem:[#allocation2 + $0x1018] sm:$0xff] }
 0x1d7   : > { %2253 = vmatpush.msra.mxu2 %v2162_v29  ;;  %2276 = vmatpush.msra.mxu3 %v2194_v32  ;;  %v2305_v28 = vld [vmem:[#allocation6 + $0x10] sm:$0xff]  ;;  %v2146_v29 = vld [vmem:[#allocation2 + $0x1038] sm:$0xff]  ;;  %v2304_v33 = vld [vmem:[#allocation6 + $0x8] sm:$0xff] }
 0x1d8   : > { %2343 = vmatpush.msra.mxu0 %v2310_v6  ;;  %v2178_v32 = vld [vmem:[#allocation2 + $0x1138] sm:$0xff] }
 0x1d9   : > { %2254 = vmatpush.msra.mxu2 %v2160_v9  ;;  %2277 = vmatpush.msra.mxu3 %v2192_v49  ;;  %v2176_v9 = vld [vmem:[#allocation2 + $0x1128] sm:$0xff]  ;;  %v2303_v49 = vld [vmem:[#allocation6] sm:$0xff] }
 0x1da   : > { %2344 = vmatpush.msra.mxu0 %v2309_v21  ;;  %v2172_v21 = vld [vmem:[#allocation2 + $0x1108] sm:$0xff] }
 0x1db   : > { %2255 = vmatpush.msra.mxu2 %v2158_v57  ;;  %2278 = vmatpush.msra.mxu3 %v2190_v51  ;;  %v2174_v57 = vld [vmem:[#allocation2 + $0x1118] sm:$0xff] }
 0x1dc   : > { %2345 = vmatpush.msra.mxu0 %v2308_v17  ;;  %v2396_v17 = vld [vmem:[#allocation6 + $0x170] sm:$0xff] }
 0x1dd   : > { %2256 = vmatpush.msra.mxu2 %v2156_v20  ;;  %2279 = vmatpush.msra.mxu3 %v2188_v7  ;;  %v4597_v51 = vpop.f32.mrf.mxu0  ;;  %v4599_v6 = vpop.f32.mrf.mxu1  ;;  %v2478_v20 = vld [vmem:[#allocation6 + $0x278] sm:$0xff]  ;;  %v2140_v7 = vld [vmem:[#allocation2 + $0x1008] sm:$0xff] }
 0x1de   : > { %2346 = vmatpush.msra.mxu0 %v2307_v11  ;;  %v2475_v11 = vld [vmem:[#allocation6 + $0x260] sm:$0xff] }
 0x1df   : > { %2257 = vmatpush.msra.mxu2 %v2154_v62  ;;  %2280 = vmatpush.msra.mxu3 %v2186_v63  ;;  %v2397_v62 = vld [vmem:[#allocation6 + $0x178] sm:$0xff]  ;;  %v2477_v63 = vld [vmem:[#allocation6 + $0x270] sm:$0xff] }
 0x1e0   : > { %2347 = vmatpush.msra.mxu0 %v2306_v41 }
 0x1e1   : > { %2258 = vmatpush.msra.mxu2 %v2152_v1  ;;  %2281 = vmatpush.msra.mxu3 %v2184_v10  ;;  %v2476_v1 = vld [vmem:[#allocation6 + $0x268] sm:$0xff] }
 0x1e2   : > { %2348 = vmatpush.msra.mxu0 %v2305_v28  ;;  %v2395_v10 = vld [vmem:[#allocation6 + $0x168] sm:$0xff] }
 0x1e3   : > { %2259 = vmatpush.msra.mxu2 %v2150_v15  ;;  %2282 = vmatpush.msra.mxu3 %v2182_v18  ;;  %v2394_v15 = vld [vmem:[#allocation6 + $0x160] sm:$0xff]  ;;  %v2474_v18 = vld [vmem:[#allocation6 + $0x258] sm:$0xff]  ;;  %v2472_v28 = vld [vmem:[#allocation6 + $0x248] sm:$0xff] }
 0x1e4   : > { %2349 = vmatpush.msra.mxu0 %v2304_v33  ;;  %v946_v33 = vadd.f32 %v4482_v5, %v4480_v4  ;;  %v1278_v4 = vadd.f32 %v4528_v50, %v4526_v54  ;;  %v1600_v54 = vadd.f32 %v4566_v26, %v4564_v25  ;;  %v2385_v50 = vld [vmem:[#allocation6 + $0x118] sm:$0xff]  ;;  %v1922_v26 = vadd.f32 %v4599_v6, %v4597_v51 }
 0x1e5   : > { %2260 = vmatpush.msra.mxu2 %v2148_v24  ;;  %2283 = vmatpush.msra.mxu3 %v2180_v27  ;;  %v4603_v41 = vpop.f32.mrf.mxu0  ;;  %v4605_v24 = vpop.f32.mrf.mxu1  ;;  %v2393_v27 = vld [vmem:[#allocation6 + $0x158] sm:$0xff] }
 0x1e6   : > { %2350 = vmatpush.msra.mxu0 %v2303_v49 }
 0x1e7   : > { %2261 = vmatpush.msra.mxu2 %v2146_v29  ;;  %2284 = vmatpush.msra.mxu3 %v2178_v32  ;;  %v2391_v29 = vld [vmem:[#allocation6 + $0x148] sm:$0xff]  ;;  %v2471_v32 = vld [vmem:[#allocation6 + $0x240] sm:$0xff] }
 0x1e8   : > { %2495 = vmatpush.msrb.mxu0 %v2478_v20  ;;  %v1007_v20 = vadd.f32 %v4562_v14, %v946_v33 }
 0x1e9   : > { %2262 = vmatpush.msra.mxu2 %v2144_v8  ;;  %2285 = vmatpush.msra.mxu3 %v2176_v9  ;;  %v2390_v8 = vld [vmem:[#allocation6 + $0x140] sm:$0xff]  ;;  %v2470_v9 = vld [vmem:[#allocation6 + $0x238] sm:$0xff] }
 0x1ea   : > { %2496 = vmatpush.msrb.mxu0 %v2477_v63  ;;  %v2467_v63 = vld [vmem:[#allocation6 + $0x220] sm:$0xff] }
 0x1eb   : > { %2263 = vmatpush.msra.mxu2 %v2142_v56  ;;  %2286 = vmatpush.msra.mxu3 %v2174_v57  ;;  %v2469_v57 = vld [vmem:[#allocation6 + $0x230] sm:$0xff] }
 0x1ec   : > { %2497 = vmatpush.msrb.mxu0 %v2476_v1  ;;  %v2466_v1 = vld [vmem:[#allocation6 + $0x218] sm:$0xff] }
 0x1ed   : > { %2264 = vmatpush.msra.mxu2 %v2140_v7  ;;  %2287 = vmatpush.msra.mxu3 %v2172_v21  ;;  %v2059_v49 = vpop.f32.mrf.mxu0  ;;  %v2082_v56 = vpop.f32.mrf.mxu1  ;;  %v2388_v7 = vld [vmem:[#allocation6 + $0x130] sm:$0xff]  ;;  %v2468_v21 = vld [vmem:[#allocation6 + $0x228] sm:$0xff] }
 0x1ee   : > { %2265 = vmatmul.f32.vlgmr.msra.gmra.mxu2 %v4502_v12  ;;  %2288 = vmatmul.f32.vlgmr.msra.gmra.mxu3 %v4504_v13  ;;  %v2473_v12 = vld [vmem:[#allocation6 + $0x250] sm:$0xff] }
 0x1ef   : > { %2414 = vmatpush.msrb.mxu2 %v2397_v62  ;;  %2498 = vmatpush.msrb.mxu0 %v2475_v11  ;;  %v2392_v13 = vld [vmem:[#allocation6 + $0x150] sm:$0xff]  ;;  %v2387_v62 = vld [vmem:[#allocation6 + $0x128] sm:$0xff] }
 0x1f1   : > { %2415 = vmatpush.msrb.mxu2 %v2396_v17  ;;  %2499 = vmatpush.msrb.mxu0 %v2474_v18  ;;  %v2386_v17 = vld [vmem:[#allocation6 + $0x120] sm:$0xff] }
 0x1f3   : > { %2416 = vmatpush.msrb.mxu2 %v2395_v10  ;;  %2500 = vmatpush.msrb.mxu0 %v2473_v12  ;;  %v1120_v10 = vadd.f32 %v4532_v55, %v4530_v37  ;;  %v2464_v12 = vld [vmem:[#allocation6 + $0x208] sm:$0xff]  ;;  %v1281_v37 = vadd.f32 %v4540_v61, %v4538_v60  ;;  %v1603_v60 = vadd.f32 %v4582_v16, %v4580_v0  ;;  %v2556_v0 = vld [vmem:[#allocation6 + $0x360] sm:$0xff] }
 0x1f5   : > { %2417 = vmatpush.msrb.mxu2 %v2394_v15  ;;  %2501 = vmatpush.msrb.mxu0 %v2472_v28  ;;  %v2465_v15 = vld [vmem:[#allocation6 + $0x210] sm:$0xff]  ;;  %v2062_v18 = vpop.f32.mrf.mxu0  ;;  %v2463_v28 = vld [vmem:[#allocation6 + $0x200] sm:$0xff] }
 0x1f6   : > { %2268 = vmatmul.f32.gmra.mxu2 %v4514_v34  ;;  %2291 = vmatmul.f32.gmra.mxu3 %v4516_v35  ;;  %v1117_v34 = vadd.f32 %v4520_v39, %v4518_v38  ;;  %v2389_v35 = vld [vmem:[#allocation6 + $0x138] sm:$0xff]  ;;  %v949_v38 = vadd.f32 %v4494_v46, %v4492_v45  ;;  %v1439_v39 = vadd.f32 %v4550_v31, %v4548_v30  ;;  %v2384_v31 = vld [vmem:[#allocation6 + $0x110] sm:$0xff] }
 0x1f7   : > { %2418 = vmatpush.msrb.mxu2 %v2393_v27  ;;  %2502 = vmatpush.msrb.mxu0 %v2471_v32  ;;  %v2085_v27 = vpop.f32.mrf.mxu1  ;;  %v1761_v30 = vadd.f32 %v4591_v43, %v4589_v3  ;;  %v2083_v43 = vadd.f32 %v2082_v56, %v2059_v49  ;;  %v2559_v32 = vld [vmem:[#allocation6 + $0x378] sm:$0xff]  ;;  %v2557_v49 = vld [vmem:[#allocation6 + $0x368] sm:$0xff] }
 0x1f8   : > { %v1168_v5 = vadd.f32 %v1117_v34, %v1007_v20  ;;  %v1009_v45 = vadd.f32 %v4574_v36, %v949_v38  ;;  %v1442_v36 = vadd.f32 %v4560_v59, %v4558_v58  ;;  %v1764_v34 = vadd.f32 %v4595_v19, %v4593_v40  ;;  %v2553_v38 = vld [vmem:[#allocation6 + $0x348] sm:$0xff] }
 0x1f9   : > { %2419 = vmatpush.msrb.mxu2 %v2392_v13  ;;  %2503 = vmatpush.msrb.mxu0 %v2470_v9  ;;  %v2383_v13 = vld [vmem:[#allocation6 + $0x108] sm:$0xff]  ;;  %v2086_v20 = vadd.f32 %v2085_v27, %v2062_v18 }
 0x1fa   : > { %v1329_v11 = vadd.f32 %v1278_v4, %v1168_v5  ;;  %v1170_v55 = vadd.f32 %v1120_v10, %v1009_v45  ;;  %v2554_v5 = vld [vmem:[#allocation6 + $0x350] sm:$0xff]  ;;  %v2413_v10 = vld [vmem:[#allocation6 + $0x1f8] sm:$0xff]  ;;  %v2549_v18 = vld [vmem:[#allocation6 + $0x328] sm:$0xff] }
 0x1fb   : > { %2420 = vmatpush.msrb.mxu2 %v2391_v29  ;;  %2504 = vmatpush.msrb.mxu0 %v2469_v57  ;;  %v2382_v29 = vld [vmem:[#allocation6 + $0x100] sm:$0xff]  ;;  %v2411_v27 = vld [vmem:[#allocation6 + $0x1e8] sm:$0xff] }
 0x1fc   : > { %v1490_v46 = vadd.f32 %v1439_v39, %v1329_v11  ;;  %v1331_v33 = vadd.f32 %v1281_v37, %v1170_v55  ;;  %v2333_v11 = vld [vmem:[#allocation6 + $0xf0] sm:$0xff]  ;;  %2437 = vmatpush.msrb.mxu3 %v2413_v10  ;;  %v2331_v45 = vld [vmem:[#allocation6 + $0xe0] sm:$0xff]  ;;  %v2545_v37 = vld [vmem:[#allocation6 + $0x308] sm:$0xff]  ;;  %v4639_v55 = vpop.f32.mrf.mxu2 }
 0x1fd   : > { %2421 = vmatpush.msrb.mxu2 %v2390_v8  ;;  %2505 = vmatpush.msrb.mxu0 %v2468_v21  ;;  %v2558_v8 = vld [vmem:[#allocation6 + $0x370] sm:$0xff]  ;;  %v2555_v21 = vld [vmem:[#allocation6 + $0x358] sm:$0xff]  ;;  %v2491_v10 = vld [vmem:[#allocation6 + $0x2e0] sm:$0xff] }
 0x1fe   : > { %v1651_v25 = vadd.f32 %v1600_v54, %v1490_v46  ;;  %v1492_v9 = vadd.f32 %v1442_v36, %v1331_v33  ;;  %v2550_v54 = vld [vmem:[#allocation6 + $0x330] sm:$0xff]  ;;  %v2548_v46 = vld [vmem:[#allocation6 + $0x320] sm:$0xff]  ;;  %v2407_v33 = vld [vmem:[#allocation6 + $0x1c8] sm:$0xff] }
 0x1ff   : > { %2422 = vmatpush.msrb.mxu2 %v2389_v35  ;;  %2506 = vmatpush.msrb.mxu0 %v2467_v63  ;;  %v1925_v35 = vadd.f32 %v4605_v24, %v4603_v41  ;;  %v2552_v24 = vld [vmem:[#allocation6 + $0x340] sm:$0xff] }
 0x200   : > { %v1812_v3 = vadd.f32 %v1761_v30, %v1651_v25  ;;  %v1653_v56 = vadd.f32 %v1603_v60, %v1492_v9  ;;  %v2410_v30 = vld [vmem:[#allocation6 + $0x1e0] sm:$0xff]  ;;  %v4641_v25 = vpop.f32.mrf.mxu3 }
 0x201   : > { %2423 = vmatpush.msrb.mxu2 %v2388_v7  ;;  %2507 = vmatpush.msrb.mxu0 %v2466_v1  ;;  %v2334_v1 = vld [vmem:[#allocation6 + $0xf8] sm:$0xff]  ;;  %v2327_v60 = vld [vmem:[#allocation6 + $0xc0] sm:$0xff] }
 0x202   : > { %v1973_v61 = vadd.f32 %v1922_v26, %v1812_v3  ;;  %v1814_v16 = vadd.f32 %v1764_v34, %v1653_v56  ;;  %2358 = vmatpush.msra.mxu1 %v2334_v1  ;;  %v2544_v26 = vld [vmem:[#allocation6 + $0x300] sm:$0xff]  ;;  %v2325_v34 = vld [vmem:[#allocation6 + $0xb0] sm:$0xff] }
 0x203   : > { %2424 = vmatpush.msrb.mxu2 %v2387_v62  ;;  %2508 = vmatpush.msrb.mxu0 %v2465_v15  ;;  %v2332_v15 = vld [vmem:[#allocation6 + $0xe8] sm:$0xff]  ;;  %v2323_v56 = vld [vmem:[#allocation6 + $0xa0] sm:$0xff] }
 0x204   : > { %v2134_v58 = vadd.f32 %v2083_v43, %v1973_v61  ;;  %v1975_v4 = vadd.f32 %v1925_v35, %v1814_v16  ;;  %2359 = vmatpush.msra.mxu1 %v2333_v11  ;;  %v4643_v36 = vpop.f32.mrf.mxu2  ;;  %v2329_v43 = vld [vmem:[#allocation6 + $0xd0] sm:$0xff]  ;;  %v2406_v61 = vld [vmem:[#allocation6 + $0x1c0] sm:$0xff] }
 0x205   : > { %2425 = vmatpush.msrb.mxu2 %v2386_v17  ;;  %2509 = vmatpush.msrb.mxu0 %v2464_v12  ;;  %v2551_v17 = vld [vmem:[#allocation6 + $0x338] sm:$0xff]  ;;  %v2546_v12 = vld [vmem:[#allocation6 + $0x310] sm:$0xff]  ;;  %v2402_v35 = vld [vmem:[#allocation6 + $0x1a0] sm:$0xff] }
 0x206   : > { %v2136_v62 = vadd.f32 %v2086_v20, %v1975_v4  ;;  %2360 = vmatpush.msra.mxu1 %v2332_v15  ;;  %v2321_v16 = vld [vmem:[#allocation6 + $0x90] sm:$0xff]  ;;  %v2572_v11 = vld [vmem:[#allocation6 + $0x3e0] sm:$0xff] }
 0x207   : > { %2426 = vmatpush.msrb.mxu2 %v2385_v50  ;;  %2510 = vmatpush.msrb.mxu0 %v2463_v28  ;;  %v2412_v50 = vld [vmem:[#allocation6 + $0x1f0] sm:$0xff]  ;;  %v2409_v28 = vld [vmem:[#allocation6 + $0x1d8] sm:$0xff] }
 0x208   : > { %2438 = vmatpush.msrb.mxu3 %v2412_v50  ;;  %2361 = vmatpush.msra.mxu1 %v2331_v45  ;;  %v4645_v3 = vpop.f32.mrf.mxu3  ;;  %v2400_v20 = vld [vmem:[#allocation6 + $0x190] sm:$0xff]  ;;  %v2571_v50 = vld [vmem:[#allocation6 + $0x3d8] sm:$0xff]  ;;  %v2569_v45 = vld [vmem:[#allocation6 + $0x3c8] sm:$0xff] }
 0x209   : > { %2427 = vmatpush.msrb.mxu2 %v2384_v31  ;;  %v2547_v31 = vld [vmem:[#allocation6 + $0x318] sm:$0xff]  ;;  %v2489_v15 = vld [vmem:[#allocation6 + $0x2d0] sm:$0xff] }
 0x20a   : > { %2439 = vmatpush.msrb.mxu3 %v2411_v27  ;;  %v2488_v27 = vld [vmem:[#allocation6 + $0x2c8] sm:$0xff] }
 0x20b   : > { %2428 = vmatpush.msrb.mxu2 %v2383_v13  ;;  %v2330_v13 = vld [vmem:[#allocation6 + $0xd8] sm:$0xff] }
 0x20c   : > { %2440 = vmatpush.msrb.mxu3 %v2410_v30  ;;  %2362 = vmatpush.msra.mxu1 %v2330_v13  ;;  %v2568_v30 = vld [vmem:[#allocation6 + $0x3c0] sm:$0xff]  ;;  %v2485_v13 = vld [vmem:[#allocation6 + $0x2b0] sm:$0xff] }
 0x20d   : > { %2429 = vmatpush.msrb.mxu2 %v2382_v29  ;;  %v2220_v51 = vpop.f32.mrf.mxu0  ;;  %v2243_v6 = vpop.f32.mrf.mxu1  ;;  %v2408_v29 = vld [vmem:[#allocation6 + $0x1d0] sm:$0xff] }
 0x20e   : > { %v2244_v59 = vadd.f32 %v2243_v6, %v2220_v51  ;;  %2441 = vmatpush.msrb.mxu3 %v2409_v28  ;;  %2363 = vmatpush.msra.mxu1 %v2329_v43  ;;  %v2326_v51 = vld [vmem:[#allocation6 + $0xb8] sm:$0xff]  ;;  %v2566_v28 = vld [vmem:[#allocation6 + $0x3b0] sm:$0xff]  ;;  %v2484_v43 = vld [vmem:[#allocation6 + $0x2a8] sm:$0xff] }
 0x20f   : > { %2576 = vmatpush.msra.mxu2 %v2559_v32  ;;  %v2328_v32 = vld [vmem:[#allocation6 + $0xc8] sm:$0xff]  ;;  %v2405_v6 = vld [vmem:[#allocation6 + $0x1b8] sm:$0xff] }
 0x210   : > { %v2295_v57 = vadd.f32 %v2244_v59, %v2134_v58  ;;  %2442 = vmatpush.msrb.mxu3 %v2408_v29  ;;  %2364 = vmatpush.msra.mxu1 %v2328_v32  ;;  %v4649_v9 = vpop.f32.mrf.mxu3  ;;  %v2404_v58 = vld [vmem:[#allocation6 + $0x1b0] sm:$0xff]  ;;  %v2324_v59 = vld [vmem:[#allocation6 + $0xa8] sm:$0xff]  ;;  %v2483_v32 = vld [vmem:[#allocation6 + $0x2a0] sm:$0xff] }
 0x211   : > { %2577 = vmatpush.msra.mxu2 %v2558_v8  ;;  %v4647_v8 = vpop.f32.mrf.mxu2  ;;  %v2565_v29 = vld [vmem:[#allocation6 + $0x3a8] sm:$0xff] }
 0x212   : > { %v2299_v7 = vmax.f32 %v2295_v57, 0.0  ;;  %2443 = vmatpush.msrb.mxu3 %v2407_v33  ;;  %2365 = vmatpush.msra.mxu1 %v2327_v60  ;;  %v2322_v57 = vld [vmem:[#allocation6 + $0x98] sm:$0xff]  ;;  %v2564_v33 = vld [vmem:[#allocation6 + $0x3a0] sm:$0xff] }
 0x213   : > { %2578 = vmatpush.msra.mxu2 %v2557_v49  ;;  %v2403_v49 = vld [vmem:[#allocation6 + $0x1a8] sm:$0xff] }
 0x214   : > { %2351 = vmatmul.f32.vlgmr.msra.gmra.mxu0 %v2299_v7  ;;  %2430 = vmatmul.f32.vlgmr.msrb.gmra.mxu2 %v2299_v7 }
 0x215   : > { %2579 = vmatpush.msra.mxu2 %v2556_v0  ;;  %v2223_v40 = vpop.f32.mrf.mxu0  ;;  %v2246_v19 = vpop.f32.mrf.mxu1  ;;  %2444 = vmatpush.msrb.mxu3 %v2406_v61  ;;  %v2401_v0 = vld [vmem:[#allocation6 + $0x198] sm:$0xff] }
 0x216   : > { %v2247_v63 = vadd.f32 %v2246_v19, %v2223_v40  ;;  %2366 = vmatpush.msra.mxu1 %v2326_v51  ;;  %v2399_v40 = vld [vmem:[#allocation6 + $0x188] sm:$0xff]  ;;  %v2319_v19 = vld [vmem:[#allocation6 + $0x80] sm:$0xff]  ;;  %v992_v51 = vadd.f32 %v4500_v53, %v4498_v52 }
 0x217   : > { %2580 = vmatpush.msra.mxu2 %v2555_v21  ;;  %2445 = vmatpush.msrb.mxu3 %v2405_v6  ;;  %v2482_v6 = vld [vmem:[#allocation6 + $0x298] sm:$0xff]  ;;  %v2479_v52 = vld [vmem:[#allocation6 + $0x280] sm:$0xff] }
 0x218   : > { %v2297_v41 = vadd.f32 %v2247_v63, %v2136_v62  ;;  %2367 = vmatpush.msra.mxu1 %v2325_v34  ;;  %v2494_v62 = vld [vmem:[#allocation6 + $0x2f8] sm:$0xff] }
 0x219   : > { %2581 = vmatpush.msra.mxu2 %v2554_v5  ;;  %2446 = vmatpush.msrb.mxu3 %v2404_v58  ;;  %v4651_v21 = vpop.f32.mrf.mxu2  ;;  %v4653_v4 = vpop.f32.mrf.mxu3  ;;  %v2398_v5 = vld [vmem:[#allocation6 + $0x180] sm:$0xff]  ;;  %v2575_v63 = vld [vmem:[#allocation6 + $0x3f8] sm:$0xff]  ;;  %v2481_v58 = vld [vmem:[#allocation6 + $0x290] sm:$0xff] }
 0x21a   : > { %v2301_v39 = vmax.f32 %v2297_v41, 0.0  ;;  %2368 = vmatpush.msra.mxu1 %v2324_v59  ;;  %v2574_v41 = vld [vmem:[#allocation6 + $0x3f0] sm:$0xff]  ;;  %v2563_v34 = vld [vmem:[#allocation6 + $0x398] sm:$0xff]  ;;  %v1163_v59 = vadd.f32 %v4536_v23, %v4534_v22  ;;  %v1646_v23 = vadd.f32 %v4641_v25, %v4639_v55  ;;  %v1810_v25 = vadd.f32 %v4653_v4, %v4651_v21 }
 0x21b   : > { %2582 = vmatpush.msra.mxu2 %v2553_v38  ;;  %2447 = vmatpush.msrb.mxu3 %v2403_v49  ;;  %v2493_v38 = vld [vmem:[#allocation6 + $0x2f0] sm:$0xff] }
 0x21c   : > { %2354 = vmatmul.f32.gmra.mxu0 %v2301_v39  ;;  %2433 = vmatmul.f32.gmra.mxu2 %v2301_v39  ;;  %v2562_v49 = vld [vmem:[#allocation6 + $0x390] sm:$0xff] }
 0x21d   : > { %2583 = vmatpush.msra.mxu2 %v2552_v24  ;;  %2369 = vmatpush.msra.mxu1 %v2323_v56  ;;  %v2492_v24 = vld [vmem:[#allocation6 + $0x2e8] sm:$0xff] }
 0x21e   : > { %2448 = vmatpush.msrb.mxu3 %v2402_v35  ;;  %v2480_v56 = vld [vmem:[#allocation6 + $0x288] sm:$0xff]  ;;  %v1008_v35 = vadd.f32 %v4562_v14, %v992_v51 }
 0x21f   : > { %2584 = vmatpush.msra.mxu2 %v2551_v17  ;;  %2370 = vmatpush.msra.mxu1 %v2322_v57  ;;  %v1324_v57 = vadd.f32 %v4556_v47, %v4554_v44  ;;  %v1807_v47 = vadd.f32 %v4649_v9, %v4647_v8 }
 0x220   : > { %2449 = vmatpush.msrb.mxu3 %v2401_v0  ;;  %v2561_v0 = vld [vmem:[#allocation6 + $0x388] sm:$0xff]  ;;  %v1169_v53 = vadd.f32 %v1163_v59, %v1008_v35 }
 0x221   : > { %2585 = vmatpush.msra.mxu2 %v2550_v54  ;;  %2371 = vmatpush.msra.mxu1 %v2321_v16  ;;  %v2490_v54 = vld [vmem:[#allocation6 + $0x2d8] sm:$0xff]  ;;  %v1485_v16 = vadd.f32 %v4570_v48, %v4568_v42 }
 0x222   : > { %2450 = vmatpush.msrb.mxu3 %v2400_v20  ;;  %v2560_v20 = vld [vmem:[#allocation6 + $0x380] sm:$0xff]  ;;  %v1330_v22 = vadd.f32 %v1324_v57, %v1169_v53  ;;  %v2679_v53 = vld [vmem:[#allocation4 + $0x38] sm:$0xff] }
 0x223   : > { %2586 = vmatpush.msra.mxu2 %v2549_v18  ;;  %v2570_v18 = vld [vmem:[#allocation6 + $0x3d0] sm:$0xff] }
 0x224   : > { %2511 = vmatmul.f32.vlgmr.msrb.gmra.mxu0 %v2299_v7  ;;  %2451 = vmatpush.msrb.mxu3 %v2399_v40  ;;  %v1491_v44 = vadd.f32 %v1485_v16, %v1330_v22  ;;  %v2678_v16 = vld [vmem:[#allocation4 + $0x30] sm:$0xff]  ;;  %v2677_v22 = vld [vmem:[#allocation4 + $0x28] sm:$0xff] }
 0x225   : > { %2587 = vmatpush.msra.mxu2 %v2548_v46  ;;  %v2487_v46 = vld [vmem:[#allocation6 + $0x2c0] sm:$0xff] }
 0x226   : > { %2452 = vmatpush.msrb.mxu3 %v2398_v5  ;;  %v1652_v40 = vadd.f32 %v1646_v23, %v1491_v44  ;;  %v1649_v5 = vadd.f32 %v4645_v3, %v4643_v36  ;;  %v2717_v23 = vld [vmem:[#allocation4 + $0x70] sm:$0xff] }
 0x227   : > { %2588 = vmatpush.msra.mxu2 %v2547_v31  ;;  %v2750_v44 = vld [vmem:[#allocation4 + $0xb0] sm:$0xff] }
 0x228   : > { %2599 = vmatpush.msra.mxu3 %v2575_v63  ;;  %v1813_v42 = vadd.f32 %v1807_v47, %v1652_v40  ;;  %v2676_v47 = vld [vmem:[#allocation4 + $0x20] sm:$0xff]  ;;  %v2749_v40 = vld [vmem:[#allocation4 + $0xa8] sm:$0xff] }
 0x229   : > { %2589 = vmatpush.msra.mxu2 %v2546_v12 }
 0x22a   : > { %2600 = vmatpush.msra.mxu3 %v2574_v41 }
 0x22b   : > { %2590 = vmatpush.msra.mxu2 %v2545_v37  ;;  %v2486_v37 = vld [vmem:[#allocation6 + $0x2b8] sm:$0xff] }
 0x22c   : > { %2514 = vmatmul.f32.gmra.mxu0 %v2301_v39 }
 0x22d   : > { %2591 = vmatpush.msra.mxu2 %v2544_v26  ;;  %v2567_v26 = vld [vmem:[#allocation6 + $0x3b8] sm:$0xff] }
 0x22e   : > { %2592 = vmatmul.f32.vlgmr.msra.gmra.mxu2 %v2299_v7  ;;  %v2320_v7 = vld [vmem:[#allocation6 + $0x88] sm:$0xff] }
 0x22f   : > { %2372 = vmatpush.msra.mxu1 %v2320_v7 }
 0x231   : > { %2373 = vmatpush.msra.mxu1 %v2319_v19  ;;  %v4655_v17 = vpop.f32.mrf.mxu2  ;;  %v4657_v1 = vpop.f32.mrf.mxu3 }
 0x232   : > { %v1968_v19 = vadd.f32 %v4657_v1, %v4655_v17 }
 0x233   : > { %2518 = vmatpush.msrb.mxu1 %v2494_v62 }
 0x234   : > { %v1974_v62 = vadd.f32 %v1968_v19, %v1813_v42  ;;  %v616_v19 = vld [vmem:[%s4796_s3 + $0x8] sm:$0xff] }
 0x235   : > { %2519 = vmatpush.msrb.mxu1 %v2493_v38  ;;  %v2715_v42 = vld [vmem:[#allocation4 + $0x60] sm:$0xff] }
 0x236   : > { %2595 = vmatmul.f32.gmra.mxu2 %v2301_v39  ;;  %v2573_v39 = vld [vmem:[#allocation6 + $0x3e8] sm:$0xff] }
 0x237   : > { %2520 = vmatpush.msrb.mxu1 %v2492_v24  ;;  %2601 = vmatpush.msra.mxu3 %v2573_v39  ;;  %v1654_v24 = vadd.f32 %v1649_v5, %v4587_v2  ;;  %v2748_v5 = vld [vmem:[#allocation4 + $0xa0] sm:$0xff] }
 0x239   : > { %2521 = vmatpush.msrb.mxu1 %v2491_v10  ;;  %2602 = vmatpush.msra.mxu3 %v2572_v11  ;;  %v4659_v31 = vpop.f32.mrf.mxu2  ;;  %v1970_v12 = vpop.f32.mrf.mxu3  ;;  %v1815_v39 = vadd.f32 %v1810_v25, %v1654_v24  ;;  %v2713_v25 = vld [vmem:[#allocation4 + $0x50] sm:$0xff]  ;;  %v2712_v24 = vld [vmem:[#allocation4 + $0x48] sm:$0xff] }
 0x23a   : > { %v1971_v8 = vadd.f32 %v1970_v12, %v4659_v31 }
 0x23b   : > { %2522 = vmatpush.msrb.mxu1 %v2490_v54  ;;  %2603 = vmatpush.msra.mxu3 %v2571_v50 }
 0x23c   : > { %v1976_v10 = vadd.f32 %v1971_v8, %v1815_v39  ;;  %v2672_v8 = vld [vmem:[#allocation4] sm:$0xff]  ;;  %v2784_v39 = vld [vmem:[#allocation4 + $0xf8] sm:$0xff] }
 0x23d   : > { %2523 = vmatpush.msrb.mxu1 %v2489_v15  ;;  %2604 = vmatpush.msra.mxu3 %v2570_v18 }
 0x23f   : > { %2524 = vmatpush.msrb.mxu1 %v2488_v27  ;;  %2605 = vmatpush.msra.mxu3 %v2569_v45 }
 0x241   : > { %2525 = vmatpush.msrb.mxu1 %v2487_v46  ;;  %2606 = vmatpush.msra.mxu3 %v2568_v30 }
 0x243   : > { %2526 = vmatpush.msrb.mxu1 %v2486_v37  ;;  %2607 = vmatpush.msra.mxu3 %v2567_v26 }
 0x245   : > { %2527 = vmatpush.msrb.mxu1 %v2485_v13  ;;  %2608 = vmatpush.msra.mxu3 %v2566_v28 }
 0x247   : > { %2528 = vmatpush.msrb.mxu1 %v2484_v43  ;;  %2609 = vmatpush.msra.mxu3 %v2565_v29 }
 0x249   : > { %2529 = vmatpush.msrb.mxu1 %v2483_v32  ;;  %2610 = vmatpush.msra.mxu3 %v2564_v33 }
 0x24b   : > { %2530 = vmatpush.msrb.mxu1 %v2482_v6  ;;  %2611 = vmatpush.msra.mxu3 %v2563_v34 }
 0x24d   : > { %2531 = vmatpush.msrb.mxu1 %v2481_v58  ;;  %2612 = vmatpush.msra.mxu3 %v2562_v49 }
 0x24f   : > { %2532 = vmatpush.msrb.mxu1 %v2480_v56  ;;  %2613 = vmatpush.msra.mxu3 %v2561_v0 }
 0x251   : > { %v2105_v60 = vpop.f32.mrf.mxu2  ;;  %v2128_v61 = vpop.f32.mrf.mxu3  ;;  %2533 = vmatpush.msrb.mxu1 %v2479_v52  ;;  %2614 = vmatpush.msra.mxu3 %v2560_v20  ;;  %v615_v52 = vld [vmem:[%s4796_s3] sm:$0xff] }
 0x252   : > { %v2129_v48 = vadd.f32 %v2128_v61, %v2105_v60  ;;  %v2718_v20 = vld [vmem:[#allocation4 + $0x78] sm:$0xff] }
 0x253   : > { %2730 = vmatpush.msrb.mxu2 %v2718_v20  ;;  %v630_v20 = vld [vmem:[%s4799_s6 + $0x8] sm:$0xff] }
 0x254   : > { %v2135_v38 = vadd.f32 %v2129_v48, %v1974_v62  ;;  %v2675_v48 = vld [vmem:[#allocation4 + $0x18] sm:$0xff] }
 0x255   : > { %2731 = vmatpush.msrb.mxu2 %v2717_v23  ;;  %v2714_v62 = vld [vmem:[#allocation4 + $0x58] sm:$0xff]  ;;  %v2948_v23 = vld [vmem:[#allocation4 + $0x230] sm:$0xff] }
 0x259   : > { %v2108_v14 = vpop.f32.mrf.mxu2  ;;  %v2131_v7 = vpop.f32.mrf.mxu3 }
 0x25a   : > { %v2132_v17 = vadd.f32 %v2131_v7, %v2108_v14  ;;  %v2751_v14 = vld [vmem:[#allocation4 + $0xb8] sm:$0xff]  ;;  %v2716_v7 = vld [vmem:[#allocation4 + $0x68] sm:$0xff] }
 0x25b   : > { %2732 = vmatpush.msrb.mxu2 %v2716_v7  ;;  %v2947_v7 = vld [vmem:[#allocation4 + $0x228] sm:$0xff] }
 0x25c   : > { %v2137_v11 = vadd.f32 %v2132_v17, %v1976_v10  ;;  %v2783_v17 = vld [vmem:[#allocation4 + $0xf0] sm:$0xff] }
 0x25d   : > { %2733 = vmatpush.msrb.mxu2 %v2715_v42  ;;  %v618_v10 = vld [vmem:[%s4796_s3 + $0x18] sm:$0xff] }
 0x25e   : > { %v2878_v42 = vld [vmem:[#allocation4 + $0x190] sm:$0xff] }
 0x25f   : > { %2734 = vmatpush.msrb.mxu2 %v2714_v62  ;;  %v2944_v62 = vld [vmem:[#allocation4 + $0x210] sm:$0xff] }
 0x261   : > { %2735 = vmatpush.msrb.mxu2 %v2713_v25  ;;  %v2942_v25 = vld [vmem:[#allocation4 + $0x200] sm:$0xff] }
 0x263   : > { %2736 = vmatpush.msrb.mxu2 %v2712_v24 }
 0x271   : > { %v2266_v63 = vpop.f32.mrf.mxu2  ;;  %v2289_v55 = vpop.f32.mrf.mxu3 }
 0x272   : > { %v2290_v41 = vadd.f32 %v2289_v55, %v2266_v63  ;;  %v2674_v63 = vld [vmem:[#allocation4 + $0x10] sm:$0xff]  ;;  %v2747_v55 = vld [vmem:[#allocation4 + $0x98] sm:$0xff] }
 0x274   : > { %v2296_v9 = vadd.f32 %v2290_v41, %v2135_v38  ;;  %v2673_v38 = vld [vmem:[#allocation4 + $0x8] sm:$0xff]  ;;  %v2746_v41 = vld [vmem:[#allocation4 + $0x90] sm:$0xff] }
 0x276   : > { %v2300_v1 = vmax.f32 %v2296_v9, 0.0  ;;  %v617_v9 = vld [vmem:[%s4796_s3 + $0x10] sm:$0xff] }
 0x278   : > { %2374 = vmatmul.f32.vlgmr.msra.gmra.mxu1 %v2300_v1  ;;  %2453 = vmatmul.f32.vlgmr.msrb.gmra.mxu3 %v2300_v1 }
 0x279   : > { %v2269_v36 = vpop.f32.mrf.mxu2  ;;  %v2292_v3 = vpop.f32.mrf.mxu3  ;;  %2692 = vmatpush.msra.mxu1 %v2679_v53  ;;  %2763 = vmatpush.msrb.mxu3 %v2751_v14  ;;  %v2882_v53 = vld [vmem:[#allocation4 + $0x1b0] sm:$0xff]  ;;  %v2880_v14 = vld [vmem:[#allocation4 + $0x1a0] sm:$0xff] }
 0x27a   : > { %v2293_v54 = vadd.f32 %v2292_v3, %v2269_v36  ;;  %v619_v36 = vld [vmem:[%s4796_s3 + $0x20] sm:$0xf]  ;;  %v2711_v3 = vld [vmem:[#allocation4 + $0x40] sm:$0xff] }
 0x27b   : > { %2693 = vmatpush.msra.mxu1 %v2678_v16  ;;  %2764 = vmatpush.msrb.mxu3 %v2750_v44  ;;  %v2949_v16 = vld [vmem:[#allocation4 + $0x238] sm:$0xff] }
 0x27c   : > { %v2298_v50 = vadd.f32 %v2293_v54, %v2137_v11  ;;  %v2745_v11 = vld [vmem:[#allocation4 + $0x88] sm:$0xff]  ;;  %v2781_v54 = vld [vmem:[#allocation4 + $0xe0] sm:$0xff]  ;;  %2737 = vmatpush.msrb.mxu2 %v2711_v3  ;;  %v2879_v44 = vld [vmem:[#allocation4 + $0x198] sm:$0xff] }
 0x27d   : > { %2694 = vmatpush.msra.mxu1 %v2677_v22  ;;  %2765 = vmatpush.msrb.mxu3 %v2749_v40  ;;  %v2881_v22 = vld [vmem:[#allocation4 + $0x1a8] sm:$0xff]  ;;  %v3013_v3 = vld [vmem:[#allocation7 + $0x70] sm:$0xff] }
 0x27e   : > { %v2302_v15 = vmax.f32 %v2298_v50, 0.0  ;;  %v2817_v50 = vld [vmem:[#allocation4 + $0x138] sm:$0xff] }
 0x27f   : > { %2695 = vmatpush.msra.mxu1 %v2676_v47  ;;  %2766 = vmatpush.msrb.mxu3 %v2748_v5  ;;  %v2946_v47 = vld [vmem:[#allocation4 + $0x220] sm:$0xff]  ;;  %v2877_v5 = vld [vmem:[#allocation4 + $0x188] sm:$0xff] }
 0x280   : > { %2377 = vmatmul.f32.gmra.mxu1 %v2302_v15  ;;  %2456 = vmatmul.f32.gmra.mxu3 %v2302_v15 }
 0x281   : > { %2696 = vmatpush.msra.mxu1 %v2675_v48  ;;  %2767 = vmatpush.msrb.mxu3 %v2747_v55  ;;  %v2945_v48 = vld [vmem:[#allocation4 + $0x218] sm:$0xff]  ;;  %v2943_v55 = vld [vmem:[#allocation4 + $0x208] sm:$0xff] }
 0x282   : > { %2829 = vmatpush.msra.mxu2 %v2817_v50  ;;  %v2980_v50 = vld [vmem:[#allocation7 + $0x28] sm:$0xff] }
 0x283   : > { %2697 = vmatpush.msra.mxu1 %v2674_v63  ;;  %2768 = vmatpush.msrb.mxu3 %v2746_v41  ;;  %v2876_v63 = vld [vmem:[#allocation4 + $0x180] sm:$0xff] }
 0x285   : > { %2698 = vmatpush.msra.mxu1 %v2673_v38  ;;  %2769 = vmatpush.msrb.mxu3 %v2745_v11  ;;  %v3043_v11 = vld [vmem:[#allocation7 + $0xb0] sm:$0xff] }
 0x287   : > { %2699 = vmatpush.msra.mxu1 %v2672_v8 }
 0x288   : > { %2534 = vmatmul.f32.vlgmr.msrb.gmra.mxu1 %v2300_v1  ;;  %2615 = vmatmul.f32.vlgmr.msra.gmra.mxu3 %v2300_v1  ;;  %v2782_v1 = vld [vmem:[#allocation4 + $0xe8] sm:$0xff] }
 0x289   : > { %2796 = vmatpush.msrb.mxu1 %v2784_v39  ;;  %v2982_v39 = vld [vmem:[#allocation7 + $0x38] sm:$0xff] }
 0x28b   : > { %2797 = vmatpush.msrb.mxu1 %v2783_v17  ;;  %v3014_v17 = vld [vmem:[#allocation7 + $0x78] sm:$0xff] }
 0x28d   : > { %2798 = vmatpush.msrb.mxu1 %v2782_v1  ;;  %v3044_v1 = vld [vmem:[#allocation7 + $0xb8] sm:$0xff] }
 0x28f   : > { %2799 = vmatpush.msrb.mxu1 %v2781_v54  ;;  %v3073_v54 = vld [vmem:[#allocation7 + $0xf0] sm:$0xff] }
 0x290   : > { %2537 = vmatmul.f32.gmra.mxu1 %v2302_v15  ;;  %2618 = vmatmul.f32.gmra.mxu3 %v2302_v15  ;;  %v2744_v15 = vld [vmem:[#allocation4 + $0x80] sm:$0xff] }
 0x291   : > { %v2352_v2 = vpop.f32.mrf.mxu0  ;;  %2770 = vmatpush.msrb.mxu3 %v2744_v15  ;;  %v3012_v15 = vld [vmem:[#allocation7 + $0x68] sm:$0xff] }
 0x297   : > { %v2431_v4 = vpop.f32.mrf.mxu2 }
 0x299   : > { %v2355_v18 = vpop.f32.mrf.mxu0 }
 0x29f   : > { %v2434_v46 = vpop.f32.mrf.mxu2 }
 0x2a1   : > { %v2512_v31 = vpop.f32.mrf.mxu0 }
 0x2a9   : > { %v2515_v43 = vpop.f32.mrf.mxu0 }
 0x2b1   : > { %v2593_v37 = vpop.f32.mrf.mxu2 }
 0x2b9   : > { %v2596_v6 = vpop.f32.mrf.mxu2 }
 0x2f5   : > { %v2375_v21 = vpop.f32.mrf.mxu1 }
 0x2f6   : > { %v2376_v60 = vadd.f32 %v2375_v21, %v2352_v2  ;;  %v2780_v2 = vld [vmem:[#allocation4 + $0xd8] sm:$0xff]  ;;  %v2816_v21 = vld [vmem:[#allocation4 + $0x130] sm:$0xff] }
 0x2f7   : > { %2800 = vmatpush.msrb.mxu1 %v2780_v2  ;;  %2830 = vmatpush.msra.mxu2 %v2816_v21  ;;  %v3042_v2 = vld [vmem:[#allocation7 + $0xa8] sm:$0xff] }
 0x2f8   : > { %v3072_v21 = vld [vmem:[#allocation7 + $0xe8] sm:$0xff] }
 0x2fb   : > { %v2454_v27 = vpop.f32.mrf.mxu3 }
 0x2fc   : > { %v2455_v29 = vadd.f32 %v2454_v27, %v2431_v4  ;;  %v2850_v4 = vld [vmem:[#allocation4 + $0x178] sm:$0xff]  ;;  %v2815_v27 = vld [vmem:[#allocation4 + $0x128] sm:$0xff] }
 0x2fd   : > { %v2378_v45 = vpop.f32.mrf.mxu1  ;;  %2862 = vmatpush.msra.mxu3 %v2850_v4  ;;  %2831 = vmatpush.msra.mxu2 %v2815_v27  ;;  %v2979_v4 = vld [vmem:[#allocation7 + $0x20] sm:$0xff] }
 0x2fe   : > { %v2379_v32 = vadd.f32 %v2378_v45, %v2355_v18  ;;  %v2460_v58 = vmax.f32 %v2376_v60, %v2455_v29  ;;  %v2779_v18 = vld [vmem:[#allocation4 + $0xd0] sm:$0xff]  ;;  %v2846_v29 = vld [vmem:[#allocation4 + $0x158] sm:$0xff]  ;;  %v3041_v27 = vld [vmem:[#allocation7 + $0xa0] sm:$0xff] }
 0x2ff   : > { %v2849_v45 = vld [vmem:[#allocation4 + $0x170] sm:$0xff]  ;;  %2801 = vmatpush.msrb.mxu1 %v2779_v18  ;;  %v3011_v18 = vld [vmem:[#allocation7 + $0x60] sm:$0xff] }
 0x300   : > { %2863 = vmatpush.msra.mxu3 %v2849_v45  ;;  %v2915_v60 = vld [vmem:[#allocation4 + $0x1f0] sm:$0xff]  ;;  %v3071_v45 = vld [vmem:[#allocation7 + $0xe0] sm:$0xff] }
 0x303   : > { %v2457_v30 = vpop.f32.mrf.mxu3 }
 0x304   : > { %v2458_v28 = vadd.f32 %v2457_v30, %v2434_v46  ;;  %v2778_v46 = vld [vmem:[#allocation4 + $0xc8] sm:$0xff]  ;;  %v2814_v30 = vld [vmem:[#allocation4 + $0x120] sm:$0xff] }
 0x305   : > { %v2535_v12 = vpop.f32.mrf.mxu1  ;;  %2802 = vmatpush.msrb.mxu1 %v2778_v46  ;;  %2832 = vmatpush.msra.mxu2 %v2814_v30  ;;  %v2978_v46 = vld [vmem:[#allocation7 + $0x18] sm:$0xff] }
 0x306   : > { %v2461_v61 = vmax.f32 %v2379_v32, %v2458_v28  ;;  %v2536_v51 = vadd.f32 %v2535_v12, %v2512_v31  ;;  %v2848_v31 = vld [vmem:[#allocation4 + $0x168] sm:$0xff]  ;;  %v2777_v12 = vld [vmem:[#allocation4 + $0xc0] sm:$0xff]  ;;  %v620_v28 = vld [vmem:[%s4797_s4] sm:$0xf] }
 0x307   : > { %2864 = vmatpush.msra.mxu3 %v2848_v31  ;;  %2803 = vmatpush.msrb.mxu1 %v2777_v12  ;;  %v2811_v32 = vld [vmem:[#allocation4 + $0x108] sm:$0xff]  ;;  %v3010_v30 = vld [vmem:[#allocation7 + $0x58] sm:$0xff] }
 0x308   : > { %v2541_v35 = vmax.f32 %v2460_v58, %v2536_v51  ;;  %2706 = vperm.xlu1 %3906, %v620_v28   ;;  %v2844_v51 = vld [vmem:[#allocation4 + $0x148] sm:$0xff]  ;;  %v2913_v58 = vld [vmem:[#allocation4 + $0x1e0] sm:$0xff]  ;;  %v3040_v31 = vld [vmem:[#allocation7 + $0x98] sm:$0xff] }
 0x309   : > { %v3070_v12 = vld [vmem:[#allocation7 + $0xd8] sm:$0xff]  ;;  %v3069_v28 = vld [vmem:[#allocation7 + $0xd0] sm:$0xff] }
 0x30b   : > { %v2616_v26 = vpop.f32.mrf.mxu3 }
 0x30c   : > { %v2617_v59 = vadd.f32 %v2616_v26, %v2593_v37  ;;  %v2813_v37 = vld [vmem:[#allocation4 + $0x118] sm:$0xff]  ;;  %v2847_v26 = vld [vmem:[#allocation4 + $0x160] sm:$0xff] }
 0x30d   : > { %v2538_v13 = vpop.f32.mrf.mxu1  ;;  %2833 = vmatpush.msra.mxu2 %v2813_v37  ;;  %2865 = vmatpush.msra.mxu3 %v2847_v26  ;;  %v2977_v37 = vld [vmem:[#allocation7 + $0x10] sm:$0xff] }
 0x30e   : > { %v2539_v33 = vadd.f32 %v2538_v13, %v2515_v43  ;;  %v2622_v0 = vmax.f32 %v2541_v35, %v2617_v59  ;;  %v2916_v13 = vld [vmem:[#allocation4 + $0x1f8] sm:$0xff]  ;;  %v2812_v43 = vld [vmem:[#allocation4 + $0x110] sm:$0xff]  ;;  %v2909_v35 = vld [vmem:[#allocation4 + $0x1c0] sm:$0xff] }
 0x30f   : > { %2834 = vmatpush.msra.mxu2 %v2812_v43  ;;  %2866 = vmatpush.msra.mxu3 %v2846_v29  ;;  %v2912_v59 = vld [vmem:[#allocation4 + $0x1d8] sm:$0xff]  ;;  %v3009_v26 = vld [vmem:[#allocation7 + $0x50] sm:$0xff]  ;;  %v2976_v43 = vld [vmem:[#allocation7 + $0x8] sm:$0xff] }
 0x310   : > { %v2542_v49 = vmax.f32 %v2461_v61, %v2539_v33  ;;  %v2845_v33 = vld [vmem:[#allocation4 + $0x150] sm:$0xff]  ;;  %v2810_v61 = vld [vmem:[#allocation4 + $0x100] sm:$0xff]  ;;  %3202 = vperm.xlu1 %3906, %v630_v20   ;;  %v3008_v29 = vld [vmem:[#allocation7 + $0x48] sm:$0xff] }
 0x311   : > { %2835 = vmatpush.msra.mxu2 %v2811_v32  ;;  %2867 = vmatpush.msra.mxu3 %v2845_v33  ;;  %v3038_v32 = vld [vmem:[#allocation7 + $0x88] sm:$0xff] }
 0x312   : > { %v3068_v33 = vld [vmem:[#allocation7 + $0xc8] sm:$0xff] }
 0x313   : > { %v2619_v34 = vpop.f32.mrf.mxu3  ;;  %2836 = vmatpush.msra.mxu2 %v2810_v61  ;;  %2868 = vmatpush.msra.mxu3 %v2844_v51  ;;  %v3007_v61 = vld [vmem:[#allocation7 + $0x40] sm:$0xff] }
 0x314   : > { %v2620_v56 = vadd.f32 %v2619_v34, %v2596_v6  ;;  %v2914_v6 = vld [vmem:[#allocation4 + $0x1e8] sm:$0xff]  ;;  %v2843_v34 = vld [vmem:[#allocation4 + $0x140] sm:$0xff] }
 0x315   : > { %2869 = vmatpush.msra.mxu3 %v2843_v34  ;;  %v3037_v51 = vld [vmem:[#allocation7 + $0x80] sm:$0xff] }
 0x316   : > { %v2623_v57 = vmax.f32 %v2542_v49, %v2620_v56  ;;  %v2911_v49 = vld [vmem:[#allocation4 + $0x1d0] sm:$0xff]  ;;  %v2910_v56 = vld [vmem:[#allocation4 + $0x1c8] sm:$0xff] }
 0x318   : > { %2654 = vmatpush.msra.mxu0 %v2623_v57  ;;  %v2883_v57 = vld [vmem:[#allocation4 + $0x1b8] sm:$0xff] }
 0x31a   : > { %2655 = vmatpush.msra.mxu0 %v2622_v0 }
 0x31b   : > { %3782 = vmatmul.msk.f32.vlgmr.msra.gmra.mxu0 %vm2624_vm2, %v615_v52 }
 0x31c   : > { %2928 = vmatpush.msrb.mxu0 %v2916_v13  ;;  %v3039_v13 = vld [vmem:[#allocation7 + $0x90] sm:$0xff] }
 0x31e   : > { %2929 = vmatpush.msrb.mxu0 %v2915_v60  ;;  %v2975_v60 = vld [vmem:[#allocation7] sm:$0xff] }
 0x320   : > { %2930 = vmatpush.msrb.mxu0 %v2914_v6  ;;  %v3067_v6 = vld [vmem:[#allocation7 + $0xc0] sm:$0xff] }
 0x322   : > { %2931 = vmatpush.msrb.mxu0 %v2913_v58 }
 0x323   : > { %3783 = vmatmul.msk.f32.gmra.mxu0 %vm2624_vm2, %v616_v19 }
 0x324   : > { %2932 = vmatpush.msrb.mxu0 %v2912_v59 }
 0x326   : > { %2933 = vmatpush.msrb.mxu0 %v2911_v49 }
 0x328   : > { %2934 = vmatpush.msrb.mxu0 %v2910_v56 }
 0x32a   : > { %2935 = vmatpush.msrb.mxu0 %v2909_v35 }
 0x32b   : > { %3784 = vmatmul.msk.f32.gmra.mxu0 %vm2624_vm2, %v617_v9 }
 0x32c   : > { %3053 = vmatpush.msra.mxu0 %v3044_v1  ;;  %v627_v1 = vld [vmem:[%s4798_s5 + $0x30] sm:$0xff] }
 0x32e   : > { %3054 = vmatpush.msra.mxu0 %v3043_v11  ;;  %v3208_v11 = vld [vmem:[#allocation9 + $0x10] sm:$0xff] }
 0x330   : > { %3055 = vmatpush.msra.mxu0 %v3042_v2  ;;  %v629_v2 = vld [vmem:[%s4799_s6] sm:$0xff] }
 0x331   : > { %3197 = vperm.xlu2 %3907, %v629_v2   ;;  %v3417_v2 = vld [vmem:[#allocation10 + $0xd0] sm:$0xff] }
 0x332   : > { %3056 = vmatpush.msra.mxu0 %v3041_v27  ;;  %v3276_v27 = vld [vmem:[#allocation9 + $0x30] sm:$0xff] }
 0x333   : > { %3785 = vmatmul.msk.f32.gmra.mxu0 %vm2624_vm2, %v618_v10  ;;  %v3074_v10 = vld [vmem:[#allocation7 + $0xf8] sm:$0xff] }
 0x334   : > { %3057 = vmatpush.msra.mxu0 %v3040_v31 }
 0x336   : > { %3058 = vmatpush.msra.mxu0 %v3039_v13 }
 0x338   : > { %3059 = vmatpush.msra.mxu0 %v3038_v32  ;;  %v3544_v32 = vld [vmem:[#allocation10 + $0x1e8] sm:$0xff] }
 0x33a   : > { %3060 = vmatpush.msra.mxu0 %v3037_v51  ;;  %v3542_v51 = vld [vmem:[#allocation10 + $0x1d8] sm:$0xff] }
 0x33b   : > { %3786 = vmatmul.msk.f32.gmra.mxu0 %vm2624_vm2, %v619_v36  ;;  %v2981_v36 = vld [vmem:[#allocation7 + $0x30] sm:$0xff] }
 0x37a   : > { %v2707_v34 = vpop.permute.xlu1 %2706 }
 0x398   : > { %v2657_v0 = vpop.f32.mrf.mxu0 }
 0x399   : > { %v2719_v52 = vrot.slane %v2657_v0, 4  ;;  %3787 = vmatmul.msk.f32.vlgmr.msra.gmra.mxu1 %vm2680_vm3, %v2657_v0 }
 0x39a   : > { %2895 = vmatpush.msra.mxu1 %v2883_v57 }
 0x39b   : > { %3788 = vmatmul.msk.f32.vlgmr.msrb.gmra.mxu2 %vm2680_vm3, %v2719_v52 }
 0x39c   : > { %2896 = vmatpush.msra.mxu1 %v2882_v53  ;;  %2961 = vmatpush.msrb.mxu2 %v2949_v16 }
 0x39e   : > { %2897 = vmatpush.msra.mxu1 %v2881_v22  ;;  %2962 = vmatpush.msrb.mxu2 %v2948_v23 }
 0x3a0   : > { %v2660_v40 = vpop.f32.mrf.mxu0  ;;  %2898 = vmatpush.msra.mxu1 %v2880_v14  ;;  %2963 = vmatpush.msrb.mxu2 %v2947_v7 }
 0x3a1   : > { %v2785_v19 = vrot.slane %v2660_v40, 4  ;;  %3789 = vmatmul.msk.f32.vlgmr.msrb.gmra.mxu3 %vm2680_vm3, %v2660_v40 }
 0x3a2   : > { %2899 = vmatpush.msra.mxu1 %v2879_v44  ;;  %2964 = vmatpush.msrb.mxu2 %v2946_v47 }
 0x3a3   : > { %3790 = vmatmul.msk.f32.vlgmr.msrb.gmra.mxu1 %vm2680_vm3, %v2785_v19  ;;  %2994 = vmatpush.msrb.mxu3 %v2982_v39  ;;  %v625_v39 = vld [vmem:[%s4798_s5 + $0x20] sm:$0xff] }
 0x3a4   : > { %2900 = vmatpush.msra.mxu1 %v2878_v42  ;;  %2965 = vmatpush.msrb.mxu2 %v2945_v48 }
 0x3a5   : > { %2995 = vmatpush.msrb.mxu3 %v2981_v36  ;;  %v3164_v36 = vld [vmem:[#allocation9] sm:$0xff] }
 0x3a6   : > { %2901 = vmatpush.msra.mxu1 %v2877_v5  ;;  %2966 = vmatpush.msrb.mxu2 %v2944_v62 }
 0x3a7   : > { %2996 = vmatpush.msrb.mxu3 %v2980_v50 }
 0x3a8   : > { %v2663_v38 = vpop.f32.mrf.mxu0  ;;  %2902 = vmatpush.msra.mxu1 %v2876_v63  ;;  %2967 = vmatpush.msrb.mxu2 %v2943_v55 }
 0x3a9   : > { %v2851_v41 = vrot.slane %v2663_v38, 4  ;;  %3791 = vmatmul.msk.f32.vlgmr.msra.gmra.mxu2 %vm2680_vm3, %v2663_v38  ;;  %2997 = vmatpush.msrb.mxu3 %v2979_v4  ;;  %v621_v38 = vld [vmem:[%s4798_s5] sm:$0xff] }
 0x3aa   : > { %2968 = vmatpush.msrb.mxu2 %v2942_v25  ;;  %3023 = vmatpush.msrb.mxu1 %v3014_v17  ;;  %v626_v17 = vld [vmem:[%s4798_s5 + $0x28] sm:$0xff]  ;;  %v3277_v4 = vld [vmem:[#allocation9 + $0x38] sm:$0xff] }
 0x3ab   : > { %3792 = vmatmul.msk.f32.vlgmr.msra.gmra.mxu3 %vm2680_vm3, %v2851_v41  ;;  %v622_v41 = vld [vmem:[%s4798_s5 + $0x8] sm:$0xff] }
 0x3ac   : > { %3083 = vmatpush.msra.mxu2 %v3074_v10  ;;  %3024 = vmatpush.msrb.mxu1 %v3013_v3  ;;  %v628_v10 = vld [vmem:[%s4798_s5 + $0x38] sm:$0xff]  ;;  %v3209_v3 = vld [vmem:[#allocation9 + $0x18] sm:$0xff] }
 0x3ad   : > { %2998 = vmatpush.msrb.mxu3 %v2978_v46  ;;  %v633_v46 = vld [vmem:[%s4801_s8] sm:$0xf] }
 0x3ae   : > { %3084 = vmatpush.msra.mxu2 %v3073_v54  ;;  %3025 = vmatpush.msrb.mxu1 %v3012_v15  ;;  %v3243_v54 = vld [vmem:[#allocation9 + $0x28] sm:$0xff]  ;;  %v3242_v15 = vld [vmem:[#allocation9 + $0x20] sm:$0xff] }
 0x3af   : > { %2999 = vmatpush.msrb.mxu3 %v2977_v37  ;;  %3401 = vperm.xlu2 %3907, %v633_v46   ;;  %v3407_v46 = vld [vmem:[#allocation10 + $0x80] sm:$0xff] }
 0x3b0   : > { %v2666_v24 = vpop.f32.mrf.mxu0  ;;  %3085 = vmatpush.msra.mxu2 %v3072_v21  ;;  %3026 = vmatpush.msrb.mxu1 %v3011_v18 }
 0x3b1   : > { %v2917_v8 = vrot.slane %v2666_v24, 4  ;;  %3793 = vmatmul.msk.f32.vlgmr.msra.gmra.mxu1 %vm2680_vm3, %v2666_v24  ;;  %3000 = vmatpush.msrb.mxu3 %v2976_v43  ;;  %v623_v24 = vld [vmem:[%s4798_s5 + $0x10] sm:$0xff]  ;;  %v3546_v43 = vld [vmem:[#allocation10 + $0x1f8] sm:$0xff] }
 0x3b2   : > { %3086 = vmatpush.msra.mxu2 %v3071_v45  ;;  %3027 = vmatpush.msrb.mxu1 %v3010_v30 }
 0x3b3   : > { %3794 = vmatmul.msk.f32.vlgmr.msrb.gmra.mxu0 %vm2680_vm3, %v2917_v8  ;;  %3001 = vmatpush.msrb.mxu3 %v2975_v60  ;;  %v624_v8 = vld [vmem:[%s4798_s5 + $0x18] sm:$0xff] }
 0x3b4   : > { %3087 = vmatpush.msra.mxu2 %v3070_v12  ;;  %3028 = vmatpush.msrb.mxu1 %v3009_v26 }
 0x3b5   : > { %3230 = vmatpush.msrb.mxu0 %v3209_v3  ;;  %v3414_v3 = vld [vmem:[#allocation10 + $0xb8] sm:$0xff] }
 0x3b6   : > { %3088 = vmatpush.msra.mxu2 %v3069_v28  ;;  %3029 = vmatpush.msrb.mxu1 %v3008_v29  ;;  %v3354_v29 = vld [vmem:[#allocation10 + $0x70] sm:$0xff] }
 0x3b7   : > { %3231 = vmatpush.msrb.mxu0 %v3208_v11  ;;  %v3421_v11 = vld [vmem:[#allocation10 + $0xf0] sm:$0xff] }
 0x3b8   : > { %v2669_v9 = vpop.f32.mrf.mxu0  ;;  %3089 = vmatpush.msra.mxu2 %v3068_v33  ;;  %3030 = vmatpush.msrb.mxu1 %v3007_v61  ;;  %v3352_v33 = vld [vmem:[#allocation10 + $0x60] sm:$0xff]  ;;  %v3350_v61 = vld [vmem:[#allocation10 + $0x50] sm:$0xff] }
 0x3b9   : > { %3795 = vmatmul.msk.f32.vlgmr.msrb.gmra.mxu2 %vm2680_vm3, %v2669_v9  ;;  %v3165_v9 = vld [vmem:[#allocation9 + $0x8] sm:$0xff] }
 0x3ba   : > { %3090 = vmatpush.msra.mxu2 %v3067_v6  ;;  %3186 = vmatpush.msra.mxu1 %v3165_v9  ;;  %v3355_v6 = vld [vmem:[#allocation10 + $0x78] sm:$0xff] }
 0x3bb   : > { %v3418_v9 = vld [vmem:[#allocation10 + $0xd8] sm:$0xff] }
 0x3bc   : > { %3187 = vmatpush.msra.mxu1 %v3164_v36  ;;  %3264 = vmatpush.msrb.mxu2 %v3243_v54  ;;  %v631_v36 = vld [vmem:[%s4822_s17] sm:$0xff]  ;;  %v3412_v54 = vld [vmem:[#allocation10 + $0xa8] sm:$0xff] }
 0x3be   : > { %3265 = vmatpush.msrb.mxu2 %v3242_v15  ;;  %v3410_v15 = vld [vmem:[#allocation10 + $0x98] sm:$0xff] }
 0x416   : > { %v2701_v58 = vpop.f32.mrf.mxu1 }
 0x417   : > { %v2709_v49 = vadd.f32 %v2707_v34, %v2701_v58  ;;  %v3353_v34 = vld [vmem:[#allocation10 + $0x68] sm:$0xff]  ;;  %v3348_v58 = vld [vmem:[#allocation10 + $0x40] sm:$0xff] }
 0x41e   : > { %v2739_v59 = vpop.f32.mrf.mxu2 }
 0x41f   : > { %v2742_v35 = vadd.f32 %v2739_v59, %v2709_v49  ;;  %v3351_v59 = vld [vmem:[#allocation10 + $0x58] sm:$0xff]  ;;  %v3540_v49 = vld [vmem:[#allocation10 + $0x1c8] sm:$0xff] }
 0x420   : > { %v2805_v0 = vpop.f32.mrf.mxu1 }
 0x424   : > { %v2772_v56 = vpop.f32.mrf.mxu3 }
 0x425   : > { %v2775_v57 = vadd.f32 %v2772_v56, %v2742_v35  ;;  %v3346_v56 = vld [vmem:[#allocation10 + $0x30] sm:$0xff]  ;;  %v3349_v35 = vld [vmem:[#allocation10 + $0x48] sm:$0xff] }
 0x427   : > { %v2808_v53 = vadd.f32 %v2805_v0, %v2775_v57  ;;  %v3198_v57 = vpop.permute.xlu2 %3197 }
 0x42c   : > { %v2838_v52 = vpop.f32.mrf.mxu2 }
 0x42d   : > { %v2841_v16 = vadd.f32 %v2838_v52, %v2808_v53  ;;  %v3344_v52 = vld [vmem:[#allocation10 + $0x20] sm:$0xff]  ;;  %v3347_v53 = vld [vmem:[#allocation10 + $0x38] sm:$0xff] }
 0x42e   : > { %v2871_v20 = vpop.f32.mrf.mxu3  ;;  %v2904_v23 = vpop.f32.mrf.mxu1 }
 0x42f   : > { %v2874_v22 = vadd.f32 %v2871_v20, %v2841_v16  ;;  %v3203_v16 = vpop.permute.xlu1 %3202 }
 0x430   : > { %v2937_v7 = vpop.f32.mrf.mxu0 }
 0x431   : > { %v2907_v14 = vadd.f32 %v2904_v23, %v2874_v22  ;;  %v3342_v22 = vld [vmem:[#allocation10 + $0x10] sm:$0xff]  ;;  %v3538_v23 = vld [vmem:[#allocation10 + $0x1b8] sm:$0xff] }
 0x433   : > { %v2940_v44 = vadd.f32 %v2937_v7, %v2907_v14 }
 0x43c   : > { %v2970_v47 = vpop.f32.mrf.mxu2 }
 0x43d   : > { %v2973_v40 = vadd.f32 %v2970_v47, %v2940_v44  ;;  %v3345_v44 = vld [vmem:[#allocation10 + $0x28] sm:$0xff] }
 0x43f   : > { %v2974_v19 = vmax.f32 %v2973_v40, 0.0  ;;  %v3340_v40 = vld [vmem:[#allocation10] sm:$0xff] }
 0x441   : > { %3796 = vmatmul.msk.f32.vlgmr.msrb.gmra.mxu3 %vm2680_vm3, %v2974_v19  ;;  %3797 = vmatmul.msk.f32.vlgmr.msrb.gmra.mxu1 %vm2680_vm3, %v2974_v19 }
 0x442   : > { %3798 = vmatmul.msk.f32.vlgmr.msra.gmra.mxu0 %vm2680_vm3, %v2974_v19  ;;  %3799 = vmatmul.msk.f32.vlgmr.msra.gmra.mxu2 %vm2680_vm3, %v2974_v19 }
 0x443   : > { %3298 = vmatpush.msrb.mxu1 %v3277_v4  ;;  %3367 = vmatpush.msra.mxu2 %v3354_v29  ;;  %v632_v4 = vld [vmem:[%s4822_s17 + $0x8] sm:$0xff] }
 0x444   : > { %v3473_v29 = vld [vmem:[#allocation10 + $0x120] sm:$0xff] }
 0x445   : > { %3299 = vmatpush.msrb.mxu1 %v3276_v27  ;;  %3368 = vmatpush.msra.mxu2 %v3352_v33  ;;  %v3411_v27 = vld [vmem:[#allocation10 + $0xa0] sm:$0xff]  ;;  %v3471_v33 = vld [vmem:[#allocation10 + $0x110] sm:$0xff] }
 0x447   : > { %3369 = vmatpush.msra.mxu2 %v3350_v61  ;;  %v3474_v61 = vld [vmem:[#allocation10 + $0x128] sm:$0xff] }
 0x449   : > { %3370 = vmatpush.msra.mxu2 %v3348_v58  ;;  %v3532_v58 = vld [vmem:[#allocation10 + $0x188] sm:$0xff] }
 0x44b   : > { %3371 = vmatpush.msra.mxu2 %v3346_v56 }
 0x44d   : > { %3372 = vmatpush.msra.mxu2 %v3344_v52  ;;  %v3539_v52 = vld [vmem:[#allocation10 + $0x1c0] sm:$0xff] }
 0x44f   : > { %3373 = vmatpush.msra.mxu2 %v3342_v22  ;;  %v3535_v22 = vld [vmem:[#allocation10 + $0x1a0] sm:$0xff] }
 0x451   : > { %3374 = vmatpush.msra.mxu2 %v3340_v40  ;;  %v3402_v40 = vpop.permute.xlu2 %3401 }
 0x4be   : > { %v3032_v42 = vpop.f32.mrf.mxu1 }
 0x4bf   : > { %v3062_v62 = vpop.f32.mrf.mxu0 }
 0x4c4   : > { %v3003_v48 = vpop.f32.mrf.mxu3 }
 0x4c5   : > { %v3035_v5 = vmax.f32 %v3003_v48, %v3032_v42  ;;  %v3092_v55 = vpop.f32.mrf.mxu2  ;;  %v3422_v48 = vld [vmem:[#allocation10 + $0xf8] sm:$0xff] }
 0x4c7   : > { %v3065_v63 = vmax.f32 %v3035_v5, %v3062_v62  ;;  %v3343_v5 = vld [vmem:[#allocation10 + $0x18] sm:$0xff] }
 0x4c9   : > { %v3095_v25 = vmax.f32 %v3065_v63, %v3092_v55  ;;  %v3420_v55 = vld [vmem:[#allocation10 + $0xe8] sm:$0xff] }
 0x4cb   : > { %3800 = vmatpush.msk.msra.mxu3 %vm694_vm0, %v3095_v25  ;;  %v3341_v25 = vld [vmem:[#allocation10 + $0x8] sm:$0xff] }
 0x4cc   : > { %3801 = vmatmul.msk.f32.vlgmr.msra.gmra.mxu3 %vm639_vm1, %v621_v38 }
 0x4cd   : > { %3578 = vmatpush.msrb.mxu3 %v3546_v43  ;;  %v3536_v43 = vld [vmem:[#allocation10 + $0x1a8] sm:$0xff] }
 0x4cf   : > { %3579 = vmatpush.msrb.mxu3 %v3544_v32  ;;  %v3478_v32 = vld [vmem:[#allocation10 + $0x148] sm:$0xff] }
 0x4d1   : > { %3580 = vmatpush.msrb.mxu3 %v3542_v51  ;;  %v3469_v51 = vld [vmem:[#allocation10 + $0x100] sm:$0xff] }
 0x4d3   : > { %3581 = vmatpush.msrb.mxu3 %v3540_v49  ;;  %v3545_v49 = vld [vmem:[#allocation10 + $0x1f0] sm:$0xff] }
 0x4d4   : > { %3802 = vmatmul.msk.f32.gmra.mxu3 %vm639_vm1, %v622_v41  ;;  %v3483_v41 = vld [vmem:[#allocation10 + $0x170] sm:$0xff] }
 0x4d5   : > { %3582 = vmatpush.msrb.mxu3 %v3538_v23  ;;  %v3533_v23 = vld [vmem:[#allocation10 + $0x190] sm:$0xff] }
 0x4d7   : > { %3583 = vmatpush.msrb.mxu3 %v3536_v43 }
 0x4dc   : > { %3803 = vmatmul.msk.f32.gmra.mxu3 %vm639_vm1, %v623_v24 }
 0x4e4   : > { %3804 = vmatmul.msk.f32.gmra.mxu3 %vm639_vm1, %v624_v8 }
 0x4ec   : > { %3805 = vmatmul.msk.f32.gmra.mxu3 %vm639_vm1, %v625_v39  ;;  %v3481_v39 = vld [vmem:[#allocation10 + $0x160] sm:$0xff] }
 0x4f4   : > { %3806 = vmatmul.msk.f32.gmra.mxu3 %vm639_vm1, %v626_v17 }
 0x4fc   : > { %3807 = vmatmul.msk.f32.gmra.mxu3 %vm639_vm1, %v627_v1  ;;  %v3416_v1 = vld [vmem:[#allocation10 + $0xc8] sm:$0xff] }
 0x504   : > { %3808 = vmatmul.msk.f32.gmra.mxu3 %vm639_vm1, %v628_v10 }
 0x54f   : > { %v3140_v50 = vpop.f32.mrf.mxu3 }
 0x550   : > { %3809 = vmatmul.msk.f32.vlgmr.msra.gmra.mxu1 %vm2624_vm2, %v3140_v50  ;;  %v3419_v50 = vld [vmem:[#allocation10 + $0xe0] sm:$0xff] }
 0x551   : > { %3387 = vmatpush.msra.mxu1 %v3355_v6  ;;  %v3534_v6 = vld [vmem:[#allocation10 + $0x198] sm:$0xff] }
 0x552   : > { %3584 = vmatpush.msrb.mxu3 %v3534_v6 }
 0x553   : > { %3388 = vmatpush.msra.mxu1 %v3353_v34  ;;  %v3472_v34 = vld [vmem:[#allocation10 + $0x118] sm:$0xff] }
 0x554   : > { %3585 = vmatpush.msrb.mxu3 %v3532_v58 }
 0x555   : > { %3389 = vmatpush.msra.mxu1 %v3351_v59  ;;  %v3470_v59 = vld [vmem:[#allocation10 + $0x108] sm:$0xff] }
 0x557   : > { %v3143_v21 = vpop.f32.mrf.mxu3  ;;  %3390 = vmatpush.msra.mxu1 %v3349_v35 }
 0x558   : > { %3810 = vmatmul.msk.f32.gmra.mxu1 %vm2624_vm2, %v3143_v21  ;;  %v3415_v21 = vld [vmem:[#allocation10 + $0xc0] sm:$0xff] }
 0x559   : > { %3391 = vmatpush.msra.mxu1 %v3347_v53  ;;  %v3537_v53 = vld [vmem:[#allocation10 + $0x1b0] sm:$0xff] }
 0x55b   : > { %3392 = vmatpush.msra.mxu1 %v3345_v44 }
 0x55d   : > { %3393 = vmatpush.msra.mxu1 %v3343_v5 }
 0x55f   : > { %v3146_v18 = vpop.f32.mrf.mxu3  ;;  %3394 = vmatpush.msra.mxu1 %v3341_v25 }
 0x560   : > { %3811 = vmatmul.msk.f32.vlgmr.msrb.gmra.mxu0 %vm2624_vm2, %v3146_v18  ;;  %v3413_v18 = vld [vmem:[#allocation10 + $0xb0] sm:$0xff] }
 0x567   : > { %v3149_v45 = vpop.f32.mrf.mxu3 }
 0x568   : > { %3812 = vmatmul.msk.f32.gmra.mxu0 %vm2624_vm2, %v3149_v45  ;;  %v3409_v45 = vld [vmem:[#allocation10 + $0x90] sm:$0xff] }
 0x56f   : > { %v3152_v30 = vpop.f32.mrf.mxu3 }
 0x570   : > { %3813 = vmatmul.msk.f32.vlgmr.msrb.gmra.mxu2 %vm2624_vm2, %v3152_v30  ;;  %v3484_v30 = vld [vmem:[#allocation10 + $0x178] sm:$0xff] }
 0x571   : > { %3454 = vmatpush.msrb.mxu2 %v3422_v48 }
 0x573   : > { %3455 = vmatpush.msrb.mxu2 %v3420_v55 }
 0x575   : > { %3456 = vmatpush.msrb.mxu2 %v3418_v9 }
 0x577   : > { %v3155_v31 = vpop.f32.mrf.mxu3  ;;  %3457 = vmatpush.msrb.mxu2 %v3416_v1 }
 0x578   : > { %3814 = vmatmul.msk.f32.gmra.mxu2 %vm2624_vm2, %v3155_v31  ;;  %v3479_v31 = vld [vmem:[#allocation10 + $0x150] sm:$0xff] }
 0x579   : > { %3458 = vmatpush.msrb.mxu2 %v3414_v3 }
 0x57b   : > { %3459 = vmatpush.msrb.mxu2 %v3412_v54 }
 0x57d   : > { %3460 = vmatpush.msrb.mxu2 %v3410_v15 }
 0x57f   : > { %v3158_v12 = vpop.f32.mrf.mxu3 }
 0x580   : > { %3815 = vmatmul.msk.f32.vlgmr.msrb.gmra.mxu1 %vm2624_vm2, %v3158_v12  ;;  %v3482_v12 = vld [vmem:[#allocation10 + $0x168] sm:$0xff] }
 0x581   : > { %3496 = vmatpush.msrb.mxu1 %v3483_v41 }
 0x583   : > { %3497 = vmatpush.msrb.mxu1 %v3481_v39 }
 0x585   : > { %3498 = vmatpush.msrb.mxu1 %v3479_v31 }
 0x587   : > { %v3161_v37 = vpop.f32.mrf.mxu3 }
 0x588   : > { %3816 = vmatmul.msk.f32.gmra.mxu1 %vm2624_vm2, %v3161_v37  ;;  %v3408_v37 = vld [vmem:[#allocation10 + $0x88] sm:$0xff] }
 0x589   : > { %3461 = vmatpush.msrb.mxu2 %v3408_v37 }
 0x5cd   : > { %v3189_v26 = vpop.f32.mrf.mxu1 }
 0x5ce   : > { %v3205_v14 = vadd.f32 %v3198_v57, %v3189_v26  ;;  %v3477_v26 = vld [vmem:[#allocation10 + $0x140] sm:$0xff] }
 0x5cf   : > { %3499 = vmatpush.msrb.mxu1 %v3477_v26  ;;  %v3543_v57 = vld [vmem:[#allocation10 + $0x1e0] sm:$0xff] }
 0x5d5   : > { %v3192_v13 = vpop.f32.mrf.mxu1 }
 0x5d6   : > { %v3206_v7 = vadd.f32 %v3203_v16, %v3192_v13  ;;  %v3475_v13 = vld [vmem:[#allocation10 + $0x130] sm:$0xff] }
 0x5d7   : > { %3500 = vmatpush.msrb.mxu1 %v3475_v13 }
 0x5d9   : > { %3501 = vmatpush.msrb.mxu1 %v3473_v29 }
 0x5db   : > { %3502 = vmatpush.msrb.mxu1 %v3471_v33 }
 0x5dd   : > { %v3233_v28 = vpop.f32.mrf.mxu0  ;;  %3503 = vmatpush.msrb.mxu1 %v3469_v51 }
 0x5de   : > { %v3239_v19 = vadd.f32 %v3233_v28, %v3205_v14  ;;  %v3480_v28 = vld [vmem:[#allocation10 + $0x158] sm:$0xff]  ;;  %v3531_v14 = vld [vmem:[#allocation10 + $0x180] sm:$0xff] }
 0x5e5   : > { %v3236_v20 = vpop.f32.mrf.mxu0 }
 0x5e6   : > { %v3240_v42 = vadd.f32 %v3236_v20, %v3206_v7 }
 0x5f3   : > { %v3267_v60 = vpop.f32.mrf.mxu2 }
 0x5f4   : > { %v3273_v62 = vadd.f32 %v3267_v60, %v3239_v19  ;;  %v3476_v60 = vld [vmem:[#allocation10 + $0x138] sm:$0xff] }
 0x5fb   : > { %v3270_v47 = vpop.f32.mrf.mxu2 }
 0x5fc   : > { %v3274_v63 = vadd.f32 %v3270_v47, %v3240_v42 }
 0x5fd   : > { %v3301_v0 = vpop.f32.mrf.mxu1 }
 0x5fe   : > { %v3307_v24 = vadd.f32 %v3301_v0, %v3273_v62  ;;  %v3541_v0 = vld [vmem:[#allocation10 + $0x1d0] sm:$0xff] }
 0x600   : > { %v3309_v10 = vmax.f32 %v3307_v24, 0.0 }
 0x605   : > { %v3304_v38 = vpop.f32.mrf.mxu1 }
 0x606   : > { %v3308_v8 = vadd.f32 %v3304_v38, %v3274_v63 }
 0x608   : > { %v3310_v17 = vmax.f32 %v3308_v8, 0.0 }
 0x60a   : > { %3331 = vmatpush.msra.mxu0 %v3310_v17 }
 0x60c   : > { %3332 = vmatpush.msra.mxu0 %v3309_v10 }
 0x60d   : > { %3817 = vmatmul.msk.f32.vlgmr.msra.gmra.mxu0 %vm2624_vm2, %v631_v36 }
 0x60e   : > { %3434 = vmatpush.msrb.mxu0 %v3421_v11 }
 0x610   : > { %3435 = vmatpush.msrb.mxu0 %v3419_v50 }
 0x612   : > { %3436 = vmatpush.msrb.mxu0 %v3417_v2 }
 0x614   : > { %3437 = vmatpush.msrb.mxu0 %v3415_v21 }
 0x615   : > { %3818 = vmatmul.msk.f32.gmra.mxu0 %vm2624_vm2, %v632_v4 }
 0x616   : > { %3438 = vmatpush.msrb.mxu0 %v3413_v18 }
 0x618   : > { %3439 = vmatpush.msrb.mxu0 %v3411_v27 }
 0x61a   : > { %3440 = vmatpush.msrb.mxu0 %v3409_v45 }
 0x61c   : > { %3441 = vmatpush.msrb.mxu0 %v3407_v46 }
 0x61e   : > { %3516 = vmatpush.msra.mxu0 %v3484_v30 }
 0x620   : > { %3517 = vmatpush.msra.mxu0 %v3482_v12 }
 0x622   : > { %3518 = vmatpush.msra.mxu0 %v3480_v28 }
 0x624   : > { %3519 = vmatpush.msra.mxu0 %v3478_v32 }
 0x626   : > { %3520 = vmatpush.msra.mxu0 %v3476_v60 }
 0x628   : > { %3521 = vmatpush.msra.mxu0 %v3474_v61 }
 0x62a   : > { %3522 = vmatpush.msra.mxu0 %v3472_v34 }
 0x62c   : > { %3523 = vmatpush.msra.mxu0 %v3470_v59 }
 0x68a   : > { %v3334_v56 = vpop.f32.mrf.mxu0 }
 0x68b   : > { %v3423_v35 = vrot.slane %v3334_v56, 4  ;;  %3819 = vmatmul.msk.f32.vlgmr.msra.gmra.mxu2 %vm2680_vm3, %v3334_v56  ;;  %3820 = vmatmul.msk.f32.vlgmr.msra.gmra.mxu1 %vm2680_vm3, %v3334_v56 }
 0x68c   : > { %3558 = vmatpush.msra.mxu2 %v3545_v49 }
 0x68d   : > { %3821 = vmatmul.msk.f32.vlgmr.msrb.gmra.mxu0 %vm2680_vm3, %v3423_v35 }
 0x68e   : > { %3559 = vmatpush.msra.mxu2 %v3543_v57 }
 0x690   : > { %3560 = vmatpush.msra.mxu2 %v3541_v0 }
 0x692   : > { %3561 = vmatpush.msra.mxu2 %v3539_v52  ;;  %v3337_v16 = vpop.f32.mrf.mxu0 }
 0x693   : > { %3822 = vmatmul.msk.f32.vlgmr.msrb.gmra.mxu2 %vm2680_vm3, %v3423_v35  ;;  %v3547_v20 = vrot.slane %v3337_v16, 4  ;;  %3823 = vmatmul.msk.f32.vlgmr.msrb.gmra.mxu1 %vm2680_vm3, %v3337_v16 }
 0x694   : > { %3562 = vmatpush.msra.mxu2 %v3537_v53 }
 0x695   : > { %3826 = vmatmul.msk.f32.vlgmr.msrb.gmra.mxu3 %vm2680_vm3, %v3547_v20  ;;  %3824 = vmatmul.msk.f32.vlgmr.msra.gmra.mxu0 %vm2680_vm3, %v3337_v16 }
 0x696   : > { %3563 = vmatpush.msra.mxu2 %v3535_v22 }
 0x698   : > { %3564 = vmatpush.msra.mxu2 %v3533_v23 }
 0x69a   : > { %3565 = vmatpush.msra.mxu2 %v3531_v14 }
 0x69b   : > { %3825 = vmatmul.msk.f32.vlgmr.msra.gmra.mxu2 %vm2680_vm3, %v3547_v20 }
 0x708   : > { %v3396_v47 = vpop.f32.mrf.mxu1 }
 0x709   : > { %v3405_v19 = vadd.f32 %v3402_v40, %v3396_v47 }
 0x70a   : > { %v3443_v44 = vpop.f32.mrf.mxu0 }
 0x70e   : > { %v3376_v7 = vpop.f32.mrf.mxu2 }
 0x70f   : > { %v3404_v42 = vadd.f32 %v3402_v40, %v3376_v7 }
 0x710   : > { %v3505_v38 = vpop.f32.mrf.mxu1 }
 0x711   : > { %v3466_v55 = vadd.f32 %v3443_v44, %v3404_v42 }
 0x712   : > { %v3525_v62 = vpop.f32.mrf.mxu0 }
 0x713   : > { %v3528_v24 = vadd.f32 %v3505_v38, %v3466_v55 }
 0x716   : > { %v3463_v48 = vpop.f32.mrf.mxu2 }
 0x717   : > { %v3467_v5 = vadd.f32 %v3463_v48, %v3405_v19 }
 0x718   : > { %v3587_v63 = vpop.f32.mrf.mxu3 }
 0x719   : > { %v3529_v25 = vadd.f32 %v3525_v62, %v3467_v5 }
 0x71b   : > { %v3591_v41 = vadd.f32 %v3587_v63, %v3529_v25 }
 0x71d   : > { %v3593_v8 = vsub.f32 0.0, %v3591_v41 }
 0x71e   : > { %v3567_v9 = vpop.f32.mrf.mxu2 }
 0x71f   : > { %v3596_v39 = vmul.f32 1.442695, %v3593_v8  ;;  %v3590_v17 = vadd.f32 %v3567_v9, %v3528_v24 }
 0x721   : > { %3908 = vpow2.f32 %v3596_v39  ;;  %v3592_v1 = vsub.f32 0.0, %v3590_v17 }
 0x723   : > { %v3594_v10 = vmul.f32 1.442695, %v3592_v1 }
 0x725   : > { %3910 = vpow2.f32 %v3594_v10 }
 0x727   : > { %v3909_v36 = vpop.eup %3908 }
 0x728   : > { %v3599_v3 = vadd.f32 1.0, %v3909_v36 }
 0x72a   : > { %3912 = vrcp.f32 %v3599_v3 }
 0x72b   : > { %v3911_v11 = vpop.eup %3910 }
 0x72c   : > { %v3598_v54 = vadd.f32 1.0, %v3911_v11 }
 0x72e   : > { %3914 = vrcp.f32 %v3598_v54 }
 0x730   : > { %v3913_v50 = vpop.eup %3912 }
 0x731   : > { %v3604_v15 = vrot.slane %v3913_v50, 4 }
 0x734   : > { %v3915_v2 = vpop.eup %3914 }
 0x735   : > { %v3605_v21 = vsel %vm694_vm0, %v3915_v2, %v3604_v15 }
 0x736   : > { %3607 = vst [vmem:[%s594_s26] sm:$0xff] %v3605_v21 }
 0x737 PF: > { %s4824_s20 = sld [smem:[#allocation16_spill]] }
 0x73d   : > { %s29_s18 = sadd.s32 1, %s4824_s20  }
 0x73e   : > { %p26_p7 = scmp.ge.s32.totalorder %s29_s18, 4  }
 0x740   :  { %28 = sbr.rel (!%p26_p7) target bundleno = 10 (0xa), region = 163 }
 0x745   :  { %3629 = vsyncpa [#allocation3], 1 }
 0x746   :  { %3631 = vsyncpa [#allocation3 + $0x1], 1 }
 0x747   :  { %3632 = vsyncpa [#allocation5], 1 }
 0x748   :  { %3633 = vsyncpa [#allocation8], 1 }
 0x749   :  { %3634 = vsyncpa [#allocation11], 1 }

</bundles_post_ra>
